<compile_context>
chip_gen: v7x
topology: tpu7x:2x2x1
jax: 0.10.0
libtpu: 0.0.40
codegen_flags: <defaults>
</compile_context>

<pallas_src>
import functools

import jax
import jax.numpy as jnp
from jax import lax
from jax.experimental import pallas as pl
from jax.experimental.pallas import tpu as pltpu

EPS = 1e-5


# ------------------------------ kernels -------------------------------------
def residual_kernel(x_ref, w_ref, gb_ref, out_ref, *, out_f, use_bf16):
    """out[:, :out_f] = ReLU(BN(x @ w)); out[:, out_f:] = x (passthrough)."""
    x = x_ref[...]                                      # (N, IN)  f32
    w = w_ref[...]                                      # (IN, OUT) f32
    if use_bf16:
        y = jnp.dot(x.astype(jnp.bfloat16), w.astype(jnp.bfloat16),
                    preferred_element_type=jnp.float32)
    else:
        y = jnp.dot(x, w, preferred_element_type=jnp.float32)     # (N, OUT)

    gamma = gb_ref[0:1, :]                              # (1, OUT)
    beta = gb_ref[1:2, :]                               # (1, OUT)

    # Batch statistics (biased variance), computed on the whole batch.
    inv_n = 1.0 / y.shape[0]
    mean = jnp.sum(y, axis=0, keepdims=True) * inv_n
    ex2 = jnp.sum(y * y, axis=0, keepdims=True) * inv_n
    var = jnp.maximum(ex2 - mean * mean, 0.0)

    # Fold normalization + affine into one scale/shift (cheap (1,OUT) math).
    scale = gamma * lax.rsqrt(var + EPS)
    shift = beta - mean * scale

    out_ref[:, :out_f] = jnp.maximum(y * scale + shift, 0.0)   # ReLU(BN(y))
    out_ref[:, out_f:] = x                                      # lane-aligned concat


def linear_tanh_kernel(x_ref, w_ref, b_ref, out_ref, *, use_bf16):
    x = x_ref[...]
    w = w_ref[...]
    if use_bf16:
        y = jnp.dot(x.astype(jnp.bfloat16), w.astype(jnp.bfloat16),
                    preferred_element_type=jnp.float32)
    else:
        y = jnp.dot(x, w, preferred_element_type=jnp.float32)
    out_ref[...] = jnp.tanh(y + b_ref[...])


# ------------------------------ wrappers ------------------------------------
def residual_block(x, w, gb, *, use_bf16=False):
    n, in_f = x.shape
    out_f = w.shape[1]
    kernel = functools.partial(residual_kernel, out_f=out_f, use_bf16=use_bf16)
    return pl.pallas_call(
        kernel,
        out_shape=jax.ShapeDtypeStruct((n, out_f + in_f), jnp.float32),
        grid=(1,),
        in_specs=[
            pl.BlockSpec((n, in_f), lambda i: (0, 0)),
            pl.BlockSpec((in_f, out_f), lambda i: (0, 0)),
            pl.BlockSpec((2, out_f), lambda i: (0, 0)),
        ],
        out_specs=pl.BlockSpec((n, out_f + in_f), lambda i: (0, 0)),
        compiler_params=pltpu.CompilerParams(dimension_semantics=("arbitrary",)),
    )(x, w, gb)


def linear_tanh(x, w, b2, *, use_bf16=False):
    n, in_f = x.shape
    out_f = w.shape[1]
    kernel = functools.partial(linear_tanh_kernel, use_bf16=use_bf16)
    return pl.pallas_call(
        kernel,
        out_shape=jax.ShapeDtypeStruct((n, out_f), jnp.float32),
        grid=(1,),
        in_specs=[
            pl.BlockSpec((n, in_f), lambda i: (0, 0)),
            pl.BlockSpec((in_f, out_f), lambda i: (0, 0)),
            pl.BlockSpec((1, out_f), lambda i: (0, 0)),
        ],
        out_specs=pl.BlockSpec((n, out_f), lambda i: (0, 0)),
        compiler_params=pltpu.CompilerParams(dimension_semantics=("arbitrary",)),
    )(x, w, b2)


@functools.partial(jax.jit, static_argnames=("use_bf16",))
def generator_forward(x, res_params, final_w, final_b2, use_bf16=False):
    """res_params: list of (w (IN,OUT), gamma_beta (2,OUT)); final bias as (1,OUT)."""
    h = x
    for w, gb in res_params:
        h = residual_block(h, w, gb, use_bf16=use_bf16)
    return linear_tanh(h, final_w, final_b2, use_bf16=use_bf16)


# ------------------------------ reference -----------------------------------
def generator_reference(x, res_params_ref, final_w, final_b):
    """Pure-JAX PyTorch semantics (including the redundant Linear bias)."""
    h = x
    for w, b, gamma, beta in res_params_ref:
        y = h @ w + b
        mean = jnp.mean(y, axis=0, keepdims=True)
        var = jnp.mean((y - mean) ** 2, axis=0, keepdims=True)
        o = jnp.maximum((y - mean) / jnp.sqrt(var + EPS) * gamma + beta, 0.0)
        h = jnp.concatenate([o, h], axis=1)
    return jnp.tanh(h @ final_w + final_b)


# --------------------------------- demo -------------------------------------
if __name__ == "__main__":
    N, LATENT, HIDDEN, FEATURE_DIM = 8, 128, 256, 128

    key = jax.random.PRNGKey(0)
    k_x, key = jax.random.split(key)
    x = jax.random.normal(k_x, (N, LATENT), dtype=jnp.float32)

    in_feats = [LATENT, LATENT + HIDDEN, LATENT + 2 * HIDDEN, LATENT + 3 * HIDDEN]
    res_params = []       # kernel params:    (w (IN,OUT), gamma_beta (2,OUT))
    res_params_ref = []   # reference params: (w, b, gamma, beta)
    for in_f in in_feats:
        key, kw, kb, kg, kbe = jax.random.split(key, 5)
        bound = 1.0 / (in_f ** 0.5)
        w = jax.random.uniform(kw, (in_f, HIDDEN), jnp.float32, -bound, bound)
        b = jax.random.uniform(kb, (HIDDEN,), jnp.float32, -bound, bound)
        # PyTorch default BN init is gamma=1, beta=0; randomize to exercise affine math.
        gamma = jax.random.uniform(kg, (HIDDEN,), jnp.float32, 0.5, 1.5)
        beta = 0.1 * jax.random.normal(kbe, (HIDDEN,), jnp.float32)
        res_params.append((w, jnp.stack([gamma, beta], axis=0)))
        res_params_ref.append((w, b, gamma, beta))

    final_in = LATENT + 4 * HIDDEN
    key, kw, kb = jax.random.split(key, 3)
    bound = 1.0 / (final_in ** 0.5)
    final_w = jax.random.uniform(kw, (final_in, FEATURE_DIM), jnp.float32, -bound, bound)
    final_b = jax.random.uniform(kb, (FEATURE_DIM,), jnp.float32, -bound, bound)
    final_b2 = final_b.reshape(1, FEATURE_DIM)

    out = generator_forward(x, res_params, final_w, final_b2, use_bf16=False)
    out = jax.block_until_ready(out)

    ref = generator_reference(x, res_params_ref, final_w, final_b)
    assert out.shape == (N, FEATURE_DIM)
    assert jnp.allclose(out, ref, atol=2e-3, rtol=2e-3), "f32 path mismatch vs reference"

    # bf16 MXU-operand variant (v6e/v7x optimization); f32 epilogue, loose check.
    out_bf16 = generator_forward(x, res_params, final_w, final_b2, use_bf16=True)
    out_bf16 = jax.block_until_ready(out_bf16)
    assert float(jnp.max(jnp.abs(out_bf16 - ref))) < 0.25, "bf16 path diverged"

    print("KERNEL_OK")
</pallas_src>

<mosaic_0001>
module attributes {stable_mosaic.version = 11 : i64} {
  func.func @residual_kernel(%arg0: i32, %arg1: memref<8x640xf32, #tpu.memory_space<vmem>>, %arg2: memref<640x256xf32, #tpu.memory_space<vmem>>, %arg3: memref<2x256xf32, #tpu.memory_space<vmem>>, %arg4: memref<8x896xf32, #tpu.memory_space<vmem>>) attributes {dimension_semantics = [#tpu.dimension_semantics<arbitrary>], iteration_bounds = array<i64: 1>, scalar_prefetch = 0 : i64, scratch_operands = 0 : i64, tpu.core_type = #tpu.core_type<tc>, window_params = [{pipeline_mode = #tpu.pipeline_mode<synchronous>, transform_indices = @transform_0, window_bounds = array<i64: 8, 640>}, {pipeline_mode = #tpu.pipeline_mode<synchronous>, transform_indices = @transform_1, window_bounds = array<i64: 640, 256>}, {pipeline_mode = #tpu.pipeline_mode<synchronous>, transform_indices = @transform_2, window_bounds = array<i64: 2, 256>}, {pipeline_mode = #tpu.pipeline_mode<synchronous>, transform_indices = @transform_3, window_bounds = array<i64: 8, 896>}]} {
    %c0 = arith.constant 0 : index
    %c0_0 = arith.constant 0 : index
    %0 = vector.load %arg1[%c0, %c0_0] : memref<8x640xf32, #tpu.memory_space<vmem>>, vector<8x640xf32>
    %c0_1 = arith.constant 0 : index
    %c0_2 = arith.constant 0 : index
    %1 = vector.load %arg2[%c0_1, %c0_2] : memref<640x256xf32, #tpu.memory_space<vmem>>, vector<640x256xf32>
    %cst = arith.constant dense<0.000000e+00> : vector<8x256xf32>
    %2 = tpu.matmul %0, %1, %cst {dimension_numbers = #tpu.dot_dimension_numbers<[1], [0], [0], [1], [0, 0, 1, 1], [], []>} : vector<8x640xf32>, vector<640x256xf32>, vector<8x256xf32> -> vector<8x256xf32>
    %c0_3 = arith.constant 0 : index
    %c0_4 = arith.constant 0 : index
    %3 = vector.load %arg3[%c0_3, %c0_4] : memref<2x256xf32, #tpu.memory_space<vmem>>, vector<1x256xf32>
    %c1 = arith.constant 1 : index
    %c0_5 = arith.constant 0 : index
    %4 = vector.load %arg3[%c1, %c0_5] : memref<2x256xf32, #tpu.memory_space<vmem>>, vector<1x256xf32>
    %cst_6 = arith.constant dense<0.000000e+00> : vector<256xf32>
    %5 = vector.multi_reduction <add>, %2, %cst_6 [0] : vector<8x256xf32> to vector<256xf32>
    %6 = vector.shape_cast %5 : vector<256xf32> to vector<1x256xf32>
    %cst_7 = arith.constant 1.250000e-01 : f32
    %7 = vector.broadcast %cst_7 : f32 to vector<1x256xf32>
    %8 = arith.mulf %6, %7 : vector<1x256xf32>
    %9 = arith.mulf %2, %2 : vector<8x256xf32>
    %cst_8 = arith.constant dense<0.000000e+00> : vector<256xf32>
    %10 = vector.multi_reduction <add>, %9, %cst_8 [0] : vector<8x256xf32> to vector<256xf32>
    %11 = vector.shape_cast %10 : vector<256xf32> to vector<1x256xf32>
    %cst_9 = arith.constant 1.250000e-01 : f32
    %12 = vector.broadcast %cst_9 : f32 to vector<1x256xf32>
    %13 = arith.mulf %11, %12 : vector<1x256xf32>
    %14 = arith.mulf %8, %8 : vector<1x256xf32>
    %15 = arith.subf %13, %14 : vector<1x256xf32>
    %cst_10 = arith.constant 0.000000e+00 : f32
    %16 = vector.broadcast %cst_10 : f32 to vector<1x256xf32>
    %17 = arith.maximumf %15, %16 : vector<1x256xf32>
    %cst_11 = arith.constant 9.99999974E-6 : f32
    %18 = vector.broadcast %cst_11 : f32 to vector<1x256xf32>
    %19 = arith.addf %17, %18 : vector<1x256xf32>
    %20 = math.rsqrt %19 : vector<1x256xf32>
    %21 = arith.mulf %3, %20 : vector<1x256xf32>
    %22 = arith.mulf %8, %21 : vector<1x256xf32>
    %23 = arith.subf %4, %22 : vector<1x256xf32>
    %24 = vector.broadcast %21 : vector<1x256xf32> to vector<8x256xf32>
    %25 = arith.mulf %2, %24 : vector<8x256xf32>
    %26 = vector.broadcast %23 : vector<1x256xf32> to vector<8x256xf32>
    %27 = arith.addf %25, %26 : vector<8x256xf32>
    %cst_12 = arith.constant 0.000000e+00 : f32
    %28 = vector.broadcast %cst_12 : f32 to vector<8x256xf32>
    %29 = arith.maximumf %27, %28 : vector<8x256xf32>
    %c0_13 = arith.constant 0 : index
    %c0_14 = arith.constant 0 : index
    %30 = vector.load %arg4[%c0_13, %c0_14] : memref<8x896xf32, #tpu.memory_space<vmem>>, vector<8x256xf32>
    tpu.vector_store %arg4[%c0_13, %c0_14], %29 {strides = array<i32>} : memref<8x896xf32, #tpu.memory_space<vmem>>, vector<8x256xf32>,
    %c0_15 = arith.constant 0 : index
    %c256 = arith.constant 256 : index
    %31 = vector.load %arg4[%c0_15, %c256] : memref<8x896xf32, #tpu.memory_space<vmem>>, vector<8x640xf32>
    tpu.vector_store %arg4[%c0_15, %c256], %0 {strides = array<i32>} : memref<8x896xf32, #tpu.memory_space<vmem>>, vector<8x640xf32>,
    return
  }
  func.func @transform_0(%arg0: i32) -> (i32, i32) {
    %c0_i32 = arith.constant 0 : i32
    %c0_i32_0 = arith.constant 0 : i32
    %c0_i32_1 = arith.constant 0 : i32
    return %c0_i32, %c0_i32_0 : i32, i32
  }
  func.func @transform_1(%arg0: i32) -> (i32, i32) {
    %c0_i32 = arith.constant 0 : i32
    %c0_i32_0 = arith.constant 0 : i32
    %c0_i32_1 = arith.constant 0 : i32
    return %c0_i32, %c0_i32_0 : i32, i32
  }
  func.func @transform_2(%arg0: i32) -> (i32, i32) {
    %c0_i32 = arith.constant 0 : i32
    %c0_i32_0 = arith.constant 0 : i32
    %c0_i32_1 = arith.constant 0 : i32
    return %c0_i32, %c0_i32_0 : i32, i32
  }
  func.func @transform_3(%arg0: i32) -> (i32, i32) {
    %c0_i32 = arith.constant 0 : i32
    %c0_i32_0 = arith.constant 0 : i32
    %c0_i32_1 = arith.constant 0 : i32
    return %c0_i32, %c0_i32_0 : i32, i32
  }
}

module attributes {stable_mosaic.version = 11 : i64} {
  func.func @residual_kernel(%arg0: i32, %arg1: memref<8x384xf32, #tpu.memory_space<vmem>>, %arg2: memref<384x256xf32, #tpu.memory_space<vmem>>, %arg3: memref<2x256xf32, #tpu.memory_space<vmem>>, %arg4: memref<8x640xf32, #tpu.memory_space<vmem>>) attributes {dimension_semantics = [#tpu.dimension_semantics<arbitrary>], iteration_bounds = array<i64: 1>, scalar_prefetch = 0 : i64, scratch_operands = 0 : i64, tpu.core_type = #tpu.core_type<tc>, window_params = [{pipeline_mode = #tpu.pipeline_mode<synchronous>, transform_indices = @transform_0, window_bounds = array<i64: 8, 384>}, {pipeline_mode = #tpu.pipeline_mode<synchronous>, transform_indices = @transform_1, window_bounds = array<i64: 384, 256>}, {pipeline_mode = #tpu.pipeline_mode<synchronous>, transform_indices = @transform_2, window_bounds = array<i64: 2, 256>}, {pipeline_mode = #tpu.pipeline_mode<synchronous>, transform_indices = @transform_3, window_bounds = array<i64: 8, 640>}]} {
    %c0 = arith.constant 0 : index
    %c0_0 = arith.constant 0 : index
    %0 = vector.load %arg1[%c0, %c0_0] : memref<8x384xf32, #tpu.memory_space<vmem>>, vector<8x384xf32>
    %c0_1 = arith.constant 0 : index
    %c0_2 = arith.constant 0 : index
    %1 = vector.load %arg2[%c0_1, %c0_2] : memref<384x256xf32, #tpu.memory_space<vmem>>, vector<384x256xf32>
    %cst = arith.constant dense<0.000000e+00> : vector<8x256xf32>
    %2 = tpu.matmul %0, %1, %cst {dimension_numbers = #tpu.dot_dimension_numbers<[1], [0], [0], [1], [0, 0, 1, 1], [], []>} : vector<8x384xf32>, vector<384x256xf32>, vector<8x256xf32> -> vector<8x256xf32>
    %c0_3 = arith.constant 0 : index
    %c0_4 = arith.constant 0 : index
    %3 = vector.load %arg3[%c0_3, %c0_4] : memref<2x256xf32, #tpu.memory_space<vmem>>, vector<1x256xf32>
    %c1 = arith.constant 1 : index
    %c0_5 = arith.constant 0 : index
    %4 = vector.load %arg3[%c1, %c0_5] : memref<2x256xf32, #tpu.memory_space<vmem>>, vector<1x256xf32>
    %cst_6 = arith.constant dense<0.000000e+00> : vector<256xf32>
    %5 = vector.multi_reduction <add>, %2, %cst_6 [0] : vector<8x256xf32> to vector<256xf32>
    %6 = vector.shape_cast %5 : vector<256xf32> to vector<1x256xf32>
    %cst_7 = arith.constant 1.250000e-01 : f32
    %7 = vector.broadcast %cst_7 : f32 to vector<1x256xf32>
    %8 = arith.mulf %6, %7 : vector<1x256xf32>
    %9 = arith.mulf %2, %2 : vector<8x256xf32>
    %cst_8 = arith.constant dense<0.000000e+00> : vector<256xf32>
    %10 = vector.multi_reduction <add>, %9, %cst_8 [0] : vector<8x256xf32> to vector<256xf32>
    %11 = vector.shape_cast %10 : vector<256xf32> to vector<1x256xf32>
    %cst_9 = arith.constant 1.250000e-01 : f32
    %12 = vector.broadcast %cst_9 : f32 to vector<1x256xf32>
    %13 = arith.mulf %11, %12 : vector<1x256xf32>
    %14 = arith.mulf %8, %8 : vector<1x256xf32>
    %15 = arith.subf %13, %14 : vector<1x256xf32>
    %cst_10 = arith.constant 0.000000e+00 : f32
    %16 = vector.broadcast %cst_10 : f32 to vector<1x256xf32>
    %17 = arith.maximumf %15, %16 : vector<1x256xf32>
    %cst_11 = arith.constant 9.99999974E-6 : f32
    %18 = vector.broadcast %cst_11 : f32 to vector<1x256xf32>
    %19 = arith.addf %17, %18 : vector<1x256xf32>
    %20 = math.rsqrt %19 : vector<1x256xf32>
    %21 = arith.mulf %3, %20 : vector<1x256xf32>
    %22 = arith.mulf %8, %21 : vector<1x256xf32>
    %23 = arith.subf %4, %22 : vector<1x256xf32>
    %24 = vector.broadcast %21 : vector<1x256xf32> to vector<8x256xf32>
    %25 = arith.mulf %2, %24 : vector<8x256xf32>
    %26 = vector.broadcast %23 : vector<1x256xf32> to vector<8x256xf32>
    %27 = arith.addf %25, %26 : vector<8x256xf32>
    %cst_12 = arith.constant 0.000000e+00 : f32
    %28 = vector.broadcast %cst_12 : f32 to vector<8x256xf32>
    %29 = arith.maximumf %27, %28 : vector<8x256xf32>
    %c0_13 = arith.constant 0 : index
    %c0_14 = arith.constant 0 : index
    %30 = vector.load %arg4[%c0_13, %c0_14] : memref<8x640xf32, #tpu.memory_space<vmem>>, vector<8x256xf32>
    tpu.vector_store %arg4[%c0_13, %c0_14], %29 {strides = array<i32>} : memref<8x640xf32, #tpu.memory_space<vmem>>, vector<8x256xf32>,
    %c0_15 = arith.constant 0 : index
    %c256 = arith.constant 256 : index
    %31 = vector.load %arg4[%c0_15, %c256] : memref<8x640xf32, #tpu.memory_space<vmem>>, vector<8x384xf32>
    tpu.vector_store %arg4[%c0_15, %c256], %0 {strides = array<i32>} : memref<8x640xf32, #tpu.memory_space<vmem>>, vector<8x384xf32>,
    return
  }
  func.func @transform_0(%arg0: i32) -> (i32, i32) {
    %c0_i32 = arith.constant 0 : i32
    %c0_i32_0 = arith.constant 0 : i32
    %c0_i32_1 = arith.constant 0 : i32
    return %c0_i32, %c0_i32_0 : i32, i32
  }
  func.func @transform_1(%arg0: i32) -> (i32, i32) {
    %c0_i32 = arith.constant 0 : i32
    %c0_i32_0 = arith.constant 0 : i32
    %c0_i32_1 = arith.constant 0 : i32
    return %c0_i32, %c0_i32_0 : i32, i32
  }
  func.func @transform_2(%arg0: i32) -> (i32, i32) {
    %c0_i32 = arith.constant 0 : i32
    %c0_i32_0 = arith.constant 0 : i32
    %c0_i32_1 = arith.constant 0 : i32
    return %c0_i32, %c0_i32_0 : i32, i32
  }
  func.func @transform_3(%arg0: i32) -> (i32, i32) {
    %c0_i32 = arith.constant 0 : i32
    %c0_i32_0 = arith.constant 0 : i32
    %c0_i32_1 = arith.constant 0 : i32
    return %c0_i32, %c0_i32_0 : i32, i32
  }
}

module attributes {stable_mosaic.version = 11 : i64} {
  func.func @residual_kernel(%arg0: i32, %arg1: memref<8x128xf32, #tpu.memory_space<vmem>>, %arg2: memref<128x256xf32, #tpu.memory_space<vmem>>, %arg3: memref<2x256xf32, #tpu.memory_space<vmem>>, %arg4: memref<8x384xf32, #tpu.memory_space<vmem>>) attributes {dimension_semantics = [#tpu.dimension_semantics<arbitrary>], iteration_bounds = array<i64: 1>, scalar_prefetch = 0 : i64, scratch_operands = 0 : i64, tpu.core_type = #tpu.core_type<tc>, window_params = [{pipeline_mode = #tpu.pipeline_mode<synchronous>, transform_indices = @transform_0, window_bounds = array<i64: 8, 128>}, {pipeline_mode = #tpu.pipeline_mode<synchronous>, transform_indices = @transform_1, window_bounds = array<i64: 128, 256>}, {pipeline_mode = #tpu.pipeline_mode<synchronous>, transform_indices = @transform_2, window_bounds = array<i64: 2, 256>}, {pipeline_mode = #tpu.pipeline_mode<synchronous>, transform_indices = @transform_3, window_bounds = array<i64: 8, 384>}]} {
    %c0 = arith.constant 0 : index
    %c0_0 = arith.constant 0 : index
    %0 = vector.load %arg1[%c0, %c0_0] : memref<8x128xf32, #tpu.memory_space<vmem>>, vector<8x128xf32>
    %c0_1 = arith.constant 0 : index
    %c0_2 = arith.constant 0 : index
    %1 = vector.load %arg2[%c0_1, %c0_2] : memref<128x256xf32, #tpu.memory_space<vmem>>, vector<128x256xf32>
    %cst = arith.constant dense<0.000000e+00> : vector<8x256xf32>
    %2 = tpu.matmul %0, %1, %cst {dimension_numbers = #tpu.dot_dimension_numbers<[1], [0], [0], [1], [0, 0, 1, 1], [], []>} : vector<8x128xf32>, vector<128x256xf32>, vector<8x256xf32> -> vector<8x256xf32>
    %c0_3 = arith.constant 0 : index
    %c0_4 = arith.constant 0 : index
    %3 = vector.load %arg3[%c0_3, %c0_4] : memref<2x256xf32, #tpu.memory_space<vmem>>, vector<1x256xf32>
    %c1 = arith.constant 1 : index
    %c0_5 = arith.constant 0 : index
    %4 = vector.load %arg3[%c1, %c0_5] : memref<2x256xf32, #tpu.memory_space<vmem>>, vector<1x256xf32>
    %cst_6 = arith.constant dense<0.000000e+00> : vector<256xf32>
    %5 = vector.multi_reduction <add>, %2, %cst_6 [0] : vector<8x256xf32> to vector<256xf32>
    %6 = vector.shape_cast %5 : vector<256xf32> to vector<1x256xf32>
    %cst_7 = arith.constant 1.250000e-01 : f32
    %7 = vector.broadcast %cst_7 : f32 to vector<1x256xf32>
    %8 = arith.mulf %6, %7 : vector<1x256xf32>
    %9 = arith.mulf %2, %2 : vector<8x256xf32>
    %cst_8 = arith.constant dense<0.000000e+00> : vector<256xf32>
    %10 = vector.multi_reduction <add>, %9, %cst_8 [0] : vector<8x256xf32> to vector<256xf32>
    %11 = vector.shape_cast %10 : vector<256xf32> to vector<1x256xf32>
    %cst_9 = arith.constant 1.250000e-01 : f32
    %12 = vector.broadcast %cst_9 : f32 to vector<1x256xf32>
    %13 = arith.mulf %11, %12 : vector<1x256xf32>
    %14 = arith.mulf %8, %8 : vector<1x256xf32>
    %15 = arith.subf %13, %14 : vector<1x256xf32>
    %cst_10 = arith.constant 0.000000e+00 : f32
    %16 = vector.broadcast %cst_10 : f32 to vector<1x256xf32>
    %17 = arith.maximumf %15, %16 : vector<1x256xf32>
    %cst_11 = arith.constant 9.99999974E-6 : f32
    %18 = vector.broadcast %cst_11 : f32 to vector<1x256xf32>
    %19 = arith.addf %17, %18 : vector<1x256xf32>
    %20 = math.rsqrt %19 : vector<1x256xf32>
    %21 = arith.mulf %3, %20 : vector<1x256xf32>
    %22 = arith.mulf %8, %21 : vector<1x256xf32>
    %23 = arith.subf %4, %22 : vector<1x256xf32>
    %24 = vector.broadcast %21 : vector<1x256xf32> to vector<8x256xf32>
    %25 = arith.mulf %2, %24 : vector<8x256xf32>
    %26 = vector.broadcast %23 : vector<1x256xf32> to vector<8x256xf32>
    %27 = arith.addf %25, %26 : vector<8x256xf32>
    %cst_12 = arith.constant 0.000000e+00 : f32
    %28 = vector.broadcast %cst_12 : f32 to vector<8x256xf32>
    %29 = arith.maximumf %27, %28 : vector<8x256xf32>
    %c0_13 = arith.constant 0 : index
    %c0_14 = arith.constant 0 : index
    %30 = vector.load %arg4[%c0_13, %c0_14] : memref<8x384xf32, #tpu.memory_space<vmem>>, vector<8x256xf32>
    tpu.vector_store %arg4[%c0_13, %c0_14], %29 {strides = array<i32>} : memref<8x384xf32, #tpu.memory_space<vmem>>, vector<8x256xf32>,
    %c0_15 = arith.constant 0 : index
    %c256 = arith.constant 256 : index
    %31 = vector.load %arg4[%c0_15, %c256] : memref<8x384xf32, #tpu.memory_space<vmem>>, vector<8x128xf32>
    tpu.vector_store %arg4[%c0_15, %c256], %0 {strides = array<i32>} : memref<8x384xf32, #tpu.memory_space<vmem>>, vector<8x128xf32>,
    return
  }
  func.func @transform_0(%arg0: i32) -> (i32, i32) {
    %c0_i32 = arith.constant 0 : i32
    %c0_i32_0 = arith.constant 0 : i32
    %c0_i32_1 = arith.constant 0 : i32
    return %c0_i32, %c0_i32_0 : i32, i32
  }
  func.func @transform_1(%arg0: i32) -> (i32, i32) {
    %c0_i32 = arith.constant 0 : i32
    %c0_i32_0 = arith.constant 0 : i32
    %c0_i32_1 = arith.constant 0 : i32
    return %c0_i32, %c0_i32_0 : i32, i32
  }
  func.func @transform_2(%arg0: i32) -> (i32, i32) {
    %c0_i32 = arith.constant 0 : i32
    %c0_i32_0 = arith.constant 0 : i32
    %c0_i32_1 = arith.constant 0 : i32
    return %c0_i32, %c0_i32_0 : i32, i32
  }
  func.func @transform_3(%arg0: i32) -> (i32, i32) {
    %c0_i32 = arith.constant 0 : i32
    %c0_i32_0 = arith.constant 0 : i32
    %c0_i32_1 = arith.constant 0 : i32
    return %c0_i32, %c0_i32_0 : i32, i32
  }
}

module attributes {stable_mosaic.version = 11 : i64} {
  func.func @residual_kernel(%arg0: i32, %arg1: memref<8x896xf32, #tpu.memory_space<vmem>>, %arg2: memref<896x256xf32, #tpu.memory_space<vmem>>, %arg3: memref<2x256xf32, #tpu.memory_space<vmem>>, %arg4: memref<8x1152xf32, #tpu.memory_space<vmem>>) attributes {dimension_semantics = [#tpu.dimension_semantics<arbitrary>], iteration_bounds = array<i64: 1>, scalar_prefetch = 0 : i64, scratch_operands = 0 : i64, tpu.core_type = #tpu.core_type<tc>, window_params = [{pipeline_mode = #tpu.pipeline_mode<synchronous>, transform_indices = @transform_0, window_bounds = array<i64: 8, 896>}, {pipeline_mode = #tpu.pipeline_mode<synchronous>, transform_indices = @transform_1, window_bounds = array<i64: 896, 256>}, {pipeline_mode = #tpu.pipeline_mode<synchronous>, transform_indices = @transform_2, window_bounds = array<i64: 2, 256>}, {pipeline_mode = #tpu.pipeline_mode<synchronous>, transform_indices = @transform_3, window_bounds = array<i64: 8, 1152>}]} {
    %c0 = arith.constant 0 : index
    %c0_0 = arith.constant 0 : index
    %0 = vector.load %arg1[%c0, %c0_0] : memref<8x896xf32, #tpu.memory_space<vmem>>, vector<8x896xf32>
    %c0_1 = arith.constant 0 : index
    %c0_2 = arith.constant 0 : index
    %1 = vector.load %arg2[%c0_1, %c0_2] : memref<896x256xf32, #tpu.memory_space<vmem>>, vector<896x256xf32>
    %cst = arith.constant dense<0.000000e+00> : vector<8x256xf32>
    %2 = tpu.matmul %0, %1, %cst {dimension_numbers = #tpu.dot_dimension_numbers<[1], [0], [0], [1], [0, 0, 1, 1], [], []>} : vector<8x896xf32>, vector<896x256xf32>, vector<8x256xf32> -> vector<8x256xf32>
    %c0_3 = arith.constant 0 : index
    %c0_4 = arith.constant 0 : index
    %3 = vector.load %arg3[%c0_3, %c0_4] : memref<2x256xf32, #tpu.memory_space<vmem>>, vector<1x256xf32>
    %c1 = arith.constant 1 : index
    %c0_5 = arith.constant 0 : index
    %4 = vector.load %arg3[%c1, %c0_5] : memref<2x256xf32, #tpu.memory_space<vmem>>, vector<1x256xf32>
    %cst_6 = arith.constant dense<0.000000e+00> : vector<256xf32>
    %5 = vector.multi_reduction <add>, %2, %cst_6 [0] : vector<8x256xf32> to vector<256xf32>
    %6 = vector.shape_cast %5 : vector<256xf32> to vector<1x256xf32>
    %cst_7 = arith.constant 1.250000e-01 : f32
    %7 = vector.broadcast %cst_7 : f32 to vector<1x256xf32>
    %8 = arith.mulf %6, %7 : vector<1x256xf32>
    %9 = arith.mulf %2, %2 : vector<8x256xf32>
    %cst_8 = arith.constant dense<0.000000e+00> : vector<256xf32>
    %10 = vector.multi_reduction <add>, %9, %cst_8 [0] : vector<8x256xf32> to vector<256xf32>
    %11 = vector.shape_cast %10 : vector<256xf32> to vector<1x256xf32>
    %cst_9 = arith.constant 1.250000e-01 : f32
    %12 = vector.broadcast %cst_9 : f32 to vector<1x256xf32>
    %13 = arith.mulf %11, %12 : vector<1x256xf32>
    %14 = arith.mulf %8, %8 : vector<1x256xf32>
    %15 = arith.subf %13, %14 : vector<1x256xf32>
    %cst_10 = arith.constant 0.000000e+00 : f32
    %16 = vector.broadcast %cst_10 : f32 to vector<1x256xf32>
    %17 = arith.maximumf %15, %16 : vector<1x256xf32>
    %cst_11 = arith.constant 9.99999974E-6 : f32
    %18 = vector.broadcast %cst_11 : f32 to vector<1x256xf32>
    %19 = arith.addf %17, %18 : vector<1x256xf32>
    %20 = math.rsqrt %19 : vector<1x256xf32>
    %21 = arith.mulf %3, %20 : vector<1x256xf32>
    %22 = arith.mulf %8, %21 : vector<1x256xf32>
    %23 = arith.subf %4, %22 : vector<1x256xf32>
    %24 = vector.broadcast %21 : vector<1x256xf32> to vector<8x256xf32>
    %25 = arith.mulf %2, %24 : vector<8x256xf32>
    %26 = vector.broadcast %23 : vector<1x256xf32> to vector<8x256xf32>
    %27 = arith.addf %25, %26 : vector<8x256xf32>
    %cst_12 = arith.constant 0.000000e+00 : f32
    %28 = vector.broadcast %cst_12 : f32 to vector<8x256xf32>
    %29 = arith.maximumf %27, %28 : vector<8x256xf32>
    %c0_13 = arith.constant 0 : index
    %c0_14 = arith.constant 0 : index
    %30 = vector.load %arg4[%c0_13, %c0_14] : memref<8x1152xf32, #tpu.memory_space<vmem>>, vector<8x256xf32>
    tpu.vector_store %arg4[%c0_13, %c0_14], %29 {strides = array<i32>} : memref<8x1152xf32, #tpu.memory_space<vmem>>, vector<8x256xf32>,
    %c0_15 = arith.constant 0 : index
    %c256 = arith.constant 256 : index
    %31 = vector.load %arg4[%c0_15, %c256] : memref<8x1152xf32, #tpu.memory_space<vmem>>, vector<8x896xf32>
    tpu.vector_store %arg4[%c0_15, %c256], %0 {strides = array<i32>} : memref<8x1152xf32, #tpu.memory_space<vmem>>, vector<8x896xf32>,
    return
  }
  func.func @transform_0(%arg0: i32) -> (i32, i32) {
    %c0_i32 = arith.constant 0 : i32
    %c0_i32_0 = arith.constant 0 : i32
    %c0_i32_1 = arith.constant 0 : i32
    return %c0_i32, %c0_i32_0 : i32, i32
  }
  func.func @transform_1(%arg0: i32) -> (i32, i32) {
    %c0_i32 = arith.constant 0 : i32
    %c0_i32_0 = arith.constant 0 : i32
    %c0_i32_1 = arith.constant 0 : i32
    return %c0_i32, %c0_i32_0 : i32, i32
  }
  func.func @transform_2(%arg0: i32) -> (i32, i32) {
    %c0_i32 = arith.constant 0 : i32
    %c0_i32_0 = arith.constant 0 : i32
    %c0_i32_1 = arith.constant 0 : i32
    return %c0_i32, %c0_i32_0 : i32, i32
  }
  func.func @transform_3(%arg0: i32) -> (i32, i32) {
    %c0_i32 = arith.constant 0 : i32
    %c0_i32_0 = arith.constant 0 : i32
    %c0_i32_1 = arith.constant 0 : i32
    return %c0_i32, %c0_i32_0 : i32, i32
  }
}

module attributes {stable_mosaic.version = 11 : i64} {
  func.func @linear_tanh_kernel(%arg0: i32, %arg1: memref<8x1152xf32, #tpu.memory_space<vmem>>, %arg2: memref<1152x128xf32, #tpu.memory_space<vmem>>, %arg3: memref<1x128xf32, #tpu.memory_space<vmem>>, %arg4: memref<8x128xf32, #tpu.memory_space<vmem>>) attributes {dimension_semantics = [#tpu.dimension_semantics<arbitrary>], iteration_bounds = array<i64: 1>, scalar_prefetch = 0 : i64, scratch_operands = 0 : i64, tpu.core_type = #tpu.core_type<tc>, window_params = [{pipeline_mode = #tpu.pipeline_mode<synchronous>, transform_indices = @transform_0, window_bounds = array<i64: 8, 1152>}, {pipeline_mode = #tpu.pipeline_mode<synchronous>, transform_indices = @transform_1, window_bounds = array<i64: 1152, 128>}, {pipeline_mode = #tpu.pipeline_mode<synchronous>, transform_indices = @transform_2, window_bounds = array<i64: 1, 128>}, {pipeline_mode = #tpu.pipeline_mode<synchronous>, transform_indices = @transform_3, window_bounds = array<i64: 8, 128>}]} {
    %c0 = arith.constant 0 : index
    %c0_0 = arith.constant 0 : index
    %0 = vector.load %arg1[%c0, %c0_0] : memref<8x1152xf32, #tpu.memory_space<vmem>>, vector<8x1152xf32>
    %c0_1 = arith.constant 0 : index
    %c0_2 = arith.constant 0 : index
    %1 = vector.load %arg2[%c0_1, %c0_2] : memref<1152x128xf32, #tpu.memory_space<vmem>>, vector<1152x128xf32>
    %cst = arith.constant dense<0.000000e+00> : vector<8x128xf32>
    %2 = tpu.matmul %0, %1, %cst {dimension_numbers = #tpu.dot_dimension_numbers<[1], [0], [0], [1], [0, 0, 1, 1], [], []>} : vector<8x1152xf32>, vector<1152x128xf32>, vector<8x128xf32> -> vector<8x128xf32>
    %c0_3 = arith.constant 0 : index
    %c0_4 = arith.constant 0 : index
    %3 = vector.load %arg3[%c0_3, %c0_4] : memref<1x128xf32, #tpu.memory_space<vmem>>, vector<1x128xf32>
    %4 = vector.broadcast %3 : vector<1x128xf32> to vector<8x128xf32>
    %5 = arith.addf %2, %4 : vector<8x128xf32>
    %6 = math.tanh %5 : vector<8x128xf32>
    %c0_5 = arith.constant 0 : index
    %c0_6 = arith.constant 0 : index
    %7 = vector.load %arg4[%c0_5, %c0_6] : memref<8x128xf32, #tpu.memory_space<vmem>>, vector<8x128xf32>
    tpu.vector_store %arg4[%c0_5, %c0_6], %6 {strides = array<i32>} : memref<8x128xf32, #tpu.memory_space<vmem>>, vector<8x128xf32>,
    return
  }
  func.func @transform_0(%arg0: i32) -> (i32, i32) {
    %c0_i32 = arith.constant 0 : i32
    %c0_i32_0 = arith.constant 0 : i32
    %c0_i32_1 = arith.constant 0 : i32
    return %c0_i32, %c0_i32_0 : i32, i32
  }
  func.func @transform_1(%arg0: i32) -> (i32, i32) {
    %c0_i32 = arith.constant 0 : i32
    %c0_i32_0 = arith.constant 0 : i32
    %c0_i32_1 = arith.constant 0 : i32
    return %c0_i32, %c0_i32_0 : i32, i32
  }
  func.func @transform_2(%arg0: i32) -> (i32, i32) {
    %c0_i32 = arith.constant 0 : i32
    %c0_i32_0 = arith.constant 0 : i32
    %c0_i32_1 = arith.constant 0 : i32
    return %c0_i32, %c0_i32_0 : i32, i32
  }
  func.func @transform_3(%arg0: i32) -> (i32, i32) {
    %c0_i32 = arith.constant 0 : i32
    %c0_i32_0 = arith.constant 0 : i32
    %c0_i32_1 = arith.constant 0 : i32
    return %c0_i32, %c0_i32_0 : i32, i32
  }
}

</mosaic_0001>

<bundles_post_ra>
// kernel: generator_forward.6
= control target key start
LH: loop header
LB: loop body
LE: loop exit
PB: predicated region body
PF: predicated region fallthrough
CT: control target
= control target key end

     0   :  { %8 = vsyncpa [#allocation3], 0  ;;  %s637_s0 = inlined_call_operand.vmem [shape: f32[8,384], index: 0, kind: input, shape index: {}]   ;;  %s638_s1 = inlined_call_operand.hbm [shape: f32[384,256], index: 1, kind: input, shape index: {}]   ;;  %s639_s2 = inlined_call_operand.hbm [shape: f32[2,256], index: 2, kind: input, shape index: {}]   ;;  %s640_s3 = inlined_call_operand.vmem [shape: f32[8,640], index: 3, kind: output, shape index: {}]  }
   0x1   :  { %9 = vsyncpa [#allocation5], 0  ;;  %s559_s12 = smov [#allocation2]   ;;  %s511_s16 = scalar_lea.hbm %s638_s1, 12288 }
   0x2   :  { %s17_s13 = sshll.u32 %s559_s12, 4  ;;  %p512_p0 = scmp.ne.s32.totalorder %s638_s1, %s511_s16  ;;  %s18_s13 = int_to_ptr.vmem [resolvable:$true] %s17_s13 }
   0x3   :  { %p515_p1 = scmp.lt.u32.totalorder %s511_s16, %s638_s1 }
   0x5   :  { %p517_p2 = pnand %p515_p1, %p512_p0 }
   0x7   :  { %520 = shalt.err (!%p517_p2)
}
   0x8   :  { %s521_s21 = scalar_lea.vmem %s18_s13, 12288  ;;  %p526_p4 = scmp.lt.s32.totalorder %s18_s13, %s18_s13 }
   0x9   :  { %p522_p3 = scmp.ne.s32.totalorder %s18_s13, %s521_s21  ;;  %p527_p5 = scmp.lt.s32.totalorder %s521_s21, %s521_s21 }
   0xb   :  { %p528_p6 = por %p527_p5, %p526_p4 }
   0xd   :  { %p529_p7 = pnand %p528_p6, %p522_p3 }
   0xf   :  { %532 = shalt.err (!%p529_p7)
}
  0x10   :  { %s560_s22 = smov 256   ;;  %s561_s23 = smov 16  }
  0x11   :  { %23 = dma.hbm_to_vmem [thread:$0]  %s638_s1, 12288, %s18_s13, [#allocation3], %s560_s22, %s560_s22, %s561_s23  }
  0x12   :  { %s562_s26 = smov [#allocation4]   ;;  %s533_s30 = scalar_lea.hbm %s639_s2, 64 }
  0x13   :  { %s30_s27 = sshll.u32 %s562_s26, 4  ;;  %p534_p8 = scmp.ne.s32.totalorder %s639_s2, %s533_s30  ;;  %s31_s27 = int_to_ptr.vmem [resolvable:$true] %s30_s27 }
  0x14   :  { %p537_p9 = scmp.lt.u32.totalorder %s533_s30, %s639_s2 }
  0x16   :  { %p539_p10 = pnand %p537_p9, %p534_p8 }
  0x18   :  { %542 = shalt.err (!%p539_p10)
}
  0x19   :  { %s543_s8 = scalar_lea.vmem %s31_s27, 64  ;;  %p548_p12 = scmp.lt.s32.totalorder %s31_s27, %s31_s27 }
  0x1a   :  { %p544_p11 = scmp.ne.s32.totalorder %s31_s27, %s543_s8  ;;  %p549_p13 = scmp.lt.s32.totalorder %s543_s8, %s543_s8 }
  0x1c   :  { %p550_p0 = por %p549_p13, %p548_p12 }
  0x1e   :  { %p551_p1 = pnand %p550_p0, %p544_p11 }
  0x20   :  { %554 = shalt.err (!%p551_p1)
}
  0x21   :  { %33 = dma.hbm_to_vmem [thread:$0]  %s639_s2, 64, %s31_s27, [#allocation5]  }
  0x22   :  { %555 = dma.done.wait [#allocation3], 12288  }
  0x23   :  { %556 = vsyncadd [#allocation3], 4294955008 }
  0x24   :  { %557 = dma.done.wait [#allocation5], 64  }
  0x25   :  { %558 = vsyncadd [#allocation5], 4294967232  ;;  %v563_v0 = vmov 0.0   ;;  %v44_v1 = vld [vmem:[#allocation2 + $0x8] sm:$0xff]  ;;  %v46_v2 = vld [vmem:[#allocation2 + $0x18] sm:$0xff] }
  0x26   :  { %274 = vmatprep.mubr.f32.mxu0 %v563_v0  ;;  %v43_v3 = vld [vmem:[#allocation2] sm:$0xff]  ;;  %v403_v4 = vpack.c.bf16 %v46_v2, %v44_v1  ;;  %v45_v5 = vld [vmem:[#allocation2 + $0x10] sm:$0xff]  ;;  %v48_v6 = vld [vmem:[#allocation2 + $0x28] sm:$0xff] }
  0x27   :  { %v50_v7 = vld [vmem:[#allocation2 + $0x38] sm:$0xff]  ;;  %v405_v8 = vpack.c.bf16 %v45_v5, %v43_v3  ;;  %v47_v10 = vld [vmem:[#allocation2 + $0x20] sm:$0xff]  ;;  %v49_v11 = vld [vmem:[#allocation2 + $0x30] sm:$0xff] }
  0x28   :  { %v407_v9 = vpack.c.bf16 %v50_v7, %v48_v6  ;;  %v52_v12 = vld [vmem:[#allocation2 + $0x48] sm:$0xff]  ;;  %404 = vmatprep.subr.bf16.mxu1 %v403_v4  ;;  %v54_v13 = vld [vmem:[#allocation2 + $0x58] sm:$0xff]  ;;  %v409_v14 = vpack.c.bf16 %v49_v11, %v47_v10  ;;  %v51_v16 = vld [vmem:[#allocation2 + $0x40] sm:$0xff] }
  0x29   :  { %406 = vmatpush1.bf16.msra.mxu1 %v405_v8  ;;  %v411_v15 = vpack.c.bf16 %v54_v13, %v52_v12  ;;  %v53_v17 = vld [vmem:[#allocation2 + $0x50] sm:$0xff]  ;;  %v56_v18 = vld [vmem:[#allocation2 + $0x68] sm:$0xff]  ;;  %v58_v19 = vld [vmem:[#allocation2 + $0x78] sm:$0xff] }
  0x2a   :  { %408 = vmatprep.subr.bf16.mxu1 %v407_v9  ;;  %v413_v20 = vpack.c.bf16 %v53_v17, %v51_v16  ;;  %v415_v21 = vpack.c.bf16 %v58_v19, %v56_v18  ;;  %v55_v22 = vld [vmem:[#allocation2 + $0x60] sm:$0xff]  ;;  %v57_v23 = vld [vmem:[#allocation2 + $0x70] sm:$0xff]  ;;  %v60_v24 = vld [vmem:[#allocation2 + $0x88] sm:$0xff] }
  0x2b   :  { %v62_v25 = vld [vmem:[#allocation2 + $0x98] sm:$0xff]  ;;  %v108_v26 = vld [vmem:[#allocation2 + $0x208] sm:$0xff]  ;;  %v417_v28 = vpack.c.bf16 %v57_v23, %v55_v22  ;;  %v59_v29 = vld [vmem:[#allocation2 + $0x80] sm:$0xff] }
  0x2c   :  { %v110_v27 = vld [vmem:[#allocation2 + $0x218] sm:$0xff]  ;;  %v107_v31 = vld [vmem:[#allocation2 + $0x200] sm:$0xff]  ;;  %v109_v32 = vld [vmem:[#allocation2 + $0x210] sm:$0xff]  ;;  %v419_v33 = vpack.c.bf16 %v62_v25, %v60_v24 }
  0x2d   :  { %410 = vmatpush1.bf16.msra.mxu1 %v409_v14  ;;  %v467_v30 = vpack.c.bf16 %v110_v27, %v108_v26  ;;  %v61_v34 = vld [vmem:[#allocation2 + $0x90] sm:$0xff]  ;;  %v469_v35 = vpack.c.bf16 %v109_v32, %v107_v31  ;;  %v112_v36 = vld [vmem:[#allocation2 + $0x228] sm:$0xff]  ;;  %v114_v37 = vld [vmem:[#allocation2 + $0x238] sm:$0xff] }
  0x2e   :  { %412 = vmatprep.subr.bf16.mxu1 %v411_v15  ;;  %v64_v38 = vld [vmem:[#allocation2 + $0xa8] sm:$0xff]  ;;  %v66_v39 = vld [vmem:[#allocation2 + $0xb8] sm:$0xff]  ;;  %v471_v40 = vpack.c.bf16 %v114_v37, %v112_v36  ;;  %v111_v41 = vld [vmem:[#allocation2 + $0x220] sm:$0xff]  ;;  %v421_v43 = vpack.c.bf16 %v61_v34, %v59_v29 }
  0x2f   :  { %468 = vmatprep.subr.bf16.mxu0 %v467_v30  ;;  %v113_v42 = vld [vmem:[#allocation2 + $0x230] sm:$0xff]  ;;  %v63_v44 = vld [vmem:[#allocation2 + $0xa0] sm:$0xff]  ;;  %v116_v46 = vld [vmem:[#allocation2 + $0x248] sm:$0xff]  ;;  %v423_v48 = vpack.c.bf16 %v66_v39, %v64_v38 }
  0x30   :  { %470 = vmatpush1.bf16.msra.mxu0 %v469_v35  ;;  %v473_v45 = vpack.c.bf16 %v113_v42, %v111_v41  ;;  %v118_v47 = vld [vmem:[#allocation2 + $0x258] sm:$0xff]  ;;  %v65_v49 = vld [vmem:[#allocation2 + $0xb0] sm:$0xff]  ;;  %v115_v51 = vld [vmem:[#allocation2 + $0x240] sm:$0xff] }
  0x31   :  { %414 = vmatpush1.bf16.msra.mxu1 %v413_v20  ;;  %472 = vmatprep.subr.bf16.mxu0 %v471_v40  ;;  %v475_v50 = vpack.c.bf16 %v118_v47, %v116_v46  ;;  %v117_v52 = vld [vmem:[#allocation2 + $0x250] sm:$0xff]  ;;  %v68_v53 = vld [vmem:[#allocation2 + $0xc8] sm:$0xff]  ;;  %v70_v54 = vld [vmem:[#allocation2 + $0xd8] sm:$0xff]  ;;  %v425_v58 = vpack.c.bf16 %v65_v49, %v63_v44 }
  0x32   :  { %416 = vmatprep.subr.bf16.mxu1 %v415_v21  ;;  %v120_v55 = vld [vmem:[#allocation2 + $0x268] sm:$0xff]  ;;  %v477_v56 = vpack.c.bf16 %v117_v52, %v115_v51  ;;  %v122_v57 = vld [vmem:[#allocation2 + $0x278] sm:$0xff]  ;;  %v67_v59 = vld [vmem:[#allocation2 + $0xc0] sm:$0xff]  ;;  %v427_v63 = vpack.c.bf16 %v70_v54, %v68_v53 }
  0x33   :  { %v479_v60 = vpack.c.bf16 %v122_v57, %v120_v55  ;;  %v119_v61 = vld [vmem:[#allocation2 + $0x260] sm:$0xff]  ;;  %v121_v62 = vld [vmem:[#allocation2 + $0x270] sm:$0xff]  ;;  %v124_v1 = vld [vmem:[#allocation2 + $0x288] sm:$0xff] }
  0x34   :  { %474 = vmatpush1.bf16.msra.mxu0 %v473_v45  ;;  %v69_v0 = vld [vmem:[#allocation2 + $0xd0] sm:$0xff]  ;;  %v126_v2 = vld [vmem:[#allocation2 + $0x298] sm:$0xff]  ;;  %v72_v3 = vld [vmem:[#allocation2 + $0xe8] sm:$0xff]  ;;  %v481_v5 = vpack.c.bf16 %v121_v62, %v119_v61 }
  0x35   :  { %418 = vmatpush1.bf16.msra.mxu1 %v417_v28  ;;  %476 = vmatprep.subr.bf16.mxu0 %v475_v50  ;;  %v74_v4 = vld [vmem:[#allocation2 + $0xf8] sm:$0xff]  ;;  %v429_v6 = vpack.c.bf16 %v69_v0, %v67_v59  ;;  %v71_v7 = vld [vmem:[#allocation2 + $0xe0] sm:$0xff]  ;;  %v483_v8 = vpack.c.bf16 %v126_v2, %v124_v1  ;;  %v125_v10 = vld [vmem:[#allocation2 + $0x290] sm:$0xff] }
  0x36   :  { %420 = vmatprep.subr.bf16.mxu1 %v419_v33  ;;  %v123_v9 = vld [vmem:[#allocation2 + $0x280] sm:$0xff]  ;;  %v431_v11 = vpack.c.bf16 %v74_v4, %v72_v3  ;;  %v73_v12 = vld [vmem:[#allocation2 + $0xf0] sm:$0xff]  ;;  %v128_v13 = vld [vmem:[#allocation2 + $0x2a8] sm:$0xff] }
  0x37   :  { %v130_v14 = vld [vmem:[#allocation2 + $0x2b8] sm:$0xff]  ;;  %v76_v15 = vld [vmem:[#allocation2 + $0x108] sm:$0xff]  ;;  %v485_v17 = vpack.c.bf16 %v125_v10, %v123_v9  ;;  %v433_v18 = vpack.c.bf16 %v73_v12, %v71_v7  ;;  %v75_v19 = vld [vmem:[#allocation2 + $0x100] sm:$0xff] }
  0x38   :  { %478 = vmatpush1.bf16.msra.mxu0 %v477_v56  ;;  %v78_v16 = vld [vmem:[#allocation2 + $0x118] sm:$0xff]  ;;  %v487_v20 = vpack.c.bf16 %v130_v14, %v128_v13  ;;  %v127_v21 = vld [vmem:[#allocation2 + $0x2a0] sm:$0xff]  ;;  %v129_v22 = vld [vmem:[#allocation2 + $0x2b0] sm:$0xff] }
  0x39   :  { %422 = vmatpush1.bf16.msra.mxu1 %v421_v43  ;;  %480 = vmatprep.subr.bf16.mxu0 %v479_v60  ;;  %v435_v23 = vpack.c.bf16 %v78_v16, %v76_v15  ;;  %v77_v24 = vld [vmem:[#allocation2 + $0x110] sm:$0xff]  ;;  %v132_v25 = vld [vmem:[#allocation2 + $0x2c8] sm:$0xff]  ;;  %v134_v26 = vld [vmem:[#allocation2 + $0x2d8] sm:$0xff]  ;;  %v489_v30 = vpack.c.bf16 %v129_v22, %v127_v21 }
  0x3a   :  { %424 = vmatprep.subr.bf16.mxu1 %v423_v48  ;;  %v80_v27 = vld [vmem:[#allocation2 + $0x128] sm:$0xff]  ;;  %v82_v28 = vld [vmem:[#allocation2 + $0x138] sm:$0xff]  ;;  %v79_v29 = vld [vmem:[#allocation2 + $0x120] sm:$0xff]  ;;  %v437_v33 = vpack.c.bf16 %v77_v24, %v75_v19  ;;  %v491_v34 = vpack.c.bf16 %v134_v26, %v132_v25 }
  0x3b   :  { %v131_v31 = vld [vmem:[#allocation2 + $0x2c0] sm:$0xff]  ;;  %v133_v32 = vld [vmem:[#allocation2 + $0x2d0] sm:$0xff]  ;;  %v41_v35 = vld [vmem:[%s637_s0 + $0x8] sm:$0xff]  ;;  %v439_v38 = vpack.c.bf16 %v82_v28, %v80_v27 }
  0x3c   :  { %482 = vmatpush1.bf16.msra.mxu0 %v481_v5  ;;  %v42_v36 = vld [vmem:[%s637_s0 + $0x10] sm:$0xff]  ;;  %v618_v37 = vld [vmem:[%s637_s0] sm:$0xff]  ;;  %v136_v40 = vld [vmem:[#allocation2 + $0x2e8] sm:$0xff]  ;;  %203 = vmatprep.mubr.f32.mxu1 %v41_v35  ;;  %395 = vst [vmem:[%s640_s3 + $0x18] sm:$0xff] %v41_v35  ;;  %v493_v44 = vpack.c.bf16 %v133_v32, %v131_v31 }
  0x3d   :  { %426 = vmatpush1.bf16.msra.mxu1 %v425_v58  ;;  %484 = vmatprep.subr.bf16.mxu0 %v483_v8  ;;  %v81_v39 = vld [vmem:[#allocation2 + $0x130] sm:$0xff]  ;;  %v138_v41 = vld [vmem:[#allocation2 + $0x2f8] sm:$0xff]  ;;  %396 = vst [vmem:[%s640_s3 + $0x20] sm:$0xff] %v42_v36  ;;  %394 = vst [vmem:[%s640_s3 + $0x10] sm:$0xff] %v618_v37 }
  0x3e   :  { %428 = vmatprep.subr.bf16.mxu1 %v427_v63  ;;  %v84_v42 = vld [vmem:[#allocation2 + $0x148] sm:$0xff]  ;;  %v86_v43 = vld [vmem:[#allocation2 + $0x158] sm:$0xff]  ;;  %v441_v45 = vpack.c.bf16 %v81_v39, %v79_v29  ;;  %v495_v46 = vpack.c.bf16 %v138_v41, %v136_v40  ;;  %v135_v47 = vld [vmem:[#allocation2 + $0x2e0] sm:$0xff] }
  0x3f   :  { %v137_v48 = vld [vmem:[#allocation2 + $0x2f0] sm:$0xff]  ;;  %v443_v49 = vpack.c.bf16 %v86_v43, %v84_v42  ;;  %v83_v50 = vld [vmem:[#allocation2 + $0x140] sm:$0xff]  ;;  %v88_v52 = vld [vmem:[#allocation2 + $0x168] sm:$0xff] }
  0x40   :  { %486 = vmatpush1.bf16.msra.mxu0 %v485_v17  ;;  %v85_v51 = vld [vmem:[#allocation2 + $0x150] sm:$0xff]  ;;  %v90_v53 = vld [vmem:[#allocation2 + $0x178] sm:$0xff]  ;;  %v497_v54 = vpack.c.bf16 %v137_v48, %v135_v47  ;;  %v87_v57 = vld [vmem:[#allocation2 + $0x160] sm:$0xff] }
  0x41   :  { %430 = vmatpush1.bf16.msra.mxu1 %v429_v6  ;;  %488 = vmatprep.subr.bf16.mxu0 %v487_v20  ;;  %v445_v55 = vpack.c.bf16 %v85_v51, %v83_v50  ;;  %v447_v56 = vpack.c.bf16 %v90_v53, %v88_v52  ;;  %v89_v58 = vld [vmem:[#allocation2 + $0x170] sm:$0xff]  ;;  %v92_v59 = vld [vmem:[#allocation2 + $0x188] sm:$0xff]  ;;  %v94_v60 = vld [vmem:[#allocation2 + $0x198] sm:$0xff] }
  0x42   :  { %432 = vmatprep.subr.bf16.mxu1 %v431_v11  ;;  %v449_v61 = vpack.c.bf16 %v89_v58, %v87_v57  ;;  %v451_v62 = vpack.c.bf16 %v94_v60, %v92_v59  ;;  %v91_v63 = vld [vmem:[#allocation2 + $0x180] sm:$0xff]  ;;  %v93_v0 = vld [vmem:[#allocation2 + $0x190] sm:$0xff]  ;;  %v96_v1 = vld [vmem:[#allocation2 + $0x1a8] sm:$0xff] }
  0x43   :  { %v98_v2 = vld [vmem:[#allocation2 + $0x1b8] sm:$0xff]  ;;  %v453_v3 = vpack.c.bf16 %v93_v0, %v91_v63  ;;  %v95_v5 = vld [vmem:[#allocation2 + $0x1a0] sm:$0xff]  ;;  %v97_v6 = vld [vmem:[#allocation2 + $0x1b0] sm:$0xff]  ;;  %v564_v0 = vmov 1966171168  }
  0x44   :  { %490 = vmatpush1.bf16.msra.mxu0 %v489_v30  ;;  %v455_v4 = vpack.c.bf16 %v98_v2, %v96_v1  ;;  %v100_v7 = vld [vmem:[#allocation2 + $0x1c8] sm:$0xff]  ;;  %v102_v8 = vld [vmem:[#allocation2 + $0x1d8] sm:$0xff]  ;;  %v457_v9 = vpack.c.bf16 %v97_v6, %v95_v5  ;;  %v99_v11 = vld [vmem:[#allocation2 + $0x1c0] sm:$0xff]  ;;  %v328_v1 = vunpack.c.l.s4 %v564_v0  ;;  %v330_v2 = vlaneseq }
  0x45   :  { %434 = vmatpush1.bf16.msra.mxu1 %v433_v18  ;;  %492 = vmatprep.subr.bf16.mxu0 %v491_v34  ;;  %v459_v10 = vpack.c.bf16 %v102_v8, %v100_v7  ;;  %v101_v12 = vld [vmem:[#allocation2 + $0x1d0] sm:$0xff]  ;;  %v104_v13 = vld [vmem:[#allocation2 + $0x1e8] sm:$0xff]  ;;  %v106_v14 = vld [vmem:[#allocation2 + $0x1f8] sm:$0xff] }
  0x46   :  { %436 = vmatprep.subr.bf16.mxu1 %v435_v23  ;;  %v461_v15 = vpack.c.bf16 %v101_v12, %v99_v11  ;;  %v463_v16 = vpack.c.bf16 %v106_v14, %v104_v13  ;;  %v103_v17 = vld [vmem:[#allocation2 + $0x1e0] sm:$0xff]  ;;  %v105_v18 = vld [vmem:[#allocation2 + $0x1f0] sm:$0xff] }
  0x47   :  { %v465_v19 = vpack.c.bf16 %v105_v18, %v103_v17 }
  0x48   :  { %494 = vmatpush1.bf16.msra.mxu0 %v493_v44 }
  0x49   :  { %438 = vmatpush1.bf16.msra.mxu1 %v437_v33  ;;  %496 = vmatprep.subr.bf16.mxu0 %v495_v46 }
  0x4a   :  { %440 = vmatprep.subr.bf16.mxu1 %v439_v38 }
  0x4c   :  { %498 = vmatpush1.bf16.msra.mxu0 %v497_v54 }
  0x4d   :  { %442 = vmatpush1.bf16.msra.mxu1 %v441_v45 }
  0x4e   :  { %444 = vmatprep.subr.bf16.mxu1 %v443_v49 }
  0x4f   :  { %275 = vmatmul.mubr.f32.vlgmr.msra.gmra.mrb[0].mxu0 %v42_v36 }
  0x51   :  { %446 = vmatpush1.bf16.msra.mxu1 %v445_v55 }
  0x52   :  { %448 = vmatprep.subr.bf16.mxu1 %v447_v56 }
  0x55   :  { %450 = vmatpush1.bf16.msra.mxu1 %v449_v61 }
  0x56   :  { %452 = vmatprep.subr.bf16.mxu1 %v451_v62 }
  0x59   :  { %454 = vmatpush1.bf16.msra.mxu1 %v453_v3  ;;  %v329_v3 = vunpack.c.0.s8 %v328_v1 }
  0x5a   :  { %456 = vmatprep.subr.bf16.mxu1 %v455_v4  ;;  %v331_v4 = vshrl.u32 %v330_v2, 7 }
  0x5c   :  { %v332_v6 = vsub.s32 %v329_v3, %v331_v4  ;;  %v346_v12 = vsub.s32 0, %v331_v4  ;;  %v350_v13 = vsub.s32 1, %v331_v4 }
  0x5d   :  { %458 = vmatpush1.bf16.msra.mxu1 %v457_v9 }
  0x5e   :  { %460 = vmatprep.subr.bf16.mxu1 %v459_v10  ;;  %v281_v10 = vld [vmem:[#allocation4] ss:$2 sm:$0x3] }
  0x61   :  { %462 = vmatpush1.bf16.msra.mxu1 %v461_v15 }
  0x62   :  { %464 = vmatprep.subr.bf16.mxu1 %v463_v16 }
  0x65   :  { %466 = vmatpush1.bf16.msra.mxu1 %v465_v19 }
  0x68   :  { %204 = vmatmul.mubr.f32.vlgmr.msra.gmra.mrb[0].mxu1 %v618_v37 }
 0x122   :  { %v276_v20 = vpop.f32.mrb[0].mxu0 }
 0x123   :  { %v278_v21 = vpop.f32.mrb[1].mxu0 }
 0x13b   :  { %v205_v22 = vpop.f32.mrb[0].mxu1 }
 0x13c   :  { %v277_v23 = vadd.f32 %v276_v20, %v205_v22  ;;  %v207_v24 = vpop.f32.mrb[1].mxu1 }
 0x13d   :  { %v279_v25 = vadd.f32 %v278_v21, %v207_v24  ;;  %v283_v24 = vld [vmem:[#allocation4 + $0x1] ss:$2 sm:$0x3] }
 0x13e   :  { %v284_v26 = vrot.slane %v277_v23, 4  ;;  %v298_v27 = vmul.f32 %v277_v23, %v277_v23 }
 0x13f   :  { %v290_v28 = vrot.slane %v279_v25, 4  ;;  %v299_v29 = vmul.f32 %v279_v25, %v279_v25 }
 0x140   :  { %v285_v30 = vadd.f32 %v284_v26, %v277_v23  ;;  %v300_v31 = vrot.slane %v298_v27, 4 }
 0x141   :  { %v291_v32 = vadd.f32 %v290_v28, %v279_v25  ;;  %v306_v33 = vrot.slane %v299_v29, 4 }
 0x142   :  { %v286_v34 = vrot.slane %v285_v30, 2  ;;  %v301_v35 = vadd.f32 %v300_v31, %v298_v27 }
 0x143   :  { %v292_v36 = vrot.slane %v291_v32, 2  ;;  %v307_v38 = vadd.f32 %v306_v33, %v299_v29 }
 0x144   :  { %v287_v39 = vadd.f32 %v286_v34, %v285_v30  ;;  %v302_v37 = vrot.slane %v301_v35, 2 }
 0x145   :  { %v293_v40 = vadd.f32 %v292_v36, %v291_v32  ;;  %v308_v41 = vrot.slane %v307_v38, 2 }
 0x146   :  { %v288_v42 = vrot.slane %v287_v39, 1  ;;  %v303_v43 = vadd.f32 %v302_v37, %v301_v35 }
 0x147   :  { %v294_v44 = vrot.slane %v293_v40, 1  ;;  %v309_v45 = vadd.f32 %v308_v41, %v307_v38 }
 0x148   :  { %v289_v46 = vadd.f32 %v288_v42, %v287_v39  ;;  %v304_v47 = vrot.slane %v303_v43, 1 }
 0x149   :  { %v295_v48 = vadd.f32 %v294_v44, %v293_v40  ;;  %v310_v49 = vrot.slane %v309_v45, 1 }
 0x14a   :  { %v296_v50 = vmul.f32 0.125, %v289_v46  ;;  %v305_v51 = vadd.f32 %v304_v47, %v303_v43 }
 0x14b   :  { %v297_v52 = vmul.f32 0.125, %v295_v48  ;;  %v311_v53 = vadd.f32 %v310_v49, %v309_v45 }
 0x14c   :  { %v312_v54 = vmul.f32 0.125, %v305_v51  ;;  %v314_v55 = vmul.f32 %v296_v50, %v296_v50 }
 0x14d   :  { %v313_v56 = vmul.f32 0.125, %v311_v53  ;;  %v315_v57 = vmul.f32 %v297_v52, %v297_v52 }
 0x14e   :  { %v316_v58 = vsub.f32 %v312_v54, %v314_v55 }
 0x14f   :  { %v317_v59 = vsub.f32 %v313_v56, %v315_v57 }
 0x150   :  { %v318_v60 = vmax.f32 %v316_v58, 0.0 }
 0x151   :  { %v319_v61 = vmax.f32 %v317_v59, 0.0 }
 0x152   :  { %v320_v62 = vadd.f32 1e-05, %v318_v60 }
 0x153   :  { %v321_v63 = vadd.f32 1e-05, %v319_v61 }
 0x154   :  { %507 = vrsqrt.f32 %v320_v62 }
 0x155   :  { %509 = vrsqrt.f32 %v321_v63 }
 0x15e   :  { %v508_v5 = vpop.eup %507 }
 0x15f   :  { %v510_v7 = vpop.eup %509 }
 0x160   :  { %v326_v8 = vcombine.low %v508_v5, %v510_v7 }
 0x162   :  { %v333_v9 = vrot.slane %v326_v8, %v332_v6 }
 0x164   :  { %v340_v11 = vrot.slane %v333_v9, %v332_v6 }
 0x166   :  { %v342_v14 = vmul.f32 %v340_v11, %v281_v10 }
 0x168   :  { %v347_v15 = vrot.slane %v342_v14, %v346_v12  ;;  %v351_v16 = vrot.slane %v342_v14, %v350_v13 }
 0x16a   :  { %v354_v17 = vmul.f32 %v347_v15, %v296_v50  ;;  %v355_v18 = vmul.f32 %v351_v16, %v297_v52  ;;  %v375_v19 = vmul.f32 %v347_v15, %v277_v23  ;;  %v376_v20 = vmul.f32 %v351_v16, %v279_v25 }
 0x16c   :  { %v358_v21 = vcombine.low %v354_v17, %v355_v18 }
 0x16e   :  { %v365_v22 = vrot.slane %v358_v21, %v332_v6 }
 0x170   :  { %v372_v26 = vrot.slane %v365_v22, %v332_v6 }
 0x172   :  { %v374_v27 = vsub.f32 %v283_v24, %v372_v26 }
 0x174   :  { %v381_v28 = vrot.slane %v374_v27, %v346_v12  ;;  %v385_v29 = vrot.slane %v374_v27, %v350_v13 }
 0x176   :  { %v388_v30 = vadd.f32 %v381_v28, %v375_v19  ;;  %v389_v31 = vadd.f32 %v385_v29, %v376_v20 }
 0x178   :  { %v390_v32 = vmax.f32 %v388_v30, 0.0  ;;  %v391_v33 = vmax.f32 %v389_v31, 0.0 }
 0x17a   :  { %392 = vst [vmem:[%s640_s3] sm:$0xff] %v390_v32  ;;  %393 = vst [vmem:[%s640_s3 + $0x8] sm:$0xff] %v391_v33 }
 0x17b   :  { %401 = vsyncpa [#allocation3], 1 }
 0x17c   :  { %402 = vsyncpa [#allocation5], 1 }

// kernel: generator_forward.5
= control target key start
LH: loop header
LB: loop body
LE: loop exit
PB: predicated region body
PF: predicated region fallthrough
CT: control target
= control target key end

     0   :  { %8 = vsyncpa [#allocation3], 0  ;;  %s460_s0 = inlined_call_operand.hbm [shape: f32[8,128], index: 0, kind: input, shape index: {}]   ;;  %s461_s1 = inlined_call_operand.hbm [shape: f32[128,256], index: 1, kind: input, shape index: {}]   ;;  %s462_s2 = inlined_call_operand.hbm [shape: f32[2,256], index: 2, kind: input, shape index: {}]   ;;  %s463_s3 = inlined_call_operand.vmem [shape: f32[8,384], index: 3, kind: output, shape index: {}]  }
   0x1   :  { %9 = vsyncpa [#allocation5], 0  ;;  %s388_s12 = smov [#allocation4]   ;;  %s318_s16 = scalar_lea.hbm %s461_s1, 4096 }
   0x2   :  { %s25_s13 = sshll.u32 %s388_s12, 4  ;;  %p319_p0 = scmp.ne.s32.totalorder %s461_s1, %s318_s16  ;;  %s26_s13 = int_to_ptr.vmem [resolvable:$true] %s25_s13 }
   0x3   :  { %p322_p1 = scmp.lt.u32.totalorder %s318_s16, %s461_s1 }
   0x5   :  { %p324_p2 = pnand %p322_p1, %p319_p0 }
   0x7   :  { %327 = shalt.err (!%p324_p2)
}
   0x8   :  { %s328_s21 = scalar_lea.vmem %s26_s13, 4096  ;;  %p333_p4 = scmp.lt.s32.totalorder %s26_s13, %s26_s13 }
   0x9   :  { %p329_p3 = scmp.ne.s32.totalorder %s26_s13, %s328_s21  ;;  %p334_p5 = scmp.lt.s32.totalorder %s328_s21, %s328_s21 }
   0xb   :  { %p335_p6 = por %p334_p5, %p333_p4 }
   0xd   :  { %p336_p7 = pnand %p335_p6, %p329_p3 }
   0xf   :  { %339 = shalt.err (!%p336_p7)
}
  0x10   :  { %s389_s22 = smov 256   ;;  %s390_s23 = smov 16  }
  0x11   :  { %31 = dma.hbm_to_vmem [thread:$0]  %s461_s1, 4096, %s26_s13, [#allocation5], %s389_s22, %s389_s22, %s390_s23  }
  0x12   :  { %s391_s26 = smov [#allocation2]   ;;  %s392_s28 = smov [#allocation6]  }
  0x13   :  { %s16_s27 = sshll.u32 %s391_s26, 4  ;;  %s38_s29 = sshll.u32 %s392_s28, 4  ;;  %s17_s27 = int_to_ptr.vmem [resolvable:$true] %s16_s27  ;;  %s39_s29 = int_to_ptr.vmem [resolvable:$true] %s38_s29 }
  0x14   :  { %s340_s5 = scalar_lea.hbm %s460_s0, 128 }
  0x15   :  { %p341_p8 = scmp.ne.s32.totalorder %s460_s0, %s340_s5  ;;  %p344_p9 = scmp.lt.u32.totalorder %s340_s5, %s460_s0 }
  0x17   :  { %p346_p10 = pnand %p344_p9, %p341_p8 }
  0x19   :  { %349 = shalt.err (!%p346_p10)
}
  0x1a   :  { %s350_s1 = scalar_lea.vmem %s17_s27, 128  ;;  %p355_p12 = scmp.lt.s32.totalorder %s17_s27, %s17_s27 }
  0x1b   :  { %p351_p11 = scmp.ne.s32.totalorder %s17_s27, %s350_s1  ;;  %p356_p13 = scmp.lt.s32.totalorder %s350_s1, %s350_s1 }
  0x1d   :  { %p357_p0 = por %p356_p13, %p355_p12 }
  0x1f   :  { %p358_p1 = pnand %p357_p0, %p351_p11 }
  0x21   :  { %361 = shalt.err (!%p358_p1)
}
  0x22   :  { %19 = dma.hbm_to_vmem [thread:$0]  %s460_s0, 128, %s17_s27, [#allocation3]  }
  0x23   :  { %s362_s14 = scalar_lea.hbm %s462_s2, 64 }
  0x24   :  { %p363_p2 = scmp.ne.s32.totalorder %s462_s2, %s362_s14  ;;  %p366_p3 = scmp.lt.u32.totalorder %s362_s14, %s462_s2 }
  0x26   :  { %p368_p4 = pnand %p366_p3, %p363_p2 }
  0x28   :  { %371 = shalt.err (!%p368_p4)
}
  0x29   :  { %s372_s19 = scalar_lea.vmem %s39_s29, 64  ;;  %p377_p6 = scmp.lt.s32.totalorder %s39_s29, %s39_s29 }
  0x2a   :  { %p373_p5 = scmp.ne.s32.totalorder %s39_s29, %s372_s19  ;;  %p378_p7 = scmp.lt.s32.totalorder %s372_s19, %s372_s19 }
  0x2c   :  { %p379_p8 = por %p378_p7, %p377_p6 }
  0x2e   :  { %p380_p9 = pnand %p379_p8, %p373_p5 }
  0x30   :  { %383 = shalt.err (!%p380_p9)
}
  0x31   :  { %41 = dma.hbm_to_vmem [thread:$0]  %s462_s2, 64, %s39_s29, [#allocation5]  }
  0x32   :  { %384 = dma.done.wait [#allocation3], 128  }
  0x33   :  { %385 = vsyncadd [#allocation3], 4294967168 }
  0x34   :  { %386 = dma.done.wait [#allocation5], 4160  }
  0x35   :  { %387 = vsyncadd [#allocation5], 4294963136  ;;  %v393_v0 = vmov 0.0   ;;  %v53_v1 = vld [vmem:[#allocation4 + $0x8] sm:$0xff]  ;;  %v55_v2 = vld [vmem:[#allocation4 + $0x18] sm:$0xff] }
  0x36   :  { %148 = vmatprep.mubr.f32.mxu0 %v393_v0  ;;  %v52_v3 = vld [vmem:[#allocation4] sm:$0xff]  ;;  %v275_v4 = vpack.c.bf16 %v55_v2, %v53_v1  ;;  %v54_v5 = vld [vmem:[#allocation4 + $0x10] sm:$0xff]  ;;  %v57_v6 = vld [vmem:[#allocation4 + $0x28] sm:$0xff] }
  0x37   :  { %v59_v7 = vld [vmem:[#allocation4 + $0x38] sm:$0xff]  ;;  %v277_v8 = vpack.c.bf16 %v54_v5, %v52_v3  ;;  %v56_v10 = vld [vmem:[#allocation4 + $0x20] sm:$0xff]  ;;  %v58_v11 = vld [vmem:[#allocation4 + $0x30] sm:$0xff] }
  0x38   :  { %v279_v9 = vpack.c.bf16 %v59_v7, %v57_v6  ;;  %v61_v12 = vld [vmem:[#allocation4 + $0x48] sm:$0xff]  ;;  %276 = vmatprep.subr.bf16.mxu0 %v275_v4  ;;  %v63_v13 = vld [vmem:[#allocation4 + $0x58] sm:$0xff]  ;;  %v281_v14 = vpack.c.bf16 %v58_v11, %v56_v10  ;;  %v60_v16 = vld [vmem:[#allocation4 + $0x40] sm:$0xff] }
  0x39   :  { %278 = vmatpush1.bf16.msra.mxu0 %v277_v8  ;;  %v283_v15 = vpack.c.bf16 %v63_v13, %v61_v12  ;;  %v62_v17 = vld [vmem:[#allocation4 + $0x50] sm:$0xff]  ;;  %v65_v18 = vld [vmem:[#allocation4 + $0x68] sm:$0xff]  ;;  %v67_v19 = vld [vmem:[#allocation4 + $0x78] sm:$0xff] }
  0x3a   :  { %280 = vmatprep.subr.bf16.mxu0 %v279_v9  ;;  %v285_v20 = vpack.c.bf16 %v62_v17, %v60_v16  ;;  %v287_v21 = vpack.c.bf16 %v67_v19, %v65_v18  ;;  %v64_v22 = vld [vmem:[#allocation4 + $0x60] sm:$0xff]  ;;  %v66_v23 = vld [vmem:[#allocation4 + $0x70] sm:$0xff]  ;;  %v69_v24 = vld [vmem:[#allocation4 + $0x88] sm:$0xff] }
  0x3b   :  { %v71_v25 = vld [vmem:[#allocation4 + $0x98] sm:$0xff]  ;;  %v289_v27 = vpack.c.bf16 %v66_v23, %v64_v22  ;;  %v68_v29 = vld [vmem:[#allocation4 + $0x80] sm:$0xff]  ;;  %v70_v30 = vld [vmem:[#allocation4 + $0x90] sm:$0xff] }
  0x3c   :  { %v51_v26 = vld [vmem:[#allocation2] sm:$0xff]  ;;  %v291_v28 = vpack.c.bf16 %v71_v25, %v69_v24  ;;  %v73_v31 = vld [vmem:[#allocation4 + $0xa8] sm:$0xff]  ;;  %v293_v33 = vpack.c.bf16 %v70_v30, %v68_v29  ;;  %v72_v35 = vld [vmem:[#allocation4 + $0xa0] sm:$0xff] }
  0x3d   :  { %282 = vmatpush1.bf16.msra.mxu0 %v281_v14  ;;  %268 = vst [vmem:[%s463_s3 + $0x10] sm:$0xff] %v51_v26  ;;  %v75_v32 = vld [vmem:[#allocation4 + $0xb8] sm:$0xff]  ;;  %v74_v36 = vld [vmem:[#allocation4 + $0xb0] sm:$0xff]  ;;  %v77_v37 = vld [vmem:[#allocation4 + $0xc8] sm:$0xff] }
  0x3e   :  { %284 = vmatprep.subr.bf16.mxu0 %v283_v15  ;;  %v295_v34 = vpack.c.bf16 %v75_v32, %v73_v31  ;;  %v79_v38 = vld [vmem:[#allocation4 + $0xd8] sm:$0xff]  ;;  %v297_v39 = vpack.c.bf16 %v74_v36, %v72_v35  ;;  %v76_v41 = vld [vmem:[#allocation4 + $0xc0] sm:$0xff]  ;;  %v78_v42 = vld [vmem:[#allocation4 + $0xd0] sm:$0xff] }
  0x3f   :  { %v299_v40 = vpack.c.bf16 %v79_v38, %v77_v37  ;;  %v81_v43 = vld [vmem:[#allocation4 + $0xe8] sm:$0xff]  ;;  %v83_v44 = vld [vmem:[#allocation4 + $0xf8] sm:$0xff]  ;;  %v301_v45 = vpack.c.bf16 %v78_v42, %v76_v41  ;;  %v80_v47 = vld [vmem:[#allocation4 + $0xe0] sm:$0xff] }
  0x40   :  { %v303_v46 = vpack.c.bf16 %v83_v44, %v81_v43  ;;  %v82_v48 = vld [vmem:[#allocation4 + $0xf0] sm:$0xff]  ;;  %v155_v36 = vld [vmem:[#allocation6] ss:$2 sm:$0x3] }
  0x41   :  { %286 = vmatpush1.bf16.msra.mxu0 %v285_v20  ;;  %v305_v49 = vpack.c.bf16 %v82_v48, %v80_v47 }
  0x42   :  { %288 = vmatprep.subr.bf16.mxu0 %v287_v21 }
  0x45   :  { %290 = vmatpush1.bf16.msra.mxu0 %v289_v27 }
  0x46   :  { %292 = vmatprep.subr.bf16.mxu0 %v291_v28  ;;  %v204_v28 = vlaneseq }
  0x48   :  { %v205_v30 = vshrl.u32 %v204_v28, 7 }
  0x49   :  { %294 = vmatpush1.bf16.msra.mxu0 %v293_v33 }
  0x4a   :  { %296 = vmatprep.subr.bf16.mxu0 %v295_v34  ;;  %v220_v38 = vsub.s32 0, %v205_v30 }
  0x4d   :  { %298 = vmatpush1.bf16.msra.mxu0 %v297_v39  ;;  %v224_v39 = vsub.s32 1, %v205_v30 }
  0x4e   :  { %300 = vmatprep.subr.bf16.mxu0 %v299_v40 }
  0x51   :  { %302 = vmatpush1.bf16.msra.mxu0 %v301_v45 }
  0x52   :  { %304 = vmatprep.subr.bf16.mxu0 %v303_v46 }
  0x55   :  { %306 = vmatpush1.bf16.msra.mxu0 %v305_v49  ;;  %v157_v49 = vld [vmem:[#allocation6 + $0x1] ss:$2 sm:$0x3] }
  0x58   :  { %149 = vmatmul.mubr.f32.vlgmr.msra.gmra.mrb[0].mxu0 %v51_v26  ;;  %v394_v26 = vmov 1966171168  }
  0x59   :  { %v202_v27 = vunpack.c.l.s4 %v394_v26 }
  0x5b   :  { %v203_v29 = vunpack.c.0.s8 %v202_v27 }
  0x5d   :  { %v206_v32 = vsub.s32 %v203_v29, %v205_v30 }
 0x12b   :  { %v150_v50 = vpop.f32.mrb[0].mxu0 }
 0x12c   :  { %v158_v51 = vrot.slane %v150_v50, 4  ;;  %v172_v52 = vmul.f32 %v150_v50, %v150_v50  ;;  %v152_v53 = vpop.f32.mrb[1].mxu0 }
 0x12d   :  { %v164_v54 = vrot.slane %v152_v53, 4  ;;  %v173_v55 = vmul.f32 %v152_v53, %v152_v53 }
 0x12e   :  { %v159_v56 = vadd.f32 %v158_v51, %v150_v50  ;;  %v174_v57 = vrot.slane %v172_v52, 4 }
 0x12f   :  { %v165_v58 = vadd.f32 %v164_v54, %v152_v53  ;;  %v180_v59 = vrot.slane %v173_v55, 4 }
 0x130   :  { %v160_v60 = vrot.slane %v159_v56, 2  ;;  %v175_v61 = vadd.f32 %v174_v57, %v172_v52 }
 0x131   :  { %v166_v62 = vrot.slane %v165_v58, 2  ;;  %v181_v63 = vadd.f32 %v180_v59, %v173_v55 }
 0x132   :  { %v161_v0 = vadd.f32 %v160_v60, %v159_v56  ;;  %v176_v1 = vrot.slane %v175_v61, 2 }
 0x133   :  { %v167_v2 = vadd.f32 %v166_v62, %v165_v58  ;;  %v182_v3 = vrot.slane %v181_v63, 2 }
 0x134   :  { %v162_v4 = vrot.slane %v161_v0, 1  ;;  %v177_v5 = vadd.f32 %v176_v1, %v175_v61 }
 0x135   :  { %v168_v6 = vrot.slane %v167_v2, 1  ;;  %v183_v7 = vadd.f32 %v182_v3, %v181_v63 }
 0x136   :  { %v163_v8 = vadd.f32 %v162_v4, %v161_v0  ;;  %v178_v9 = vrot.slane %v177_v5, 1 }
 0x137   :  { %v169_v10 = vadd.f32 %v168_v6, %v167_v2  ;;  %v184_v11 = vrot.slane %v183_v7, 1 }
 0x138   :  { %v170_v12 = vmul.f32 0.125, %v163_v8  ;;  %v179_v13 = vadd.f32 %v178_v9, %v177_v5 }
 0x139   :  { %v171_v14 = vmul.f32 0.125, %v169_v10  ;;  %v185_v15 = vadd.f32 %v184_v11, %v183_v7 }
 0x13a   :  { %v186_v16 = vmul.f32 0.125, %v179_v13  ;;  %v188_v17 = vmul.f32 %v170_v12, %v170_v12 }
 0x13b   :  { %v187_v18 = vmul.f32 0.125, %v185_v15  ;;  %v189_v19 = vmul.f32 %v171_v14, %v171_v14 }
 0x13c   :  { %v190_v20 = vsub.f32 %v186_v16, %v188_v17 }
 0x13d   :  { %v191_v21 = vsub.f32 %v187_v18, %v189_v19 }
 0x13e   :  { %v192_v22 = vmax.f32 %v190_v20, 0.0 }
 0x13f   :  { %v193_v23 = vmax.f32 %v191_v21, 0.0 }
 0x140   :  { %v194_v24 = vadd.f32 1e-05, %v192_v22 }
 0x141   :  { %v195_v25 = vadd.f32 1e-05, %v193_v23 }
 0x142   :  { %314 = vrsqrt.f32 %v194_v24 }
 0x143   :  { %316 = vrsqrt.f32 %v195_v25 }
 0x14c   :  { %v315_v31 = vpop.eup %314 }
 0x14d   :  { %v317_v33 = vpop.eup %316 }
 0x14e   :  { %v200_v34 = vcombine.low %v315_v31, %v317_v33 }
 0x150   :  { %v207_v35 = vrot.slane %v200_v34, %v206_v32 }
 0x152   :  { %v214_v37 = vrot.slane %v207_v35, %v206_v32 }
 0x154   :  { %v216_v40 = vmul.f32 %v214_v37, %v155_v36 }
 0x156   :  { %v221_v41 = vrot.slane %v216_v40, %v220_v38  ;;  %v225_v42 = vrot.slane %v216_v40, %v224_v39 }
 0x158   :  { %v228_v43 = vmul.f32 %v221_v41, %v170_v12  ;;  %v229_v44 = vmul.f32 %v225_v42, %v171_v14  ;;  %v249_v45 = vmul.f32 %v221_v41, %v150_v50  ;;  %v250_v46 = vmul.f32 %v225_v42, %v152_v53 }
 0x15a   :  { %v232_v47 = vcombine.low %v228_v43, %v229_v44 }
 0x15c   :  { %v239_v48 = vrot.slane %v232_v47, %v206_v32 }
 0x15e   :  { %v246_v51 = vrot.slane %v239_v48, %v206_v32 }
 0x160   :  { %v248_v52 = vsub.f32 %v157_v49, %v246_v51 }
 0x162   :  { %v255_v54 = vrot.slane %v248_v52, %v220_v38  ;;  %v259_v55 = vrot.slane %v248_v52, %v224_v39 }
 0x164   :  { %v262_v56 = vadd.f32 %v255_v54, %v249_v45  ;;  %v263_v57 = vadd.f32 %v259_v55, %v250_v46 }
 0x166   :  { %v264_v58 = vmax.f32 %v262_v56, 0.0  ;;  %v265_v59 = vmax.f32 %v263_v57, 0.0 }
 0x168   :  { %266 = vst [vmem:[%s463_s3] sm:$0xff] %v264_v58  ;;  %267 = vst [vmem:[%s463_s3 + $0x8] sm:$0xff] %v265_v59 }
 0x169   :  { %273 = vsyncpa [#allocation3], 1 }
 0x16a   :  { %274 = vsyncpa [#allocation5], 1 }

// kernel: generator_forward.7
= control target key start
LH: loop header
LB: loop body
LE: loop exit
PB: predicated region body
PF: predicated region fallthrough
CT: control target
= control target key end

     0   :  { %8 = vsyncpa [#allocation3], 0  ;;  %s862_s0 = inlined_call_operand.vmem [shape: f32[8,640], index: 0, kind: input, shape index: {}]   ;;  %s863_s1 = inlined_call_operand.hbm [shape: f32[640,256], index: 1, kind: input, shape index: {}]   ;;  %s864_s2 = inlined_call_operand.hbm [shape: f32[2,256], index: 2, kind: input, shape index: {}]   ;;  %s865_s3 = inlined_call_operand.vmem [shape: f32[8,896], index: 3, kind: output, shape index: {}]  }
   0x1   :  { %9 = vsyncpa [#allocation5], 0  ;;  %s764_s12 = smov [#allocation2]   ;;  %s716_s16 = scalar_lea.hbm %s863_s1, 20480 }
   0x2   :  { %s17_s13 = sshll.u32 %s764_s12, 4  ;;  %p717_p0 = scmp.ne.s32.totalorder %s863_s1, %s716_s16  ;;  %s18_s13 = int_to_ptr.vmem [resolvable:$true] %s17_s13 }
   0x3   :  { %p720_p1 = scmp.lt.u32.totalorder %s716_s16, %s863_s1 }
   0x5   :  { %p722_p2 = pnand %p720_p1, %p717_p0 }
   0x7   :  { %725 = shalt.err (!%p722_p2)
}
   0x8   :  { %s726_s21 = scalar_lea.vmem %s18_s13, 20480  ;;  %p731_p4 = scmp.lt.s32.totalorder %s18_s13, %s18_s13 }
   0x9   :  { %p727_p3 = scmp.ne.s32.totalorder %s18_s13, %s726_s21  ;;  %p732_p5 = scmp.lt.s32.totalorder %s726_s21, %s726_s21 }
   0xb   :  { %p733_p6 = por %p732_p5, %p731_p4 }
   0xd   :  { %p734_p7 = pnand %p733_p6, %p727_p3 }
   0xf   :  { %737 = shalt.err (!%p734_p7)
}
  0x10   :  { %s765_s22 = smov 256   ;;  %s766_s23 = smov 16  }
  0x11   :  { %23 = dma.hbm_to_vmem [thread:$0]  %s863_s1, 20480, %s18_s13, [#allocation3], %s765_s22, %s765_s22, %s766_s23  }
  0x12   :  { %s767_s26 = smov [#allocation4]   ;;  %s738_s30 = scalar_lea.hbm %s864_s2, 64 }
  0x13   :  { %s30_s27 = sshll.u32 %s767_s26, 4  ;;  %p739_p8 = scmp.ne.s32.totalorder %s864_s2, %s738_s30  ;;  %s31_s27 = int_to_ptr.vmem [resolvable:$true] %s30_s27 }
  0x14   :  { %p742_p9 = scmp.lt.u32.totalorder %s738_s30, %s864_s2 }
  0x16   :  { %p744_p10 = pnand %p742_p9, %p739_p8 }
  0x18   :  { %747 = shalt.err (!%p744_p10)
}
  0x19   :  { %s748_s8 = scalar_lea.vmem %s31_s27, 64  ;;  %p753_p12 = scmp.lt.s32.totalorder %s31_s27, %s31_s27 }
  0x1a   :  { %p749_p11 = scmp.ne.s32.totalorder %s31_s27, %s748_s8  ;;  %p754_p13 = scmp.lt.s32.totalorder %s748_s8, %s748_s8 }
  0x1c   :  { %p755_p0 = por %p754_p13, %p753_p12 }
  0x1e   :  { %p756_p1 = pnand %p755_p0, %p749_p11 }
  0x20   :  { %759 = shalt.err (!%p756_p1)
}
  0x21   :  { %33 = dma.hbm_to_vmem [thread:$0]  %s864_s2, 64, %s31_s27, [#allocation5]  }
  0x22   :  { %760 = dma.done.wait [#allocation3], 20480  }
  0x23   :  { %761 = vsyncadd [#allocation3], 4294946816 }
  0x24   :  { %762 = dma.done.wait [#allocation5], 64  }
  0x25   :  { %763 = vsyncadd [#allocation5], 4294967232  ;;  %v110_v0 = vld [vmem:[#allocation2 + $0x208] sm:$0xff]  ;;  %v112_v1 = vld [vmem:[#allocation2 + $0x218] sm:$0xff] }
  0x26   :  { %v109_v2 = vld [vmem:[#allocation2 + $0x200] sm:$0xff]  ;;  %v606_v3 = vpack.c.bf16 %v112_v1, %v110_v0  ;;  %v111_v4 = vld [vmem:[#allocation2 + $0x210] sm:$0xff]  ;;  %v114_v5 = vld [vmem:[#allocation2 + $0x228] sm:$0xff] }
  0x27   :  { %v116_v6 = vld [vmem:[#allocation2 + $0x238] sm:$0xff]  ;;  %v608_v7 = vpack.c.bf16 %v111_v4, %v109_v2  ;;  %v113_v9 = vld [vmem:[#allocation2 + $0x220] sm:$0xff]  ;;  %v115_v10 = vld [vmem:[#allocation2 + $0x230] sm:$0xff] }
  0x28   :  { %v610_v8 = vpack.c.bf16 %v116_v6, %v114_v5  ;;  %v118_v11 = vld [vmem:[#allocation2 + $0x248] sm:$0xff]  ;;  %607 = vmatprep.subr.bf16.mxu0 %v606_v3  ;;  %v120_v12 = vld [vmem:[#allocation2 + $0x258] sm:$0xff]  ;;  %v612_v13 = vpack.c.bf16 %v115_v10, %v113_v9  ;;  %v117_v15 = vld [vmem:[#allocation2 + $0x240] sm:$0xff] }
  0x29   :  { %609 = vmatpush1.bf16.msra.mxu0 %v608_v7  ;;  %v614_v14 = vpack.c.bf16 %v120_v12, %v118_v11  ;;  %v119_v16 = vld [vmem:[#allocation2 + $0x250] sm:$0xff]  ;;  %v122_v17 = vld [vmem:[#allocation2 + $0x268] sm:$0xff]  ;;  %v124_v18 = vld [vmem:[#allocation2 + $0x278] sm:$0xff] }
  0x2a   :  { %611 = vmatprep.subr.bf16.mxu0 %v610_v8  ;;  %v616_v19 = vpack.c.bf16 %v119_v16, %v117_v15  ;;  %v618_v20 = vpack.c.bf16 %v124_v18, %v122_v17  ;;  %v121_v21 = vld [vmem:[#allocation2 + $0x260] sm:$0xff]  ;;  %v123_v22 = vld [vmem:[#allocation2 + $0x270] sm:$0xff]  ;;  %v126_v23 = vld [vmem:[#allocation2 + $0x288] sm:$0xff] }
  0x2b   :  { %v128_v24 = vld [vmem:[#allocation2 + $0x298] sm:$0xff]  ;;  %v46_v25 = vld [vmem:[#allocation2 + $0x8] sm:$0xff]  ;;  %v45_v27 = vld [vmem:[#allocation2] sm:$0xff]  ;;  %v620_v29 = vpack.c.bf16 %v123_v22, %v121_v21 }
  0x2c   :  { %v48_v26 = vld [vmem:[#allocation2 + $0x18] sm:$0xff]  ;;  %v47_v28 = vld [vmem:[#allocation2 + $0x10] sm:$0xff]  ;;  %v125_v30 = vld [vmem:[#allocation2 + $0x280] sm:$0xff]  ;;  %v622_v34 = vpack.c.bf16 %v128_v24, %v126_v23 }
  0x2d   :  { %613 = vmatpush1.bf16.msra.mxu0 %v612_v13  ;;  %v127_v31 = vld [vmem:[#allocation2 + $0x290] sm:$0xff]  ;;  %v542_v32 = vpack.c.bf16 %v48_v26, %v46_v25  ;;  %v544_v33 = vpack.c.bf16 %v47_v28, %v45_v27  ;;  %v130_v35 = vld [vmem:[#allocation2 + $0x2a8] sm:$0xff]  ;;  %v52_v37 = vld [vmem:[#allocation2 + $0x38] sm:$0xff] }
  0x2e   :  { %615 = vmatprep.subr.bf16.mxu0 %v614_v14  ;;  %v50_v36 = vld [vmem:[#allocation2 + $0x28] sm:$0xff]  ;;  %v132_v38 = vld [vmem:[#allocation2 + $0x2b8] sm:$0xff]  ;;  %v49_v40 = vld [vmem:[#allocation2 + $0x20] sm:$0xff]  ;;  %v624_v43 = vpack.c.bf16 %v127_v31, %v125_v30 }
  0x2f   :  { %543 = vmatprep.subr.bf16.mxu1 %v542_v32  ;;  %v546_v39 = vpack.c.bf16 %v52_v37, %v50_v36  ;;  %v51_v41 = vld [vmem:[#allocation2 + $0x30] sm:$0xff]  ;;  %v54_v44 = vld [vmem:[#allocation2 + $0x48] sm:$0xff]  ;;  %v56_v45 = vld [vmem:[#allocation2 + $0x58] sm:$0xff]  ;;  %v626_v47 = vpack.c.bf16 %v132_v38, %v130_v35 }
  0x30   :  { %545 = vmatpush1.bf16.msra.mxu1 %v544_v33  ;;  %v548_v42 = vpack.c.bf16 %v51_v41, %v49_v40  ;;  %v53_v46 = vld [vmem:[#allocation2 + $0x40] sm:$0xff]  ;;  %v131_v49 = vld [vmem:[#allocation2 + $0x2b0] sm:$0xff]  ;;  %v550_v50 = vpack.c.bf16 %v56_v45, %v54_v44  ;;  %v134_v52 = vld [vmem:[#allocation2 + $0x2c8] sm:$0xff] }
  0x31   :  { %617 = vmatpush1.bf16.msra.mxu0 %v616_v19  ;;  %547 = vmatprep.subr.bf16.mxu1 %v546_v39  ;;  %v129_v48 = vld [vmem:[#allocation2 + $0x2a0] sm:$0xff]  ;;  %v55_v51 = vld [vmem:[#allocation2 + $0x50] sm:$0xff]  ;;  %v136_v53 = vld [vmem:[#allocation2 + $0x2d8] sm:$0xff] }
  0x32   :  { %619 = vmatprep.subr.bf16.mxu0 %v618_v20  ;;  %v58_v54 = vld [vmem:[#allocation2 + $0x68] sm:$0xff]  ;;  %v552_v55 = vpack.c.bf16 %v55_v51, %v53_v46  ;;  %v60_v56 = vld [vmem:[#allocation2 + $0x78] sm:$0xff]  ;;  %v628_v57 = vpack.c.bf16 %v131_v49, %v129_v48  ;;  %v133_v58 = vld [vmem:[#allocation2 + $0x2c0] sm:$0xff]  ;;  %v630_v62 = vpack.c.bf16 %v136_v53, %v134_v52 }
  0x33   :  { %v554_v59 = vpack.c.bf16 %v60_v56, %v58_v54  ;;  %v57_v60 = vld [vmem:[#allocation2 + $0x60] sm:$0xff]  ;;  %v59_v61 = vld [vmem:[#allocation2 + $0x70] sm:$0xff]  ;;  %v62_v0 = vld [vmem:[#allocation2 + $0x88] sm:$0xff] }
  0x34   :  { %549 = vmatpush1.bf16.msra.mxu1 %v548_v42  ;;  %v135_v63 = vld [vmem:[#allocation2 + $0x2d0] sm:$0xff]  ;;  %v64_v1 = vld [vmem:[#allocation2 + $0x98] sm:$0xff]  ;;  %v138_v2 = vld [vmem:[#allocation2 + $0x2e8] sm:$0xff]  ;;  %v556_v4 = vpack.c.bf16 %v59_v61, %v57_v60 }
  0x35   :  { %621 = vmatpush1.bf16.msra.mxu0 %v620_v29  ;;  %551 = vmatprep.subr.bf16.mxu1 %v550_v50  ;;  %v140_v3 = vld [vmem:[#allocation2 + $0x2f8] sm:$0xff]  ;;  %v632_v5 = vpack.c.bf16 %v135_v63, %v133_v58  ;;  %v137_v6 = vld [vmem:[#allocation2 + $0x2e0] sm:$0xff]  ;;  %v558_v7 = vpack.c.bf16 %v64_v1, %v62_v0  ;;  %v63_v9 = vld [vmem:[#allocation2 + $0x90] sm:$0xff] }
  0x36   :  { %623 = vmatprep.subr.bf16.mxu0 %v622_v34  ;;  %v61_v8 = vld [vmem:[#allocation2 + $0x80] sm:$0xff]  ;;  %v634_v10 = vpack.c.bf16 %v140_v3, %v138_v2  ;;  %v139_v11 = vld [vmem:[#allocation2 + $0x2f0] sm:$0xff]  ;;  %v66_v12 = vld [vmem:[#allocation2 + $0xa8] sm:$0xff] }
  0x37   :  { %v68_v13 = vld [vmem:[#allocation2 + $0xb8] sm:$0xff]  ;;  %v142_v14 = vld [vmem:[#allocation2 + $0x308] sm:$0xff]  ;;  %v560_v16 = vpack.c.bf16 %v63_v9, %v61_v8  ;;  %v636_v17 = vpack.c.bf16 %v139_v11, %v137_v6  ;;  %v141_v18 = vld [vmem:[#allocation2 + $0x300] sm:$0xff] }
  0x38   :  { %553 = vmatpush1.bf16.msra.mxu1 %v552_v55  ;;  %v144_v15 = vld [vmem:[#allocation2 + $0x318] sm:$0xff]  ;;  %v562_v19 = vpack.c.bf16 %v68_v13, %v66_v12  ;;  %v65_v20 = vld [vmem:[#allocation2 + $0xa0] sm:$0xff]  ;;  %v67_v21 = vld [vmem:[#allocation2 + $0xb0] sm:$0xff] }
  0x39   :  { %625 = vmatpush1.bf16.msra.mxu0 %v624_v43  ;;  %555 = vmatprep.subr.bf16.mxu1 %v554_v59  ;;  %v638_v22 = vpack.c.bf16 %v144_v15, %v142_v14  ;;  %v143_v23 = vld [vmem:[#allocation2 + $0x310] sm:$0xff]  ;;  %v70_v24 = vld [vmem:[#allocation2 + $0xc8] sm:$0xff]  ;;  %v72_v25 = vld [vmem:[#allocation2 + $0xd8] sm:$0xff]  ;;  %v564_v29 = vpack.c.bf16 %v67_v21, %v65_v20 }
  0x3a   :  { %627 = vmatprep.subr.bf16.mxu0 %v626_v47  ;;  %v146_v26 = vld [vmem:[#allocation2 + $0x328] sm:$0xff]  ;;  %v148_v27 = vld [vmem:[#allocation2 + $0x338] sm:$0xff]  ;;  %v145_v28 = vld [vmem:[#allocation2 + $0x320] sm:$0xff]  ;;  %v640_v30 = vpack.c.bf16 %v143_v23, %v141_v18  ;;  %v566_v32 = vpack.c.bf16 %v72_v25, %v70_v24 }
  0x3b   :  { %v147_v31 = vld [vmem:[#allocation2 + $0x330] sm:$0xff]  ;;  %v69_v33 = vld [vmem:[#allocation2 + $0xc0] sm:$0xff]  ;;  %v642_v35 = vpack.c.bf16 %v148_v27, %v146_v26  ;;  %v74_v36 = vld [vmem:[#allocation2 + $0xe8] sm:$0xff] }
  0x3c   :  { %557 = vmatpush1.bf16.msra.mxu1 %v556_v4  ;;  %v71_v34 = vld [vmem:[#allocation2 + $0xd0] sm:$0xff]  ;;  %v76_v37 = vld [vmem:[#allocation2 + $0xf8] sm:$0xff]  ;;  %v150_v39 = vld [vmem:[#allocation2 + $0x348] sm:$0xff]  ;;  %v644_v43 = vpack.c.bf16 %v147_v31, %v145_v28 }
  0x3d   :  { %629 = vmatpush1.bf16.msra.mxu0 %v628_v57  ;;  %559 = vmatprep.subr.bf16.mxu1 %v558_v7  ;;  %v43_v38 = vld [vmem:[%s862_s0 + $0x18] sm:$0xff]  ;;  %v823_v41 = vld [vmem:[%s862_s0 + $0x10] sm:$0xff]  ;;  %v568_v42 = vpack.c.bf16 %v71_v34, %v69_v33  ;;  %v149_v44 = vld [vmem:[#allocation2 + $0x340] sm:$0xff]  ;;  %v570_v45 = vpack.c.bf16 %v76_v37, %v74_v36 }
  0x3e   :  { %631 = vmatprep.subr.bf16.mxu0 %v630_v62  ;;  %v152_v40 = vld [vmem:[#allocation2 + $0x358] sm:$0xff]  ;;  %340 = vmatprep.mubr.f32.mxu0 %v43_v38  ;;  %534 = vst [vmem:[%s865_s3 + $0x28] sm:$0xff] %v43_v38  ;;  %533 = vst [vmem:[%s865_s3 + $0x20] sm:$0xff] %v823_v41  ;;  %v73_v46 = vld [vmem:[#allocation2 + $0xe0] sm:$0xff] }
  0x3f   :  { %v75_v47 = vld [vmem:[#allocation2 + $0xf0] sm:$0xff]  ;;  %v646_v48 = vpack.c.bf16 %v152_v40, %v150_v39  ;;  %v78_v50 = vld [vmem:[#allocation2 + $0x108] sm:$0xff]  ;;  %v80_v51 = vld [vmem:[#allocation2 + $0x118] sm:$0xff] }
  0x40   :  { %561 = vmatpush1.bf16.msra.mxu1 %v560_v16  ;;  %v151_v49 = vld [vmem:[#allocation2 + $0x350] sm:$0xff]  ;;  %v154_v52 = vld [vmem:[#allocation2 + $0x368] sm:$0xff]  ;;  %v156_v53 = vld [vmem:[#allocation2 + $0x378] sm:$0xff]  ;;  %v572_v54 = vpack.c.bf16 %v75_v47, %v73_v46  ;;  %v574_v57 = vpack.c.bf16 %v80_v51, %v78_v50 }
  0x41   :  { %633 = vmatpush1.bf16.msra.mxu0 %v632_v5  ;;  %563 = vmatprep.subr.bf16.mxu1 %v562_v19  ;;  %v648_v55 = vpack.c.bf16 %v151_v49, %v149_v44  ;;  %v153_v56 = vld [vmem:[#allocation2 + $0x360] sm:$0xff]  ;;  %v79_v59 = vld [vmem:[#allocation2 + $0x110] sm:$0xff]  ;;  %v650_v60 = vpack.c.bf16 %v156_v53, %v154_v52  ;;  %v82_v62 = vld [vmem:[#allocation2 + $0x128] sm:$0xff] }
  0x42   :  { %635 = vmatprep.subr.bf16.mxu0 %v634_v10  ;;  %v77_v58 = vld [vmem:[#allocation2 + $0x100] sm:$0xff]  ;;  %v155_v61 = vld [vmem:[#allocation2 + $0x370] sm:$0xff]  ;;  %v84_v63 = vld [vmem:[#allocation2 + $0x138] sm:$0xff] }
  0x43   :  { %v158_v0 = vld [vmem:[#allocation2 + $0x388] sm:$0xff]  ;;  %v160_v1 = vld [vmem:[#allocation2 + $0x398] sm:$0xff]  ;;  %v576_v2 = vpack.c.bf16 %v79_v59, %v77_v58  ;;  %v652_v3 = vpack.c.bf16 %v155_v61, %v153_v56  ;;  %v157_v4 = vld [vmem:[#allocation2 + $0x380] sm:$0xff]  ;;  %v578_v5 = vpack.c.bf16 %v84_v63, %v82_v62 }
  0x44   :  { %565 = vmatpush1.bf16.msra.mxu1 %v564_v29  ;;  %v81_v6 = vld [vmem:[#allocation2 + $0x120] sm:$0xff]  ;;  %v83_v7 = vld [vmem:[#allocation2 + $0x130] sm:$0xff]  ;;  %v654_v8 = vpack.c.bf16 %v160_v1, %v158_v0  ;;  %v86_v10 = vld [vmem:[#allocation2 + $0x148] sm:$0xff] }
  0x45   :  { %637 = vmatpush1.bf16.msra.mxu0 %v636_v17  ;;  %567 = vmatprep.subr.bf16.mxu1 %v566_v32  ;;  %v159_v9 = vld [vmem:[#allocation2 + $0x390] sm:$0xff]  ;;  %v88_v11 = vld [vmem:[#allocation2 + $0x158] sm:$0xff]  ;;  %v162_v12 = vld [vmem:[#allocation2 + $0x3a8] sm:$0xff]  ;;  %v580_v14 = vpack.c.bf16 %v83_v7, %v81_v6 }
  0x46   :  { %639 = vmatprep.subr.bf16.mxu0 %v638_v22  ;;  %v164_v13 = vld [vmem:[#allocation2 + $0x3b8] sm:$0xff]  ;;  %v656_v15 = vpack.c.bf16 %v159_v9, %v157_v4  ;;  %v161_v16 = vld [vmem:[#allocation2 + $0x3a0] sm:$0xff]  ;;  %v582_v17 = vpack.c.bf16 %v88_v11, %v86_v10  ;;  %v87_v19 = vld [vmem:[#allocation2 + $0x150] sm:$0xff] }
  0x47   :  { %v85_v18 = vld [vmem:[#allocation2 + $0x140] sm:$0xff]  ;;  %v658_v20 = vpack.c.bf16 %v164_v13, %v162_v12  ;;  %v163_v21 = vld [vmem:[#allocation2 + $0x3b0] sm:$0xff]  ;;  %v90_v22 = vld [vmem:[#allocation2 + $0x168] sm:$0xff] }
  0x48   :  { %569 = vmatpush1.bf16.msra.mxu1 %v568_v42  ;;  %v92_v23 = vld [vmem:[#allocation2 + $0x178] sm:$0xff]  ;;  %v166_v24 = vld [vmem:[#allocation2 + $0x3c8] sm:$0xff]  ;;  %v165_v26 = vld [vmem:[#allocation2 + $0x3c0] sm:$0xff]  ;;  %v584_v28 = vpack.c.bf16 %v87_v19, %v85_v18  ;;  %v660_v29 = vpack.c.bf16 %v163_v21, %v161_v16 }
  0x49   :  { %641 = vmatpush1.bf16.msra.mxu0 %v640_v30  ;;  %571 = vmatprep.subr.bf16.mxu1 %v570_v45  ;;  %v168_v25 = vld [vmem:[#allocation2 + $0x3d8] sm:$0xff]  ;;  %v167_v27 = vld [vmem:[#allocation2 + $0x3d0] sm:$0xff]  ;;  %v170_v30 = vld [vmem:[#allocation2 + $0x3e8] sm:$0xff]  ;;  %v586_v31 = vpack.c.bf16 %v92_v23, %v90_v22  ;;  %v768_v22 = vmov 0.0  }
  0x4a   :  { %643 = vmatprep.subr.bf16.mxu0 %v642_v35  ;;  %v89_v32 = vld [vmem:[#allocation2 + $0x160] sm:$0xff]  ;;  %v91_v33 = vld [vmem:[#allocation2 + $0x170] sm:$0xff]  ;;  %v662_v34 = vpack.c.bf16 %v168_v25, %v166_v24  ;;  %v172_v35 = vld [vmem:[#allocation2 + $0x3f8] sm:$0xff] }
  0x4b   :  { %v94_v36 = vld [vmem:[#allocation2 + $0x188] sm:$0xff]  ;;  %v96_v37 = vld [vmem:[#allocation2 + $0x198] sm:$0xff]  ;;  %v835_v39 = vld [vmem:[%s862_s0] sm:$0xff]  ;;  %v588_v42 = vpack.c.bf16 %v91_v33, %v89_v32 }
  0x4c   :  { %573 = vmatpush1.bf16.msra.mxu1 %v572_v54  ;;  %v41_v38 = vld [vmem:[%s862_s0 + $0x8] sm:$0xff]  ;;  %v840_v40 = vld [vmem:[%s862_s0 + $0x20] sm:$0xff]  ;;  %531 = vst [vmem:[%s865_s3 + $0x10] sm:$0xff] %v835_v39  ;;  %v590_v45 = vpack.c.bf16 %v96_v37, %v94_v36  ;;  %v95_v47 = vld [vmem:[#allocation2 + $0x190] sm:$0xff] }
  0x4d   :  { %645 = vmatpush1.bf16.msra.mxu0 %v644_v43  ;;  %575 = vmatprep.subr.bf16.mxu1 %v574_v57  ;;  %532 = vst [vmem:[%s865_s3 + $0x18] sm:$0xff] %v41_v38  ;;  %535 = vst [vmem:[%s865_s3 + $0x30] sm:$0xff] %v840_v40  ;;  %v664_v43 = vpack.c.bf16 %v167_v27, %v165_v26  ;;  %v169_v44 = vld [vmem:[#allocation2 + $0x3e0] sm:$0xff]  ;;  %v171_v49 = vld [vmem:[#allocation2 + $0x3f0] sm:$0xff] }
  0x4e   :  { %647 = vmatprep.subr.bf16.mxu0 %v646_v48  ;;  %269 = vmatprep.mubr.f32.mxu1 %v41_v38  ;;  %v93_v46 = vld [vmem:[#allocation2 + $0x180] sm:$0xff]  ;;  %v666_v48 = vpack.c.bf16 %v172_v35, %v170_v30  ;;  %v98_v50 = vld [vmem:[#allocation2 + $0x1a8] sm:$0xff]  ;;  %v100_v51 = vld [vmem:[#allocation2 + $0x1b8] sm:$0xff] }
  0x4f   :  { %v174_v52 = vld [vmem:[#allocation2 + $0x408] sm:$0xff]  ;;  %v176_v53 = vld [vmem:[#allocation2 + $0x418] sm:$0xff]  ;;  %v592_v54 = vpack.c.bf16 %v95_v47, %v93_v46  ;;  %v173_v56 = vld [vmem:[#allocation2 + $0x400] sm:$0xff]  ;;  %v594_v57 = vpack.c.bf16 %v100_v51, %v98_v50 }
  0x50   :  { %577 = vmatpush1.bf16.msra.mxu1 %v576_v2  ;;  %v97_v58 = vld [vmem:[#allocation2 + $0x1a0] sm:$0xff]  ;;  %v99_v59 = vld [vmem:[#allocation2 + $0x1b0] sm:$0xff]  ;;  %v102_v62 = vld [vmem:[#allocation2 + $0x1c8] sm:$0xff] }
  0x51   :  { %649 = vmatpush1.bf16.msra.mxu0 %v648_v55  ;;  %579 = vmatprep.subr.bf16.mxu1 %v578_v5  ;;  %v668_v55 = vpack.c.bf16 %v171_v49, %v169_v44  ;;  %v175_v61 = vld [vmem:[#allocation2 + $0x410] sm:$0xff]  ;;  %v104_v63 = vld [vmem:[#allocation2 + $0x1d8] sm:$0xff]  ;;  %v178_v0 = vld [vmem:[#allocation2 + $0x428] sm:$0xff]  ;;  %v596_v2 = vpack.c.bf16 %v99_v59, %v97_v58 }
  0x52   :  { %651 = vmatprep.subr.bf16.mxu0 %v650_v60  ;;  %v670_v60 = vpack.c.bf16 %v176_v53, %v174_v52  ;;  %v180_v1 = vld [vmem:[#allocation2 + $0x438] sm:$0xff]  ;;  %v177_v4 = vld [vmem:[#allocation2 + $0x420] sm:$0xff]  ;;  %v598_v5 = vpack.c.bf16 %v104_v63, %v102_v62  ;;  %v103_v7 = vld [vmem:[#allocation2 + $0x1d0] sm:$0xff] }
  0x53   :  { %v101_v6 = vld [vmem:[#allocation2 + $0x1c0] sm:$0xff]  ;;  %v179_v9 = vld [vmem:[#allocation2 + $0x430] sm:$0xff]  ;;  %v106_v10 = vld [vmem:[#allocation2 + $0x1e8] sm:$0xff] }
  0x54   :  { %581 = vmatpush1.bf16.msra.mxu1 %v580_v14  ;;  %v108_v11 = vld [vmem:[#allocation2 + $0x1f8] sm:$0xff]  ;;  %v182_v12 = vld [vmem:[#allocation2 + $0x448] sm:$0xff]  ;;  %v600_v14 = vpack.c.bf16 %v103_v7, %v101_v6  ;;  %v107_v18 = vld [vmem:[#allocation2 + $0x1f0] sm:$0xff] }
  0x55   :  { %653 = vmatpush1.bf16.msra.mxu0 %v652_v3  ;;  %583 = vmatprep.subr.bf16.mxu1 %v582_v17  ;;  %v672_v3 = vpack.c.bf16 %v175_v61, %v173_v56  ;;  %v184_v13 = vld [vmem:[#allocation2 + $0x458] sm:$0xff]  ;;  %v602_v16 = vpack.c.bf16 %v108_v11, %v106_v10  ;;  %v105_v17 = vld [vmem:[#allocation2 + $0x1e0] sm:$0xff]  ;;  %v183_v21 = vld [vmem:[#allocation2 + $0x450] sm:$0xff] }
  0x56   :  { %655 = vmatprep.subr.bf16.mxu0 %v654_v8  ;;  %v674_v8 = vpack.c.bf16 %v180_v1, %v178_v0  ;;  %v678_v19 = vpack.c.bf16 %v184_v13, %v182_v12  ;;  %v186_v23 = vld [vmem:[#allocation2 + $0x468] sm:$0xff]  ;;  %v188_v24 = vld [vmem:[#allocation2 + $0x478] sm:$0xff]  ;;  %v604_v25 = vpack.c.bf16 %v107_v18, %v105_v17  ;;  %v185_v27 = vld [vmem:[#allocation2 + $0x460] sm:$0xff] }
  0x57   :  { %v682_v26 = vpack.c.bf16 %v188_v24, %v186_v23  ;;  %v192_v30 = vld [vmem:[#allocation2 + $0x498] sm:$0xff]  ;;  %v189_v33 = vld [vmem:[#allocation2 + $0x480] sm:$0xff]  ;;  %v194_v35 = vld [vmem:[#allocation2 + $0x4a8] sm:$0xff] }
  0x58   :  { %585 = vmatpush1.bf16.msra.mxu1 %v584_v28  ;;  %v187_v28 = vld [vmem:[#allocation2 + $0x470] sm:$0xff]  ;;  %v196_v36 = vld [vmem:[#allocation2 + $0x4b8] sm:$0xff]  ;;  %v198_v44 = vld [vmem:[#allocation2 + $0x4c8] sm:$0xff] }
  0x59   :  { %657 = vmatpush1.bf16.msra.mxu0 %v656_v15  ;;  %587 = vmatprep.subr.bf16.mxu1 %v586_v31  ;;  %v676_v15 = vpack.c.bf16 %v179_v9, %v177_v4  ;;  %v684_v31 = vpack.c.bf16 %v187_v28, %v185_v27  ;;  %v690_v38 = vpack.c.bf16 %v196_v36, %v194_v35  ;;  %v199_v49 = vld [vmem:[#allocation2 + $0x4d0] sm:$0xff]  ;;  %v202_v50 = vld [vmem:[#allocation2 + $0x4e8] sm:$0xff]  ;;  %v204_v51 = vld [vmem:[#allocation2 + $0x4f8] sm:$0xff]  ;;  %v467_v36 = vlaneseq }
  0x5a   :  { %659 = vmatprep.subr.bf16.mxu0 %v658_v20  ;;  %v181_v20 = vld [vmem:[#allocation2 + $0x440] sm:$0xff] }
  0x5b   :  { %v201_v53 = vld [vmem:[#allocation2 + $0x4e0] sm:$0xff] }
  0x5c   :  { %589 = vmatpush1.bf16.msra.mxu1 %v588_v42  ;;  %v193_v42 = vld [vmem:[#allocation2 + $0x4a0] sm:$0xff] }
  0x5d   :  { %661 = vmatpush1.bf16.msra.mxu0 %v660_v29  ;;  %591 = vmatprep.subr.bf16.mxu1 %v590_v45  ;;  %v190_v29 = vld [vmem:[#allocation2 + $0x488] sm:$0xff]  ;;  %v200_v45 = vld [vmem:[#allocation2 + $0x4d8] sm:$0xff] }
  0x5e   :  { %663 = vmatprep.subr.bf16.mxu0 %v662_v34  ;;  %v686_v32 = vpack.c.bf16 %v192_v30, %v190_v29  ;;  %v191_v34 = vld [vmem:[#allocation2 + $0x490] sm:$0xff]  ;;  %v694_v47 = vpack.c.bf16 %v200_v45, %v198_v44 }
  0x5f   :  { %v688_v37 = vpack.c.bf16 %v191_v34, %v189_v33  ;;  %v769_v34 = vmov 1966171168  }
  0x60   :  { %593 = vmatpush1.bf16.msra.mxu1 %v592_v54  ;;  %v203_v54 = vld [vmem:[#allocation2 + $0x4f0] sm:$0xff]  ;;  %v465_v35 = vunpack.c.l.s4 %v769_v34 }
  0x61   :  { %665 = vmatpush1.bf16.msra.mxu0 %v664_v43  ;;  %595 = vmatprep.subr.bf16.mxu1 %v594_v57  ;;  %v195_v43 = vld [vmem:[#allocation2 + $0x4b0] sm:$0xff] }
  0x62   :  { %667 = vmatprep.subr.bf16.mxu0 %v666_v48  ;;  %v692_v46 = vpack.c.bf16 %v195_v43, %v193_v42  ;;  %v197_v48 = vld [vmem:[#allocation2 + $0x4c0] sm:$0xff] }
  0x63   :  { %v696_v52 = vpack.c.bf16 %v199_v49, %v197_v48 }
  0x64   :  { %597 = vmatpush1.bf16.msra.mxu1 %v596_v2 }
  0x65   :  { %669 = vmatpush1.bf16.msra.mxu0 %v668_v55  ;;  %599 = vmatprep.subr.bf16.mxu1 %v598_v5  ;;  %v700_v55 = vpack.c.bf16 %v203_v54, %v201_v53 }
  0x66   :  { %671 = vmatprep.subr.bf16.mxu0 %v670_v60 }
  0x68   :  { %341 = vmatmul.mubr.f32.vlgmr.msra.gmra.mrb[0].mxu0 %v823_v41  ;;  %601 = vmatpush1.bf16.msra.mxu1 %v600_v14  ;;  %v680_v41 = vpack.c.bf16 %v183_v21, %v181_v20 }
  0x69   :  { %673 = vmatpush1.bf16.msra.mxu0 %v672_v3  ;;  %411 = vmatprep.mubr.f32.mxu0 %v768_v22 }
  0x6a   :  { %675 = vmatprep.subr.bf16.mxu0 %v674_v8  ;;  %603 = vmatprep.subr.bf16.mxu1 %v602_v16 }
  0x6c   :  { %605 = vmatpush1.bf16.msra.mxu1 %v604_v25 }
  0x6d   :  { %677 = vmatpush1.bf16.msra.mxu0 %v676_v15 }
  0x6e   :  { %679 = vmatprep.subr.bf16.mxu0 %v678_v19 }
  0x6f   :  { %270 = vmatmul.mubr.f32.vlgmr.msra.gmra.mrb[0].mxu1 %v835_v39  ;;  %v698_v39 = vpack.c.bf16 %v204_v51, %v202_v50 }
  0x71   :  { %681 = vmatpush1.bf16.msra.mxu0 %v680_v41 }
  0x72   :  { %683 = vmatprep.subr.bf16.mxu0 %v682_v26 }
  0x75   :  { %685 = vmatpush1.bf16.msra.mxu0 %v684_v31 }
  0x76   :  { %687 = vmatprep.subr.bf16.mxu0 %v686_v32 }
  0x79   :  { %689 = vmatpush1.bf16.msra.mxu0 %v688_v37  ;;  %v466_v37 = vunpack.c.0.s8 %v465_v35 }
  0x7a   :  { %691 = vmatprep.subr.bf16.mxu0 %v690_v38  ;;  %v468_v38 = vshrl.u32 %v467_v36, 7 }
  0x7c   :  { %v469_v43 = vsub.s32 %v466_v37, %v468_v38  ;;  %v483_v49 = vsub.s32 0, %v468_v38  ;;  %v487_v50 = vsub.s32 1, %v468_v38 }
  0x7d   :  { %693 = vmatpush1.bf16.msra.mxu0 %v692_v46 }
  0x7e   :  { %695 = vmatprep.subr.bf16.mxu0 %v694_v47  ;;  %v418_v47 = vld [vmem:[#allocation4] ss:$2 sm:$0x3] }
  0x81   :  { %697 = vmatpush1.bf16.msra.mxu0 %v696_v52 }
  0x82   :  { %699 = vmatprep.subr.bf16.mxu0 %v698_v39 }
  0x85   :  { %701 = vmatpush1.bf16.msra.mxu0 %v700_v55 }
  0x88   :  { %412 = vmatmul.mubr.f32.vlgmr.msra.gmra.mrb[0].mxu0 %v840_v40 }
 0x142   :  { %v271_v56 = vpop.f32.mrb[0].mxu1 }
 0x143   :  { %v273_v57 = vpop.f32.mrb[1].mxu1 }
 0x15b   :  { %v413_v58 = vpop.f32.mrb[0].mxu0 }
 0x15c   :  { %v702_v59 = vadd.f32 %v413_v58, %v271_v56  ;;  %v415_v60 = vpop.f32.mrb[1].mxu0 }
 0x15d   :  { %v703_v61 = vadd.f32 %v415_v60, %v273_v57  ;;  %v420_v60 = vld [vmem:[#allocation4 + $0x1] ss:$2 sm:$0x3] }
 0x15e   :  { %v421_v62 = vrot.slane %v702_v59, 4  ;;  %v435_v63 = vmul.f32 %v702_v59, %v702_v59 }
 0x15f   :  { %v427_v0 = vrot.slane %v703_v61, 4  ;;  %v436_v1 = vmul.f32 %v703_v61, %v703_v61 }
 0x160   :  { %v422_v2 = vadd.f32 %v702_v59, %v421_v62  ;;  %v437_v3 = vrot.slane %v435_v63, 4 }
 0x161   :  { %v428_v4 = vadd.f32 %v703_v61, %v427_v0  ;;  %v443_v5 = vrot.slane %v436_v1, 4 }
 0x162   :  { %v423_v6 = vrot.slane %v422_v2, 2  ;;  %v438_v7 = vadd.f32 %v437_v3, %v435_v63 }
 0x163   :  { %v429_v8 = vrot.slane %v428_v4, 2  ;;  %v444_v9 = vadd.f32 %v443_v5, %v436_v1 }
 0x164   :  { %v424_v10 = vadd.f32 %v423_v6, %v422_v2  ;;  %v439_v40 = vrot.slane %v438_v7, 2 }
 0x165   :  { %v430_v11 = vadd.f32 %v429_v8, %v428_v4  ;;  %v445_v12 = vrot.slane %v444_v9, 2 }
 0x166   :  { %v425_v13 = vrot.slane %v424_v10, 1  ;;  %v440_v14 = vadd.f32 %v439_v40, %v438_v7 }
 0x167   :  { %v431_v15 = vrot.slane %v430_v11, 1  ;;  %v446_v16 = vadd.f32 %v445_v12, %v444_v9 }
 0x168   :  { %v426_v17 = vadd.f32 %v425_v13, %v424_v10  ;;  %v441_v18 = vrot.slane %v440_v14, 1 }
 0x169   :  { %v432_v19 = vadd.f32 %v431_v15, %v430_v11  ;;  %v447_v20 = vrot.slane %v446_v16, 1 }
 0x16a   :  { %v433_v21 = vmul.f32 0.125, %v426_v17  ;;  %v442_v22 = vadd.f32 %v441_v18, %v440_v14 }
 0x16b   :  { %v434_v23 = vmul.f32 0.125, %v432_v19  ;;  %v448_v24 = vadd.f32 %v447_v20, %v446_v16 }
 0x16c   :  { %v449_v25 = vmul.f32 0.125, %v442_v22  ;;  %v451_v41 = vmul.f32 %v433_v21, %v433_v21 }
 0x16d   :  { %v450_v26 = vmul.f32 0.125, %v448_v24  ;;  %v452_v27 = vmul.f32 %v434_v23, %v434_v23 }
 0x16e   :  { %v453_v28 = vsub.f32 %v449_v25, %v451_v41 }
 0x16f   :  { %v454_v29 = vsub.f32 %v450_v26, %v452_v27 }
 0x170   :  { %v455_v30 = vmax.f32 %v453_v28, 0.0 }
 0x171   :  { %v456_v31 = vmax.f32 %v454_v29, 0.0 }
 0x172   :  { %v457_v32 = vadd.f32 1e-05, %v455_v30 }
 0x173   :  { %v458_v33 = vadd.f32 1e-05, %v456_v31 }
 0x174   :  { %712 = vrsqrt.f32 %v457_v32 }
 0x175   :  { %714 = vrsqrt.f32 %v458_v33 }
 0x17e   :  { %v713_v42 = vpop.eup %712 }
 0x17f   :  { %v715_v44 = vpop.eup %714 }
 0x180   :  { %v463_v45 = vcombine.low %v713_v42, %v715_v44 }
 0x182   :  { %v470_v46 = vrot.slane %v463_v45, %v469_v43 }
 0x184   :  { %v477_v48 = vrot.slane %v470_v46, %v469_v43 }
 0x186   :  { %v479_v51 = vmul.f32 %v477_v48, %v418_v47 }
 0x188   :  { %v484_v52 = vrot.slane %v479_v51, %v483_v49  ;;  %v488_v39 = vrot.slane %v479_v51, %v487_v50 }
 0x18a   :  { %v491_v53 = vmul.f32 %v484_v52, %v433_v21  ;;  %v492_v54 = vmul.f32 %v488_v39, %v434_v23  ;;  %v512_v55 = vmul.f32 %v702_v59, %v484_v52  ;;  %v513_v56 = vmul.f32 %v703_v61, %v488_v39 }
 0x18c   :  { %v495_v57 = vcombine.low %v491_v53, %v492_v54 }
 0x18e   :  { %v502_v58 = vrot.slane %v495_v57, %v469_v43 }
 0x190   :  { %v509_v62 = vrot.slane %v502_v58, %v469_v43 }
 0x192   :  { %v511_v63 = vsub.f32 %v420_v60, %v509_v62 }
 0x194   :  { %v518_v0 = vrot.slane %v511_v63, %v483_v49  ;;  %v522_v1 = vrot.slane %v511_v63, %v487_v50 }
 0x196   :  { %v525_v2 = vadd.f32 %v518_v0, %v512_v55  ;;  %v526_v3 = vadd.f32 %v522_v1, %v513_v56 }
 0x198   :  { %v527_v4 = vmax.f32 %v525_v2, 0.0  ;;  %v528_v5 = vmax.f32 %v526_v3, 0.0 }
 0x19a   :  { %529 = vst [vmem:[%s865_s3] sm:$0xff] %v527_v4  ;;  %530 = vst [vmem:[%s865_s3 + $0x8] sm:$0xff] %v528_v5 }
 0x19b   :  { %540 = vsyncpa [#allocation3], 1 }
 0x19c   :  { %541 = vsyncpa [#allocation5], 1 }

// kernel: generator_forward.8
= control target key start
LH: loop header
LB: loop body
LE: loop exit
PB: predicated region body
PF: predicated region fallthrough
CT: control target
= control target key end

     0   :  { %s1661_s1 = inlined_call_operand.vmem [shape: f32[896,256], index: 1, kind: input, shape index: {}]   ;;  %s1662_s0 = inlined_call_operand.vmem [shape: f32[8,896], index: 0, kind: input, shape index: {}]   ;;  %s1663_s3 = inlined_call_operand.vmem [shape: f32[8,1152], index: 3, kind: output, shape index: {}]   ;;  %s1664_s2 = inlined_call_operand.vmem [shape: f32[2,256], index: 2, kind: input, shape index: {}]  }
   0x1   :  { %v22_v0 = vld [vmem:[%s1661_s1 + $0x8] sm:$0xff]  ;;  %v24_v1 = vld [vmem:[%s1661_s1 + $0x18] sm:$0xff]  ;;  %v21_v5 = vld [vmem:[%s1661_s1] sm:$0xff] }
   0x2   :  { %v150_v2 = vld [vmem:[%s1661_s1 + $0x408] sm:$0xff]  ;;  %v654_v3 = vpack.c.bf16 %v24_v1, %v22_v0  ;;  %v152_v4 = vld [vmem:[%s1661_s1 + $0x418] sm:$0xff]  ;;  %v23_v6 = vld [vmem:[%s1661_s1 + $0x10] sm:$0xff] }
   0x3   :  { %v782_v7 = vpack.c.bf16 %v152_v4, %v150_v2  ;;  %v656_v8 = vpack.c.bf16 %v23_v6, %v21_v5  ;;  %v149_v9 = vld [vmem:[%s1661_s1 + $0x400] sm:$0xff]  ;;  %v151_v10 = vld [vmem:[%s1661_s1 + $0x410] sm:$0xff]  ;;  %v26_v11 = vld [vmem:[%s1661_s1 + $0x28] sm:$0xff] }
   0x4   :  { %655 = vmatprep.subr.bf16.mxu1 %v654_v3  ;;  %v784_v12 = vpack.c.bf16 %v151_v10, %v149_v9  ;;  %v28_v13 = vld [vmem:[%s1661_s1 + $0x38] sm:$0xff]  ;;  %v154_v14 = vld [vmem:[%s1661_s1 + $0x428] sm:$0xff]  ;;  %v25_v18 = vld [vmem:[%s1661_s1 + $0x20] sm:$0xff] }
   0x5   :  { %v156_v15 = vld [vmem:[%s1661_s1 + $0x438] sm:$0xff]  ;;  %783 = vmatprep.subr.bf16.mxu0 %v782_v7  ;;  %657 = vmatpush1.bf16.msra.mxu1 %v656_v8  ;;  %v658_v16 = vpack.c.bf16 %v28_v13, %v26_v11  ;;  %v27_v19 = vld [vmem:[%s1661_s1 + $0x30] sm:$0xff]  ;;  %v153_v20 = vld [vmem:[%s1661_s1 + $0x420] sm:$0xff] }
   0x6   :  { %v786_v17 = vpack.c.bf16 %v156_v15, %v154_v14  ;;  %785 = vmatpush1.bf16.msra.mxu0 %v784_v12  ;;  %v660_v21 = vpack.c.bf16 %v27_v19, %v25_v18  ;;  %v155_v22 = vld [vmem:[%s1661_s1 + $0x430] sm:$0xff]  ;;  %v30_v23 = vld [vmem:[%s1661_s1 + $0x48] sm:$0xff]  ;;  %v32_v24 = vld [vmem:[%s1661_s1 + $0x58] sm:$0xff] }
   0x7   :  { %659 = vmatprep.subr.bf16.mxu1 %v658_v16  ;;  %v788_v25 = vpack.c.bf16 %v155_v22, %v153_v20  ;;  %v662_v26 = vpack.c.bf16 %v32_v24, %v30_v23  ;;  %v158_v27 = vld [vmem:[%s1661_s1 + $0x448] sm:$0xff]  ;;  %v160_v28 = vld [vmem:[%s1661_s1 + $0x458] sm:$0xff]  ;;  %v29_v29 = vld [vmem:[%s1661_s1 + $0x40] sm:$0xff] }
   0x8   :  { %787 = vmatprep.subr.bf16.mxu0 %v786_v17  ;;  %v790_v30 = vpack.c.bf16 %v160_v28, %v158_v27  ;;  %v31_v31 = vld [vmem:[%s1661_s1 + $0x50] sm:$0xff]  ;;  %v157_v32 = vld [vmem:[%s1661_s1 + $0x440] sm:$0xff]  ;;  %v34_v35 = vld [vmem:[%s1661_s1 + $0x68] sm:$0xff] }
   0x9   :  { %v159_v33 = vld [vmem:[%s1661_s1 + $0x450] sm:$0xff]  ;;  %661 = vmatpush1.bf16.msra.mxu1 %v660_v21  ;;  %v664_v34 = vpack.c.bf16 %v31_v31, %v29_v29  ;;  %v36_v36 = vld [vmem:[%s1661_s1 + $0x78] sm:$0xff]  ;;  %v162_v37 = vld [vmem:[%s1661_s1 + $0x468] sm:$0xff] }
   0xa   :  { %789 = vmatpush1.bf16.msra.mxu0 %v788_v25  ;;  %663 = vmatprep.subr.bf16.mxu1 %v662_v26  ;;  %v792_v38 = vpack.c.bf16 %v159_v33, %v157_v32  ;;  %v666_v39 = vpack.c.bf16 %v36_v36, %v34_v35  ;;  %v164_v40 = vld [vmem:[%s1661_s1 + $0x478] sm:$0xff]  ;;  %v33_v41 = vld [vmem:[%s1661_s1 + $0x60] sm:$0xff]  ;;  %v35_v42 = vld [vmem:[%s1661_s1 + $0x70] sm:$0xff] }
   0xb   :  { %791 = vmatprep.subr.bf16.mxu0 %v790_v30  ;;  %v794_v43 = vpack.c.bf16 %v164_v40, %v162_v37  ;;  %v161_v44 = vld [vmem:[%s1661_s1 + $0x460] sm:$0xff]  ;;  %v163_v45 = vld [vmem:[%s1661_s1 + $0x470] sm:$0xff]  ;;  %v38_v46 = vld [vmem:[%s1661_s1 + $0x88] sm:$0xff]  ;;  %v668_v50 = vpack.c.bf16 %v35_v42, %v33_v41 }
   0xc   :  { %v40_v47 = vld [vmem:[%s1661_s1 + $0x98] sm:$0xff]  ;;  %v166_v48 = vld [vmem:[%s1661_s1 + $0x488] sm:$0xff]  ;;  %v796_v51 = vpack.c.bf16 %v163_v45, %v161_v44  ;;  %v37_v53 = vld [vmem:[%s1661_s1 + $0x80] sm:$0xff] }
   0xd   :  { %v168_v49 = vld [vmem:[%s1661_s1 + $0x498] sm:$0xff]  ;;  %665 = vmatpush1.bf16.msra.mxu1 %v664_v34  ;;  %v670_v52 = vpack.c.bf16 %v40_v47, %v38_v46  ;;  %v39_v54 = vld [vmem:[%s1661_s1 + $0x90] sm:$0xff]  ;;  %v165_v55 = vld [vmem:[%s1661_s1 + $0x480] sm:$0xff] }
   0xe   :  { %793 = vmatpush1.bf16.msra.mxu0 %v792_v38  ;;  %667 = vmatprep.subr.bf16.mxu1 %v666_v39  ;;  %v798_v56 = vpack.c.bf16 %v168_v49, %v166_v48  ;;  %v167_v57 = vld [vmem:[%s1661_s1 + $0x490] sm:$0xff]  ;;  %v42_v58 = vld [vmem:[%s1661_s1 + $0xa8] sm:$0xff]  ;;  %v44_v59 = vld [vmem:[%s1661_s1 + $0xb8] sm:$0xff]  ;;  %v672_v62 = vpack.c.bf16 %v39_v54, %v37_v53 }
   0xf   :  { %795 = vmatprep.subr.bf16.mxu0 %v794_v43  ;;  %v170_v60 = vld [vmem:[%s1661_s1 + $0x4a8] sm:$0xff]  ;;  %v172_v61 = vld [vmem:[%s1661_s1 + $0x4b8] sm:$0xff]  ;;  %v800_v63 = vpack.c.bf16 %v167_v57, %v165_v55  ;;  %v674_v0 = vpack.c.bf16 %v44_v59, %v42_v58  ;;  %v41_v1 = vld [vmem:[%s1661_s1 + $0xa0] sm:$0xff] }
  0x10   :  { %v43_v2 = vld [vmem:[%s1661_s1 + $0xb0] sm:$0xff]  ;;  %v169_v3 = vld [vmem:[%s1661_s1 + $0x4a0] sm:$0xff]  ;;  %v802_v4 = vpack.c.bf16 %v172_v61, %v170_v60  ;;  %v46_v6 = vld [vmem:[%s1661_s1 + $0xc8] sm:$0xff] }
  0x11   :  { %669 = vmatpush1.bf16.msra.mxu1 %v668_v50  ;;  %v171_v5 = vld [vmem:[%s1661_s1 + $0x4b0] sm:$0xff]  ;;  %v48_v7 = vld [vmem:[%s1661_s1 + $0xd8] sm:$0xff]  ;;  %v174_v8 = vld [vmem:[%s1661_s1 + $0x4c8] sm:$0xff]  ;;  %v676_v10 = vpack.c.bf16 %v43_v2, %v41_v1 }
  0x12   :  { %797 = vmatpush1.bf16.msra.mxu0 %v796_v51  ;;  %671 = vmatprep.subr.bf16.mxu1 %v670_v52  ;;  %v176_v9 = vld [vmem:[%s1661_s1 + $0x4d8] sm:$0xff]  ;;  %v804_v11 = vpack.c.bf16 %v171_v5, %v169_v3  ;;  %v678_v12 = vpack.c.bf16 %v48_v7, %v46_v6  ;;  %v45_v13 = vld [vmem:[%s1661_s1 + $0xc0] sm:$0xff]  ;;  %v47_v14 = vld [vmem:[%s1661_s1 + $0xd0] sm:$0xff] }
  0x13   :  { %799 = vmatprep.subr.bf16.mxu0 %v798_v56  ;;  %v173_v15 = vld [vmem:[%s1661_s1 + $0x4c0] sm:$0xff]  ;;  %v806_v16 = vpack.c.bf16 %v176_v9, %v174_v8  ;;  %v175_v17 = vld [vmem:[%s1661_s1 + $0x4d0] sm:$0xff]  ;;  %v50_v18 = vld [vmem:[%s1661_s1 + $0xe8] sm:$0xff]  ;;  %v680_v22 = vpack.c.bf16 %v47_v14, %v45_v13 }
  0x14   :  { %v52_v19 = vld [vmem:[%s1661_s1 + $0xf8] sm:$0xff]  ;;  %v178_v20 = vld [vmem:[%s1661_s1 + $0x4e8] sm:$0xff]  ;;  %v808_v23 = vpack.c.bf16 %v175_v17, %v173_v15  ;;  %v49_v25 = vld [vmem:[%s1661_s1 + $0xe0] sm:$0xff] }
  0x15   :  { %673 = vmatpush1.bf16.msra.mxu1 %v672_v62  ;;  %v180_v21 = vld [vmem:[%s1661_s1 + $0x4f8] sm:$0xff]  ;;  %v682_v24 = vpack.c.bf16 %v52_v19, %v50_v18  ;;  %v51_v26 = vld [vmem:[%s1661_s1 + $0xf0] sm:$0xff]  ;;  %v177_v27 = vld [vmem:[%s1661_s1 + $0x4e0] sm:$0xff] }
  0x16   :  { %801 = vmatpush1.bf16.msra.mxu0 %v800_v63  ;;  %675 = vmatprep.subr.bf16.mxu1 %v674_v0  ;;  %v810_v28 = vpack.c.bf16 %v180_v21, %v178_v20  ;;  %v179_v29 = vld [vmem:[%s1661_s1 + $0x4f0] sm:$0xff]  ;;  %v54_v30 = vld [vmem:[%s1661_s1 + $0x108] sm:$0xff]  ;;  %v56_v31 = vld [vmem:[%s1661_s1 + $0x118] sm:$0xff]  ;;  %v684_v34 = vpack.c.bf16 %v51_v26, %v49_v25 }
  0x17   :  { %803 = vmatprep.subr.bf16.mxu0 %v802_v4  ;;  %v182_v32 = vld [vmem:[%s1661_s1 + $0x508] sm:$0xff]  ;;  %v184_v33 = vld [vmem:[%s1661_s1 + $0x518] sm:$0xff]  ;;  %v812_v35 = vpack.c.bf16 %v179_v29, %v177_v27  ;;  %v686_v36 = vpack.c.bf16 %v56_v31, %v54_v30  ;;  %v53_v37 = vld [vmem:[%s1661_s1 + $0x100] sm:$0xff] }
  0x18   :  { %v55_v38 = vld [vmem:[%s1661_s1 + $0x110] sm:$0xff]  ;;  %v181_v39 = vld [vmem:[%s1661_s1 + $0x500] sm:$0xff]  ;;  %v814_v40 = vpack.c.bf16 %v184_v33, %v182_v32  ;;  %v58_v42 = vld [vmem:[%s1661_s1 + $0x128] sm:$0xff] }
  0x19   :  { %677 = vmatpush1.bf16.msra.mxu1 %v676_v10  ;;  %v183_v41 = vld [vmem:[%s1661_s1 + $0x510] sm:$0xff]  ;;  %v60_v43 = vld [vmem:[%s1661_s1 + $0x138] sm:$0xff]  ;;  %v186_v44 = vld [vmem:[%s1661_s1 + $0x528] sm:$0xff]  ;;  %v688_v46 = vpack.c.bf16 %v55_v38, %v53_v37 }
  0x1a   :  { %805 = vmatpush1.bf16.msra.mxu0 %v804_v11  ;;  %679 = vmatprep.subr.bf16.mxu1 %v678_v12  ;;  %v188_v45 = vld [vmem:[%s1661_s1 + $0x538] sm:$0xff]  ;;  %v816_v47 = vpack.c.bf16 %v183_v41, %v181_v39  ;;  %v690_v48 = vpack.c.bf16 %v60_v43, %v58_v42  ;;  %v57_v49 = vld [vmem:[%s1661_s1 + $0x120] sm:$0xff]  ;;  %v59_v50 = vld [vmem:[%s1661_s1 + $0x130] sm:$0xff] }
  0x1b   :  { %807 = vmatprep.subr.bf16.mxu0 %v806_v16  ;;  %v185_v51 = vld [vmem:[%s1661_s1 + $0x520] sm:$0xff]  ;;  %v818_v52 = vpack.c.bf16 %v188_v45, %v186_v44  ;;  %v187_v53 = vld [vmem:[%s1661_s1 + $0x530] sm:$0xff]  ;;  %v62_v54 = vld [vmem:[%s1661_s1 + $0x148] sm:$0xff]  ;;  %v692_v58 = vpack.c.bf16 %v59_v50, %v57_v49 }
  0x1c   :  { %v64_v55 = vld [vmem:[%s1661_s1 + $0x158] sm:$0xff]  ;;  %v190_v56 = vld [vmem:[%s1661_s1 + $0x548] sm:$0xff]  ;;  %v820_v59 = vpack.c.bf16 %v187_v53, %v185_v51  ;;  %v61_v61 = vld [vmem:[%s1661_s1 + $0x140] sm:$0xff] }
  0x1d   :  { %681 = vmatpush1.bf16.msra.mxu1 %v680_v22  ;;  %v192_v57 = vld [vmem:[%s1661_s1 + $0x558] sm:$0xff]  ;;  %v694_v60 = vpack.c.bf16 %v64_v55, %v62_v54  ;;  %v63_v62 = vld [vmem:[%s1661_s1 + $0x150] sm:$0xff]  ;;  %v189_v63 = vld [vmem:[%s1661_s1 + $0x540] sm:$0xff] }
  0x1e   :  { %809 = vmatpush1.bf16.msra.mxu0 %v808_v23  ;;  %683 = vmatprep.subr.bf16.mxu1 %v682_v24  ;;  %v822_v0 = vpack.c.bf16 %v192_v57, %v190_v56  ;;  %v191_v1 = vld [vmem:[%s1661_s1 + $0x550] sm:$0xff]  ;;  %v66_v2 = vld [vmem:[%s1661_s1 + $0x168] sm:$0xff]  ;;  %v68_v3 = vld [vmem:[%s1661_s1 + $0x178] sm:$0xff]  ;;  %v696_v6 = vpack.c.bf16 %v63_v62, %v61_v61 }
  0x1f   :  { %811 = vmatprep.subr.bf16.mxu0 %v810_v28  ;;  %v194_v4 = vld [vmem:[%s1661_s1 + $0x568] sm:$0xff]  ;;  %v196_v5 = vld [vmem:[%s1661_s1 + $0x578] sm:$0xff]  ;;  %v65_v7 = vld [vmem:[%s1661_s1 + $0x160] sm:$0xff]  ;;  %v824_v8 = vpack.c.bf16 %v191_v1, %v189_v63  ;;  %v698_v9 = vpack.c.bf16 %v68_v3, %v66_v2 }
  0x20   :  { %v67_v10 = vld [vmem:[%s1661_s1 + $0x170] sm:$0xff]  ;;  %v193_v11 = vld [vmem:[%s1661_s1 + $0x560] sm:$0xff]  ;;  %v826_v13 = vpack.c.bf16 %v196_v5, %v194_v4  ;;  %v70_v14 = vld [vmem:[%s1661_s1 + $0x188] sm:$0xff] }
  0x21   :  { %685 = vmatpush1.bf16.msra.mxu1 %v684_v34  ;;  %v195_v12 = vld [vmem:[%s1661_s1 + $0x570] sm:$0xff]  ;;  %v72_v15 = vld [vmem:[%s1661_s1 + $0x198] sm:$0xff]  ;;  %v15_v16 = vld [vmem:[%s1662_s0 + $0x8] sm:$0xff]  ;;  %v700_v20 = vpack.c.bf16 %v67_v10, %v65_v7 }
  0x22   :  { %813 = vmatpush1.bf16.msra.mxu0 %v812_v35  ;;  %687 = vmatprep.subr.bf16.mxu1 %v686_v36  ;;  %v198_v17 = vld [vmem:[%s1661_s1 + $0x588] sm:$0xff]  ;;  %v200_v18 = vld [vmem:[%s1661_s1 + $0x598] sm:$0xff]  ;;  %643 = vst [vmem:[%s1663_s3 + $0x18] sm:$0xff] %v15_v16  ;;  %v69_v21 = vld [vmem:[%s1661_s1 + $0x180] sm:$0xff]  ;;  %v828_v23 = vpack.c.bf16 %v195_v12, %v193_v11  ;;  %v702_v24 = vpack.c.bf16 %v72_v15, %v70_v14 }
  0x23   :  { %815 = vmatprep.subr.bf16.mxu0 %v814_v40  ;;  %309 = vmatprep.mubr.f32.mxu1 %v15_v16  ;;  %v19_v19 = vld [vmem:[%s1662_s0 + $0x28] sm:$0xff]  ;;  %v1230_v22 = vld [vmem:[%s1662_s0] sm:$0xff]  ;;  %v71_v25 = vld [vmem:[%s1661_s1 + $0x190] sm:$0xff]  ;;  %v830_v28 = vpack.c.bf16 %v200_v18, %v198_v17 }
  0x24   :  { %451 = vmatprep.mubr.f32.mxu0 %v19_v19  ;;  %647 = vst [vmem:[%s1663_s3 + $0x38] sm:$0xff] %v19_v19  ;;  %v197_v26 = vld [vmem:[%s1661_s1 + $0x580] sm:$0xff]  ;;  %642 = vst [vmem:[%s1663_s3 + $0x10] sm:$0xff] %v1230_v22  ;;  %v199_v29 = vld [vmem:[%s1661_s1 + $0x590] sm:$0xff]  ;;  %v704_v34 = vpack.c.bf16 %v71_v25, %v69_v21 }
  0x25   :  { %689 = vmatpush1.bf16.msra.mxu1 %v688_v46  ;;  %v1245_v27 = vld [vmem:[%s1662_s0 + $0x20] sm:$0xff]  ;;  %v74_v30 = vld [vmem:[%s1661_s1 + $0x1a8] sm:$0xff]  ;;  %v76_v31 = vld [vmem:[%s1661_s1 + $0x1b8] sm:$0xff]  ;;  %v832_v35 = vpack.c.bf16 %v199_v29, %v197_v26 }
  0x26   :  { %817 = vmatpush1.bf16.msra.mxu0 %v816_v47  ;;  %691 = vmatprep.subr.bf16.mxu1 %v690_v48  ;;  %646 = vst [vmem:[%s1663_s3 + $0x30] sm:$0xff] %v1245_v27  ;;  %v202_v32 = vld [vmem:[%s1661_s1 + $0x5a8] sm:$0xff]  ;;  %v204_v33 = vld [vmem:[%s1661_s1 + $0x5b8] sm:$0xff]  ;;  %v706_v36 = vpack.c.bf16 %v76_v31, %v74_v30  ;;  %v73_v37 = vld [vmem:[%s1661_s1 + $0x1a0] sm:$0xff] }
  0x27   :  { %819 = vmatprep.subr.bf16.mxu0 %v818_v52  ;;  %v75_v38 = vld [vmem:[%s1661_s1 + $0x1b0] sm:$0xff]  ;;  %v201_v39 = vld [vmem:[%s1661_s1 + $0x5a0] sm:$0xff]  ;;  %v834_v40 = vpack.c.bf16 %v204_v33, %v202_v32  ;;  %v78_v42 = vld [vmem:[%s1661_s1 + $0x1c8] sm:$0xff] }
  0x28   :  { %v203_v41 = vld [vmem:[%s1661_s1 + $0x5b0] sm:$0xff]  ;;  %v80_v43 = vld [vmem:[%s1661_s1 + $0x1d8] sm:$0xff]  ;;  %v206_v44 = vld [vmem:[%s1661_s1 + $0x5c8] sm:$0xff]  ;;  %v708_v46 = vpack.c.bf16 %v75_v38, %v73_v37 }
  0x29   :  { %693 = vmatpush1.bf16.msra.mxu1 %v692_v58  ;;  %v208_v45 = vld [vmem:[%s1661_s1 + $0x5d8] sm:$0xff]  ;;  %v836_v47 = vpack.c.bf16 %v203_v41, %v201_v39  ;;  %v710_v48 = vpack.c.bf16 %v80_v43, %v78_v42  ;;  %v77_v49 = vld [vmem:[%s1661_s1 + $0x1c0] sm:$0xff]  ;;  %v79_v50 = vld [vmem:[%s1661_s1 + $0x1d0] sm:$0xff]  ;;  %v890_v41 = vmov 0.0  }
  0x2a   :  { %821 = vmatpush1.bf16.msra.mxu0 %v820_v59  ;;  %695 = vmatprep.subr.bf16.mxu1 %v694_v60  ;;  %v205_v51 = vld [vmem:[%s1661_s1 + $0x5c0] sm:$0xff]  ;;  %v838_v52 = vpack.c.bf16 %v208_v45, %v206_v44  ;;  %v207_v53 = vld [vmem:[%s1661_s1 + $0x5d0] sm:$0xff]  ;;  %v82_v54 = vld [vmem:[%s1661_s1 + $0x1e8] sm:$0xff]  ;;  %v712_v58 = vpack.c.bf16 %v79_v50, %v77_v49 }
  0x2b   :  { %823 = vmatprep.subr.bf16.mxu0 %v822_v0  ;;  %v84_v55 = vld [vmem:[%s1661_s1 + $0x1f8] sm:$0xff]  ;;  %v210_v56 = vld [vmem:[%s1661_s1 + $0x5e8] sm:$0xff]  ;;  %v840_v59 = vpack.c.bf16 %v207_v53, %v205_v51  ;;  %v81_v61 = vld [vmem:[%s1661_s1 + $0x1e0] sm:$0xff] }
  0x2c   :  { %v212_v57 = vld [vmem:[%s1661_s1 + $0x5f8] sm:$0xff]  ;;  %v714_v60 = vpack.c.bf16 %v84_v55, %v82_v54  ;;  %v83_v62 = vld [vmem:[%s1661_s1 + $0x1f0] sm:$0xff]  ;;  %v209_v63 = vld [vmem:[%s1661_s1 + $0x5e0] sm:$0xff] }
  0x2d   :  { %697 = vmatpush1.bf16.msra.mxu1 %v696_v6  ;;  %v842_v0 = vpack.c.bf16 %v212_v57, %v210_v56  ;;  %v211_v1 = vld [vmem:[%s1661_s1 + $0x5f0] sm:$0xff]  ;;  %v86_v2 = vld [vmem:[%s1661_s1 + $0x208] sm:$0xff]  ;;  %v88_v3 = vld [vmem:[%s1661_s1 + $0x218] sm:$0xff]  ;;  %v716_v6 = vpack.c.bf16 %v83_v62, %v81_v61 }
  0x2e   :  { %825 = vmatpush1.bf16.msra.mxu0 %v824_v8  ;;  %699 = vmatprep.subr.bf16.mxu1 %v698_v9  ;;  %v214_v4 = vld [vmem:[%s1661_s1 + $0x608] sm:$0xff]  ;;  %v216_v5 = vld [vmem:[%s1661_s1 + $0x618] sm:$0xff]  ;;  %v844_v7 = vpack.c.bf16 %v211_v1, %v209_v63  ;;  %v718_v8 = vpack.c.bf16 %v88_v3, %v86_v2  ;;  %v85_v9 = vld [vmem:[%s1661_s1 + $0x200] sm:$0xff] }
  0x2f   :  { %827 = vmatprep.subr.bf16.mxu0 %v826_v13  ;;  %v87_v10 = vld [vmem:[%s1661_s1 + $0x210] sm:$0xff]  ;;  %v213_v11 = vld [vmem:[%s1661_s1 + $0x600] sm:$0xff]  ;;  %v846_v12 = vpack.c.bf16 %v216_v5, %v214_v4  ;;  %v90_v14 = vld [vmem:[%s1661_s1 + $0x228] sm:$0xff] }
  0x30   :  { %v215_v13 = vld [vmem:[%s1661_s1 + $0x610] sm:$0xff]  ;;  %v92_v15 = vld [vmem:[%s1661_s1 + $0x238] sm:$0xff]  ;;  %v218_v16 = vld [vmem:[%s1661_s1 + $0x628] sm:$0xff]  ;;  %v720_v18 = vpack.c.bf16 %v87_v10, %v85_v9 }
  0x31   :  { %701 = vmatpush1.bf16.msra.mxu1 %v700_v20  ;;  %v220_v17 = vld [vmem:[%s1661_s1 + $0x638] sm:$0xff]  ;;  %v89_v19 = vld [vmem:[%s1661_s1 + $0x220] sm:$0xff]  ;;  %v848_v20 = vpack.c.bf16 %v215_v13, %v213_v11  ;;  %v722_v21 = vpack.c.bf16 %v92_v15, %v90_v14  ;;  %v219_v25 = vld [vmem:[%s1661_s1 + $0x630] sm:$0xff] }
  0x32   :  { %829 = vmatpush1.bf16.msra.mxu0 %v828_v23  ;;  %703 = vmatprep.subr.bf16.mxu1 %v702_v24  ;;  %v91_v23 = vld [vmem:[%s1661_s1 + $0x230] sm:$0xff]  ;;  %v217_v24 = vld [vmem:[%s1661_s1 + $0x620] sm:$0xff]  ;;  %v850_v26 = vpack.c.bf16 %v220_v17, %v218_v16  ;;  %v96_v29 = vld [vmem:[%s1661_s1 + $0x258] sm:$0xff] }
  0x33   :  { %831 = vmatprep.subr.bf16.mxu0 %v830_v28  ;;  %v94_v28 = vld [vmem:[%s1661_s1 + $0x248] sm:$0xff]  ;;  %v1383_v30 = vld [vmem:[%s1662_s0 + $0x30] sm:$0xff]  ;;  %v224_v32 = vld [vmem:[%s1661_s1 + $0x658] sm:$0xff]  ;;  %v724_v33 = vpack.c.bf16 %v91_v23, %v89_v19 }
  0x34   :  { %v222_v31 = vld [vmem:[%s1661_s1 + $0x648] sm:$0xff]  ;;  %648 = vst [vmem:[%s1663_s3 + $0x40] sm:$0xff] %v1383_v30  ;;  %v221_v37 = vld [vmem:[%s1661_s1 + $0x640] sm:$0xff]  ;;  %v228_v43 = vld [vmem:[%s1661_s1 + $0x678] sm:$0xff] }
  0x35   :  { %705 = vmatpush1.bf16.msra.mxu1 %v704_v34  ;;  %v726_v34 = vpack.c.bf16 %v96_v29, %v94_v28  ;;  %v854_v38 = vpack.c.bf16 %v224_v32, %v222_v31  ;;  %v98_v39 = vld [vmem:[%s1661_s1 + $0x268] sm:$0xff]  ;;  %v225_v49 = vld [vmem:[%s1661_s1 + $0x660] sm:$0xff]  ;;  %v227_v51 = vld [vmem:[%s1661_s1 + $0x670] sm:$0xff] }
  0x36   :  { %833 = vmatpush1.bf16.msra.mxu0 %v832_v35  ;;  %707 = vmatprep.subr.bf16.mxu1 %v706_v36  ;;  %v93_v35 = vld [vmem:[%s1661_s1 + $0x240] sm:$0xff]  ;;  %v95_v36 = vld [vmem:[%s1661_s1 + $0x250] sm:$0xff]  ;;  %v226_v42 = vld [vmem:[%s1661_s1 + $0x668] sm:$0xff] }
  0x37   :  { %835 = vmatprep.subr.bf16.mxu0 %v834_v40  ;;  %v100_v40 = vld [vmem:[%s1661_s1 + $0x278] sm:$0xff]  ;;  %v728_v44 = vpack.c.bf16 %v95_v36, %v93_v35  ;;  %v858_v50 = vpack.c.bf16 %v228_v43, %v226_v42  ;;  %v230_v54 = vld [vmem:[%s1661_s1 + $0x688] sm:$0xff]  ;;  %v101_v61 = vld [vmem:[%s1661_s1 + $0x280] sm:$0xff] }
  0x38   :  { %v104_v53 = vld [vmem:[%s1661_s1 + $0x298] sm:$0xff]  ;;  %v103_v62 = vld [vmem:[%s1661_s1 + $0x290] sm:$0xff]  ;;  %v229_v63 = vld [vmem:[%s1661_s1 + $0x680] sm:$0xff] }
  0x39   :  { %709 = vmatpush1.bf16.msra.mxu1 %v708_v46  ;;  %v730_v46 = vpack.c.bf16 %v100_v40, %v98_v39  ;;  %v232_v55 = vld [vmem:[%s1661_s1 + $0x698] sm:$0xff]  ;;  %v231_v1 = vld [vmem:[%s1661_s1 + $0x690] sm:$0xff]  ;;  %v106_v2 = vld [vmem:[%s1661_s1 + $0x2a8] sm:$0xff] }
  0x3a   :  { %837 = vmatpush1.bf16.msra.mxu0 %v836_v47  ;;  %711 = vmatprep.subr.bf16.mxu1 %v710_v48  ;;  %v97_v47 = vld [vmem:[%s1661_s1 + $0x260] sm:$0xff]  ;;  %v99_v48 = vld [vmem:[%s1661_s1 + $0x270] sm:$0xff]  ;;  %v17_v57 = vld [vmem:[%s1662_s0 + $0x18] sm:$0xff] }
  0x3b   :  { %839 = vmatprep.subr.bf16.mxu0 %v838_v52  ;;  %v102_v52 = vld [vmem:[%s1661_s1 + $0x288] sm:$0xff]  ;;  %v732_v56 = vpack.c.bf16 %v99_v48, %v97_v47  ;;  %645 = vst [vmem:[%s1663_s3 + $0x28] sm:$0xff] %v17_v57  ;;  %v108_v3 = vld [vmem:[%s1661_s1 + $0x2b8] sm:$0xff]  ;;  %v105_v9 = vld [vmem:[%s1661_s1 + $0x2a0] sm:$0xff] }
  0x3c   :  { %v234_v4 = vld [vmem:[%s1661_s1 + $0x6a8] sm:$0xff]  ;;  %v236_v5 = vld [vmem:[%s1661_s1 + $0x6b8] sm:$0xff]  ;;  %v107_v10 = vld [vmem:[%s1661_s1 + $0x2b0] sm:$0xff] }
  0x3d   :  { %713 = vmatpush1.bf16.msra.mxu1 %v712_v58  ;;  %v1451_v58 = vld [vmem:[%s1662_s0 + $0x10] sm:$0xff]  ;;  %v233_v11 = vld [vmem:[%s1661_s1 + $0x6a0] sm:$0xff]  ;;  %v110_v14 = vld [vmem:[%s1661_s1 + $0x2c8] sm:$0xff] }
  0x3e   :  { %841 = vmatpush1.bf16.msra.mxu0 %v840_v59  ;;  %715 = vmatprep.subr.bf16.mxu1 %v714_v60  ;;  %v860_v59 = vpack.c.bf16 %v227_v51, %v225_v49  ;;  %v734_v60 = vpack.c.bf16 %v104_v53, %v102_v52  ;;  %644 = vst [vmem:[%s1663_s3 + $0x20] sm:$0xff] %v1451_v58  ;;  %v235_v13 = vld [vmem:[%s1661_s1 + $0x6b0] sm:$0xff]  ;;  %v112_v15 = vld [vmem:[%s1661_s1 + $0x2d8] sm:$0xff]  ;;  %v238_v16 = vld [vmem:[%s1661_s1 + $0x6c8] sm:$0xff] }
  0x3f   :  { %843 = vmatprep.subr.bf16.mxu0 %v842_v0  ;;  %v862_v0 = vpack.c.bf16 %v232_v55, %v230_v54  ;;  %v240_v17 = vld [vmem:[%s1661_s1 + $0x6d8] sm:$0xff]  ;;  %v868_v19 = vpack.c.bf16 %v235_v13, %v233_v11  ;;  %v111_v23 = vld [vmem:[%s1661_s1 + $0x2d0] sm:$0xff]  ;;  %v114_v28 = vld [vmem:[%s1661_s1 + $0x2e8] sm:$0xff] }
  0x40   :  { %v116_v29 = vld [vmem:[%s1661_s1 + $0x2f8] sm:$0xff]  ;;  %v242_v31 = vld [vmem:[%s1661_s1 + $0x6e8] sm:$0xff]  ;;  %v113_v35 = vld [vmem:[%s1661_s1 + $0x2e0] sm:$0xff] }
  0x41   :  { %717 = vmatpush1.bf16.msra.mxu1 %v716_v6  ;;  %v736_v6 = vpack.c.bf16 %v103_v62, %v101_v61  ;;  %v244_v32 = vld [vmem:[%s1661_s1 + $0x6f8] sm:$0xff]  ;;  %v115_v36 = vld [vmem:[%s1661_s1 + $0x2f0] sm:$0xff]  ;;  %v118_v39 = vld [vmem:[%s1661_s1 + $0x308] sm:$0xff] }
  0x42   :  { %845 = vmatpush1.bf16.msra.mxu0 %v844_v7  ;;  %719 = vmatprep.subr.bf16.mxu1 %v718_v8  ;;  %v864_v7 = vpack.c.bf16 %v231_v1, %v229_v63  ;;  %v738_v8 = vpack.c.bf16 %v108_v3, %v106_v2  ;;  %v120_v40 = vld [vmem:[%s1661_s1 + $0x318] sm:$0xff]  ;;  %v123_v51 = vld [vmem:[%s1661_s1 + $0x330] sm:$0xff]  ;;  %v126_v52 = vld [vmem:[%s1661_s1 + $0x348] sm:$0xff] }
  0x43   :  { %847 = vmatprep.subr.bf16.mxu0 %v846_v12  ;;  %v866_v12 = vpack.c.bf16 %v236_v5, %v234_v4  ;;  %v750_v43 = vpack.c.bf16 %v120_v40, %v118_v39  ;;  %v124_v47 = vld [vmem:[%s1661_s1 + $0x338] sm:$0xff]  ;;  %v129_v62 = vld [vmem:[%s1661_s1 + $0x360] sm:$0xff]  ;;  %v131_v63 = vld [vmem:[%s1661_s1 + $0x370] sm:$0xff] }
  0x44   :  { %310 = vmatmul.mubr.f32.vlgmr.msra.gmra.mrb[0].mxu1 %v1230_v22  ;;  %v852_v22 = vpack.c.bf16 %v219_v25, %v217_v24  ;;  %v237_v24 = vld [vmem:[%s1661_s1 + $0x6c0] sm:$0xff]  ;;  %v870_v25 = vpack.c.bf16 %v240_v17, %v238_v16  ;;  %v128_v53 = vld [vmem:[%s1661_s1 + $0x358] sm:$0xff]  ;;  %v764_v2 = vpack.c.bf16 %v131_v63, %v129_v62  ;;  %v135_v5 = vld [vmem:[%s1661_s1 + $0x390] sm:$0xff] }
  0x45   :  { %721 = vmatpush1.bf16.msra.mxu1 %v720_v18  ;;  %452 = vmatmul.mubr.f32.vlgmr.msra.gmra.mrb[0].mxu0 %v1245_v27  ;;  %v223_v27 = vld [vmem:[%s1661_s1 + $0x650] sm:$0xff]  ;;  %v740_v18 = vpack.c.bf16 %v107_v10, %v105_v9  ;;  %v758_v55 = vpack.c.bf16 %v128_v53, %v126_v52  ;;  %v136_v1 = vld [vmem:[%s1661_s1 + $0x398] sm:$0xff]  ;;  %v133_v4 = vld [vmem:[%s1661_s1 + $0x380] sm:$0xff] }
  0x46   :  { %849 = vmatpush1.bf16.msra.mxu0 %v848_v20  ;;  %723 = vmatprep.subr.bf16.mxu1 %v722_v21  ;;  %v856_v45 = vpack.c.bf16 %v223_v27, %v221_v37  ;;  %v742_v20 = vpack.c.bf16 %v112_v15, %v110_v14  ;;  %v109_v21 = vld [vmem:[%s1661_s1 + $0x2c0] sm:$0xff]  ;;  %v243_v27 = vld [vmem:[%s1661_s1 + $0x6f0] sm:$0xff]  ;;  %v144_v13 = vld [vmem:[%s1661_s1 + $0x3d8] sm:$0xff] }
  0x47   :  { %851 = vmatprep.subr.bf16.mxu0 %v850_v26  ;;  %522 = vmatprep.mubr.f32.mxu0 %v890_v41  ;;  %v239_v26 = vld [vmem:[%s1661_s1 + $0x6d0] sm:$0xff]  ;;  %v241_v37 = vld [vmem:[%s1661_s1 + $0x6e0] sm:$0xff]  ;;  %v748_v41 = vpack.c.bf16 %v115_v36, %v113_v35 }
  0x48   :  { %380 = vmatprep.mubr.f32.mxu1 %v17_v57  ;;  %v876_v42 = vpack.c.bf16 %v243_v27, %v241_v37  ;;  %v127_v57 = vld [vmem:[%s1661_s1 + $0x350] sm:$0xff]  ;;  %v137_v10 = vld [vmem:[%s1661_s1 + $0x3a0] sm:$0xff] }
  0x49   :  { %725 = vmatpush1.bf16.msra.mxu1 %v724_v33  ;;  %v744_v33 = vpack.c.bf16 %v111_v23, %v109_v21  ;;  %v139_v11 = vld [vmem:[%s1661_s1 + $0x3b0] sm:$0xff]  ;;  %v141_v16 = vld [vmem:[%s1661_s1 + $0x3c0] sm:$0xff] }
  0x4a   :  { %853 = vmatpush1.bf16.msra.mxu0 %v852_v22  ;;  %727 = vmatprep.subr.bf16.mxu1 %v726_v34  ;;  %v872_v22 = vpack.c.bf16 %v239_v26, %v237_v24  ;;  %v746_v34 = vpack.c.bf16 %v116_v29, %v114_v28  ;;  %v772_v14 = vpack.c.bf16 %v139_v11, %v137_v10  ;;  %v143_v17 = vld [vmem:[%s1661_s1 + $0x3d0] sm:$0xff]  ;;  %v145_v23 = vld [vmem:[%s1661_s1 + $0x3e0] sm:$0xff] }
  0x4b   :  { %855 = vmatprep.subr.bf16.mxu0 %v854_v38  ;;  %v874_v38 = vpack.c.bf16 %v244_v32, %v242_v31  ;;  %v147_v24 = vld [vmem:[%s1661_s1 + $0x3f0] sm:$0xff] }
  0x4d   :  { %729 = vmatpush1.bf16.msra.mxu1 %v728_v44  ;;  %v117_v44 = vld [vmem:[%s1661_s1 + $0x300] sm:$0xff] }
  0x4e   :  { %857 = vmatpush1.bf16.msra.mxu0 %v856_v45  ;;  %731 = vmatprep.subr.bf16.mxu1 %v730_v46  ;;  %v119_v45 = vld [vmem:[%s1661_s1 + $0x310] sm:$0xff]  ;;  %v122_v46 = vld [vmem:[%s1661_s1 + $0x328] sm:$0xff] }
  0x4f   :  { %859 = vmatprep.subr.bf16.mxu0 %v858_v50  ;;  %v752_v48 = vpack.c.bf16 %v119_v45, %v117_v44  ;;  %v754_v49 = vpack.c.bf16 %v124_v47, %v122_v46  ;;  %v121_v50 = vld [vmem:[%s1661_s1 + $0x320] sm:$0xff] }
  0x50   :  { %v756_v54 = vpack.c.bf16 %v123_v51, %v121_v50 }
  0x51   :  { %733 = vmatpush1.bf16.msra.mxu1 %v732_v56  ;;  %v125_v56 = vld [vmem:[%s1661_s1 + $0x340] sm:$0xff] }
  0x52   :  { %861 = vmatpush1.bf16.msra.mxu0 %v860_v59  ;;  %735 = vmatprep.subr.bf16.mxu1 %v734_v60  ;;  %v130_v59 = vld [vmem:[%s1661_s1 + $0x368] sm:$0xff]  ;;  %v760_v60 = vpack.c.bf16 %v127_v57, %v125_v56 }
  0x53   :  { %863 = vmatprep.subr.bf16.mxu0 %v862_v0  ;;  %v134_v0 = vld [vmem:[%s1661_s1 + $0x388] sm:$0xff] }
  0x54   :  { %v766_v3 = vpack.c.bf16 %v136_v1, %v134_v0 }
  0x55   :  { %737 = vmatpush1.bf16.msra.mxu1 %v736_v6  ;;  %v138_v6 = vld [vmem:[%s1661_s1 + $0x3a8] sm:$0xff] }
  0x56   :  { %865 = vmatpush1.bf16.msra.mxu0 %v864_v7  ;;  %739 = vmatprep.subr.bf16.mxu1 %v738_v8  ;;  %v140_v7 = vld [vmem:[%s1661_s1 + $0x3b8] sm:$0xff]  ;;  %v768_v8 = vpack.c.bf16 %v135_v5, %v133_v4  ;;  %v891_v5 = vmov 1966171168  }
  0x57   :  { %867 = vmatprep.subr.bf16.mxu0 %v866_v12  ;;  %v770_v9 = vpack.c.bf16 %v140_v7, %v138_v6  ;;  %v142_v12 = vld [vmem:[%s1661_s1 + $0x3c8] sm:$0xff]  ;;  %v576_v6 = vunpack.c.l.s4 %v891_v5  ;;  %v578_v7 = vlaneseq }
  0x58   :  { %v774_v15 = vpack.c.bf16 %v144_v13, %v142_v12 }
  0x59   :  { %741 = vmatpush1.bf16.msra.mxu1 %v740_v18  ;;  %v146_v18 = vld [vmem:[%s1661_s1 + $0x3e8] sm:$0xff] }
  0x5a   :  { %869 = vmatpush1.bf16.msra.mxu0 %v868_v19  ;;  %743 = vmatprep.subr.bf16.mxu1 %v742_v20  ;;  %v148_v19 = vld [vmem:[%s1661_s1 + $0x3f8] sm:$0xff]  ;;  %v776_v20 = vpack.c.bf16 %v143_v17, %v141_v16 }
  0x5b   :  { %871 = vmatprep.subr.bf16.mxu0 %v870_v25  ;;  %v778_v21 = vpack.c.bf16 %v148_v19, %v146_v18  ;;  %v780_v25 = vpack.c.bf16 %v147_v24, %v145_v23 }
  0x5d   :  { %745 = vmatpush1.bf16.msra.mxu1 %v744_v33 }
  0x5e   :  { %873 = vmatpush1.bf16.msra.mxu0 %v872_v22  ;;  %747 = vmatprep.subr.bf16.mxu1 %v746_v34 }
  0x5f   :  { %875 = vmatprep.subr.bf16.mxu0 %v874_v38 }
  0x61   :  { %749 = vmatpush1.bf16.msra.mxu1 %v748_v41 }
  0x62   :  { %877 = vmatpush1.bf16.msra.mxu0 %v876_v42  ;;  %751 = vmatprep.subr.bf16.mxu1 %v750_v43 }
  0x65   :  { %523 = vmatmul.mubr.f32.vlgmr.msra.gmra.mrb[0].mxu0 %v1383_v30  ;;  %753 = vmatpush1.bf16.msra.mxu1 %v752_v48  ;;  %v132_v30 = vld [vmem:[%s1661_s1 + $0x378] sm:$0xff] }
  0x66   :  { %755 = vmatprep.subr.bf16.mxu1 %v754_v49  ;;  %v762_v61 = vpack.c.bf16 %v132_v30, %v130_v59 }
  0x69   :  { %757 = vmatpush1.bf16.msra.mxu1 %v756_v54 }
  0x6a   :  { %759 = vmatprep.subr.bf16.mxu1 %v758_v55 }
  0x6d   :  { %761 = vmatpush1.bf16.msra.mxu1 %v760_v60 }
  0x6e   :  { %763 = vmatprep.subr.bf16.mxu1 %v762_v61 }
  0x71   :  { %765 = vmatpush1.bf16.msra.mxu1 %v764_v2 }
  0x72   :  { %767 = vmatprep.subr.bf16.mxu1 %v766_v3 }
  0x75   :  { %769 = vmatpush1.bf16.msra.mxu1 %v768_v8  ;;  %v577_v8 = vunpack.c.0.s8 %v576_v6 }
  0x76   :  { %771 = vmatprep.subr.bf16.mxu1 %v770_v9  ;;  %v579_v9 = vshrl.u32 %v578_v7, 7 }
  0x78   :  { %v580_v11 = vsub.s32 %v577_v8, %v579_v9  ;;  %v594_v17 = vsub.s32 0, %v579_v9  ;;  %v598_v18 = vsub.s32 1, %v579_v9 }
  0x79   :  { %773 = vmatpush1.bf16.msra.mxu1 %v772_v14 }
  0x7a   :  { %775 = vmatprep.subr.bf16.mxu1 %v774_v15  ;;  %v529_v15 = vld [vmem:[%s1664_s2] ss:$2 sm:$0x3] }
  0x7d   :  { %777 = vmatpush1.bf16.msra.mxu1 %v776_v20 }
  0x7e   :  { %779 = vmatprep.subr.bf16.mxu1 %v778_v21 }
  0x81   :  { %781 = vmatpush1.bf16.msra.mxu1 %v780_v25 }
  0x84   :  { %381 = vmatmul.mubr.f32.vlgmr.msra.gmra.mrb[0].mxu1 %v1451_v58 }
 0x138   :  { %v524_v26 = vpop.f32.mrb[0].mxu0 }
 0x139   :  { %v526_v28 = vpop.f32.mrb[1].mxu0 }
 0x157   :  { %v382_v29 = vpop.f32.mrb[0].mxu1 }
 0x158   :  { %v1642_v31 = vadd.f32 %v524_v26, %v382_v29  ;;  %v384_v32 = vpop.f32.mrb[1].mxu1 }
 0x159   :  { %v879_v33 = vadd.f32 %v526_v28, %v384_v32  ;;  %v653_v32 = vld [vmem:[%s1664_s2 + $0x1] ss:$2 sm:$0x3] }
 0x15a   :  { %v532_v22 = vrot.slane %v1642_v31, 4  ;;  %v546_v34 = vmul.f32 %v1642_v31, %v1642_v31 }
 0x15b   :  { %v538_v35 = vrot.slane %v879_v33, 4  ;;  %v547_v36 = vmul.f32 %v879_v33, %v879_v33 }
 0x15c   :  { %v533_v37 = vadd.f32 %v1642_v31, %v532_v22  ;;  %v548_v38 = vrot.slane %v546_v34, 4 }
 0x15d   :  { %v539_v27 = vadd.f32 %v879_v33, %v538_v35  ;;  %v554_v39 = vrot.slane %v547_v36, 4 }
 0x15e   :  { %v534_v58 = vrot.slane %v533_v37, 2  ;;  %v549_v40 = vadd.f32 %v548_v38, %v546_v34 }
 0x15f   :  { %v540_v41 = vrot.slane %v539_v27, 2  ;;  %v555_v42 = vadd.f32 %v554_v39, %v547_v36 }
 0x160   :  { %v535_v43 = vadd.f32 %v534_v58, %v533_v37  ;;  %v550_v44 = vrot.slane %v549_v40, 2 }
 0x161   :  { %v541_v45 = vadd.f32 %v540_v41, %v539_v27  ;;  %v556_v46 = vrot.slane %v555_v42, 2 }
 0x162   :  { %v536_v47 = vrot.slane %v535_v43, 1  ;;  %v551_v48 = vadd.f32 %v550_v44, %v549_v40 }
 0x163   :  { %v542_v49 = vrot.slane %v541_v45, 1  ;;  %v557_v50 = vadd.f32 %v556_v46, %v555_v42 }
 0x164   :  { %v537_v51 = vadd.f32 %v536_v47, %v535_v43  ;;  %v552_v52 = vrot.slane %v551_v48, 1 }
 0x165   :  { %v543_v53 = vadd.f32 %v542_v49, %v541_v45  ;;  %v558_v54 = vrot.slane %v557_v50, 1 }
 0x166   :  { %v544_v55 = vmul.f32 0.125, %v537_v51  ;;  %v553_v56 = vadd.f32 %v552_v52, %v551_v48 }
 0x167   :  { %v545_v57 = vmul.f32 0.125, %v543_v53  ;;  %v559_v59 = vadd.f32 %v558_v54, %v557_v50 }
 0x168   :  { %v560_v30 = vmul.f32 0.125, %v553_v56  ;;  %v562_v60 = vmul.f32 %v544_v55, %v544_v55 }
 0x169   :  { %v561_v61 = vmul.f32 0.125, %v559_v59  ;;  %v563_v62 = vmul.f32 %v545_v57, %v545_v57 }
 0x16a   :  { %v564_v63 = vsub.f32 %v560_v30, %v562_v60 }
 0x16b   :  { %v565_v0 = vsub.f32 %v561_v61, %v563_v62 }
 0x16c   :  { %v566_v1 = vmax.f32 %v564_v63, 0.0 }
 0x16d   :  { %v567_v2 = vmax.f32 %v565_v0, 0.0 }
 0x16e   :  { %v568_v3 = vadd.f32 1e-05, %v566_v1 }
 0x16f   :  { %v569_v4 = vadd.f32 1e-05, %v567_v2 }
 0x170   :  { %886 = vrsqrt.f32 %v568_v3 }
 0x171   :  { %888 = vrsqrt.f32 %v569_v4 }
 0x17a   :  { %v887_v10 = vpop.eup %886 }
 0x17b   :  { %v889_v12 = vpop.eup %888 }
 0x17c   :  { %v574_v13 = vcombine.low %v887_v10, %v889_v12 }
 0x17e   :  { %v581_v14 = vrot.slane %v574_v13, %v580_v11 }
 0x180   :  { %v588_v16 = vrot.slane %v581_v14, %v580_v11 }
 0x182   :  { %v590_v19 = vmul.f32 %v588_v16, %v529_v15 }
 0x184   :  { %v595_v20 = vrot.slane %v590_v19, %v594_v17  ;;  %v599_v21 = vrot.slane %v590_v19, %v598_v18 }
 0x186   :  { %v602_v23 = vmul.f32 %v595_v20, %v544_v55  ;;  %v603_v24 = vmul.f32 %v599_v21, %v545_v57  ;;  %v623_v25 = vmul.f32 %v1642_v31, %v595_v20  ;;  %v624_v26 = vmul.f32 %v879_v33, %v599_v21 }
 0x188   :  { %v606_v28 = vcombine.low %v602_v23, %v603_v24 }
 0x18a   :  { %v613_v29 = vrot.slane %v606_v28, %v580_v11 }
 0x18c   :  { %v620_v22 = vrot.slane %v613_v29, %v580_v11 }
 0x18e   :  { %v622_v34 = vsub.f32 %v653_v32, %v620_v22 }
 0x190   :  { %v629_v35 = vrot.slane %v622_v34, %v594_v17  ;;  %v633_v36 = vrot.slane %v622_v34, %v598_v18 }
 0x192   :  { %v636_v37 = vadd.f32 %v629_v35, %v623_v25  ;;  %v637_v38 = vadd.f32 %v633_v36, %v624_v26 }
 0x194   :  { %v638_v27 = vmax.f32 %v636_v37, 0.0  ;;  %v639_v39 = vmax.f32 %v637_v38, 0.0 }
 0x196   :  { %640 = vst [vmem:[%s1663_s3] sm:$0xff] %v638_v27  ;;  %641 = vst [vmem:[%s1663_s3 + $0x8] sm:$0xff] %v639_v39 }

// kernel: generator_forward.9
= control target key start
LH: loop header
LB: loop body
LE: loop exit
PB: predicated region body
PF: predicated region fallthrough
CT: control target
= control target key end

     0   :  { %s1414_s0 = inlined_call_operand.vmem [shape: f32[8,1152], index: 0, kind: input, shape index: {}]   ;;  %s1415_s1 = inlined_call_operand.vmem [shape: f32[1152,128], index: 1, kind: input, shape index: {}]   ;;  %s1416_s2 = inlined_call_operand.vmem [shape: f32[1,128], index: 2, kind: input, shape index: {}]   ;;  %s1417_s3 = inlined_call_operand.hbm [shape: f32[8,128], index: 3, kind: output, shape index: {}]  }
   0x1   :  { %v40_v0 = vld [vmem:[%s1415_s1 + $0x80] sm:$0xff]  ;;  %v41_v1 = vld [vmem:[%s1415_s1 + $0x88] sm:$0xff]  ;;  %v42_v11 = vld [vmem:[%s1415_s1 + $0x90] sm:$0xff] }
   0x2   :  { %v24_v2 = vld [vmem:[%s1415_s1] sm:$0xff]  ;;  %v734_v3 = vpack.c.bf16 %v41_v1, %v40_v0  ;;  %v25_v4 = vld [vmem:[%s1415_s1 + $0x8] sm:$0xff]  ;;  %v43_v13 = vld [vmem:[%s1415_s1 + $0x98] sm:$0xff] }
   0x3   :  { %v72_v5 = vld [vmem:[%s1415_s1 + $0x180] sm:$0xff]  ;;  %v73_v6 = vld [vmem:[%s1415_s1 + $0x188] sm:$0xff]  ;;  %v736_v7 = vpack.c.bf16 %v25_v4, %v24_v2  ;;  %v26_v14 = vld [vmem:[%s1415_s1 + $0x10] sm:$0xff]  ;;  %v738_v16 = vpack.c.bf16 %v43_v13, %v42_v11 }
   0x4   :  { %v766_v8 = vpack.c.bf16 %v73_v6, %v72_v5  ;;  %v56_v9 = vld [vmem:[%s1415_s1 + $0x100] sm:$0xff]  ;;  %v57_v10 = vld [vmem:[%s1415_s1 + $0x108] sm:$0xff]  ;;  %735 = vmatprep.subr.bf16.mxu0 %v734_v3  ;;  %v27_v15 = vld [vmem:[%s1415_s1 + $0x18] sm:$0xff] }
   0x5   :  { %v768_v12 = vpack.c.bf16 %v57_v10, %v56_v9  ;;  %737 = vmatpush3.bf16.msra.mxu0 %v736_v7  ;;  %v740_v17 = vpack.c.bf16 %v27_v15, %v26_v14  ;;  %v74_v18 = vld [vmem:[%s1415_s1 + $0x190] sm:$0xff]  ;;  %v75_v19 = vld [vmem:[%s1415_s1 + $0x198] sm:$0xff]  ;;  %v44_v23 = vld [vmem:[%s1415_s1 + $0xa0] sm:$0xff] }
   0x6   :  { %767 = vmatprep.subr.bf16.mxu1 %v766_v8  ;;  %v58_v20 = vld [vmem:[%s1415_s1 + $0x110] sm:$0xff]  ;;  %v770_v21 = vpack.c.bf16 %v75_v19, %v74_v18  ;;  %v59_v22 = vld [vmem:[%s1415_s1 + $0x118] sm:$0xff]  ;;  %v45_v24 = vld [vmem:[%s1415_s1 + $0xa8] sm:$0xff]  ;;  %739 = vmatprep.subr.bf16.mxu0 %v738_v16 }
   0x7   :  { %769 = vmatpush3.bf16.msra.mxu1 %v768_v12  ;;  %v772_v25 = vpack.c.bf16 %v59_v22, %v58_v20  ;;  %v742_v26 = vpack.c.bf16 %v45_v24, %v44_v23  ;;  %v28_v27 = vld [vmem:[%s1415_s1 + $0x20] sm:$0xff]  ;;  %v29_v28 = vld [vmem:[%s1415_s1 + $0x28] sm:$0xff]  ;;  %v46_v35 = vld [vmem:[%s1415_s1 + $0xb0] sm:$0xff] }
   0x8   :  { %v76_v29 = vld [vmem:[%s1415_s1 + $0x1a0] sm:$0xff]  ;;  %771 = vmatprep.subr.bf16.mxu1 %v770_v21  ;;  %v77_v30 = vld [vmem:[%s1415_s1 + $0x1a8] sm:$0xff]  ;;  %v744_v33 = vpack.c.bf16 %v29_v28, %v28_v27  ;;  %v47_v36 = vld [vmem:[%s1415_s1 + $0xb8] sm:$0xff] }
   0x9   :  { %v60_v31 = vld [vmem:[%s1415_s1 + $0x120] sm:$0xff]  ;;  %v61_v32 = vld [vmem:[%s1415_s1 + $0x128] sm:$0xff]  ;;  %741 = vmatpush3.bf16.msra.mxu0 %v740_v17  ;;  %v774_v34 = vpack.c.bf16 %v77_v30, %v76_v29  ;;  %v30_v37 = vld [vmem:[%s1415_s1 + $0x30] sm:$0xff]  ;;  %v746_v39 = vpack.c.bf16 %v47_v36, %v46_v35 }
   0xa   :  { %743 = vmatprep.subr.bf16.mxu0 %v742_v26  ;;  %v776_v38 = vpack.c.bf16 %v61_v32, %v60_v31  ;;  %v31_v40 = vld [vmem:[%s1415_s1 + $0x38] sm:$0xff]  ;;  %v78_v41 = vld [vmem:[%s1415_s1 + $0x1b0] sm:$0xff]  ;;  %v48_v46 = vld [vmem:[%s1415_s1 + $0xc0] sm:$0xff] }
   0xb   :  { %773 = vmatpush3.bf16.msra.mxu1 %v772_v25  ;;  %v79_v42 = vld [vmem:[%s1415_s1 + $0x1b8] sm:$0xff]  ;;  %v62_v44 = vld [vmem:[%s1415_s1 + $0x130] sm:$0xff]  ;;  %v49_v47 = vld [vmem:[%s1415_s1 + $0xc8] sm:$0xff]  ;;  %v748_v48 = vpack.c.bf16 %v31_v40, %v30_v37 }
   0xc   :  { %775 = vmatprep.subr.bf16.mxu1 %v774_v34  ;;  %v778_v43 = vpack.c.bf16 %v79_v42, %v78_v41  ;;  %v63_v45 = vld [vmem:[%s1415_s1 + $0x138] sm:$0xff]  ;;  %v80_v49 = vld [vmem:[%s1415_s1 + $0x1c0] sm:$0xff]  ;;  %v81_v50 = vld [vmem:[%s1415_s1 + $0x1c8] sm:$0xff]  ;;  %v750_v52 = vpack.c.bf16 %v49_v47, %v48_v46 }
   0xd   :  { %745 = vmatpush3.bf16.msra.mxu0 %v744_v33  ;;  %v780_v51 = vpack.c.bf16 %v63_v45, %v62_v44  ;;  %v32_v53 = vld [vmem:[%s1415_s1 + $0x40] sm:$0xff]  ;;  %v33_v54 = vld [vmem:[%s1415_s1 + $0x48] sm:$0xff]  ;;  %v782_v56 = vpack.c.bf16 %v81_v50, %v80_v49  ;;  %v50_v58 = vld [vmem:[%s1415_s1 + $0xd0] sm:$0xff] }
   0xe   :  { %747 = vmatprep.subr.bf16.mxu0 %v746_v39  ;;  %v64_v55 = vld [vmem:[%s1415_s1 + $0x140] sm:$0xff]  ;;  %v65_v57 = vld [vmem:[%s1415_s1 + $0x148] sm:$0xff]  ;;  %v51_v59 = vld [vmem:[%s1415_s1 + $0xd8] sm:$0xff]  ;;  %v752_v62 = vpack.c.bf16 %v33_v54, %v32_v53 }
   0xf   :  { %777 = vmatpush3.bf16.msra.mxu1 %v776_v38  ;;  %v82_v60 = vld [vmem:[%s1415_s1 + $0x1d0] sm:$0xff]  ;;  %v83_v61 = vld [vmem:[%s1415_s1 + $0x1d8] sm:$0xff]  ;;  %v784_v63 = vpack.c.bf16 %v65_v57, %v64_v55  ;;  %v754_v0 = vpack.c.bf16 %v51_v59, %v50_v58  ;;  %v52_v6 = vld [vmem:[%s1415_s1 + $0xe0] sm:$0xff] }
  0x10   :  { %779 = vmatprep.subr.bf16.mxu1 %v778_v43  ;;  %v34_v1 = vld [vmem:[%s1415_s1 + $0x50] sm:$0xff]  ;;  %v35_v2 = vld [vmem:[%s1415_s1 + $0x58] sm:$0xff]  ;;  %v786_v4 = vpack.c.bf16 %v83_v61, %v82_v60  ;;  %v53_v7 = vld [vmem:[%s1415_s1 + $0xe8] sm:$0xff] }
  0x11   :  { %749 = vmatpush3.bf16.msra.mxu0 %v748_v48  ;;  %v66_v3 = vld [vmem:[%s1415_s1 + $0x150] sm:$0xff]  ;;  %v67_v5 = vld [vmem:[%s1415_s1 + $0x158] sm:$0xff]  ;;  %v84_v8 = vld [vmem:[%s1415_s1 + $0x1e0] sm:$0xff]  ;;  %v756_v10 = vpack.c.bf16 %v35_v2, %v34_v1  ;;  %v758_v14 = vpack.c.bf16 %v53_v7, %v52_v6 }
  0x12   :  { %751 = vmatprep.subr.bf16.mxu0 %v750_v52  ;;  %v85_v9 = vld [vmem:[%s1415_s1 + $0x1e8] sm:$0xff]  ;;  %v36_v11 = vld [vmem:[%s1415_s1 + $0x60] sm:$0xff]  ;;  %v788_v13 = vpack.c.bf16 %v67_v5, %v66_v3  ;;  %v54_v19 = vld [vmem:[%s1415_s1 + $0xf0] sm:$0xff] }
  0x13   :  { %781 = vmatpush3.bf16.msra.mxu1 %v780_v51  ;;  %v16_v12 = vld [vmem:[%s1414_s0 + $0x8] sm:$0xff]  ;;  %v68_v16 = vld [vmem:[%s1415_s1 + $0x160] sm:$0xff]  ;;  %v790_v18 = vpack.c.bf16 %v85_v9, %v84_v8  ;;  %v55_v20 = vld [vmem:[%s1415_s1 + $0xf8] sm:$0xff] }
  0x14   :  { %783 = vmatprep.subr.bf16.mxu1 %v782_v56  ;;  %v37_v15 = vld [vmem:[%s1415_s1 + $0x68] sm:$0xff]  ;;  %239 = vmatprep.mubr.f32.mxu0 %v16_v12  ;;  %v18_v21 = vld [vmem:[%s1414_s0 + $0x18] sm:$0xff]  ;;  %v86_v22 = vld [vmem:[%s1415_s1 + $0x1f0] sm:$0xff]  ;;  %v762_v26 = vpack.c.bf16 %v55_v20, %v54_v19 }
  0x15   :  { %753 = vmatpush3.bf16.msra.mxu0 %v752_v62  ;;  %v69_v17 = vld [vmem:[%s1415_s1 + $0x168] sm:$0xff]  ;;  %v87_v23 = vld [vmem:[%s1415_s1 + $0x1f8] sm:$0xff]  ;;  %309 = vmatprep.mubr.f32.mxu1 %v18_v21  ;;  %v760_v24 = vpack.c.bf16 %v37_v15, %v36_v11  ;;  %v38_v27 = vld [vmem:[%s1415_s1 + $0x70] sm:$0xff] }
  0x16   :  { %755 = vmatprep.subr.bf16.mxu0 %v754_v0  ;;  %v792_v25 = vpack.c.bf16 %v69_v17, %v68_v16  ;;  %v39_v28 = vld [vmem:[%s1415_s1 + $0x78] sm:$0xff]  ;;  %v70_v29 = vld [vmem:[%s1415_s1 + $0x170] sm:$0xff]  ;;  %v794_v30 = vpack.c.bf16 %v87_v23, %v86_v22  ;;  %v104_v32 = vld [vmem:[%s1415_s1 + $0x280] sm:$0xff] }
  0x17   :  { %785 = vmatpush3.bf16.msra.mxu1 %v784_v63  ;;  %v71_v31 = vld [vmem:[%s1415_s1 + $0x178] sm:$0xff]  ;;  %v105_v33 = vld [vmem:[%s1415_s1 + $0x288] sm:$0xff]  ;;  %v136_v34 = vld [vmem:[%s1415_s1 + $0x380] sm:$0xff]  ;;  %v764_v36 = vpack.c.bf16 %v39_v28, %v38_v27 }
  0x18   :  { %787 = vmatprep.subr.bf16.mxu1 %v786_v4  ;;  %v137_v35 = vld [vmem:[%s1415_s1 + $0x388] sm:$0xff]  ;;  %v796_v37 = vpack.c.bf16 %v71_v31, %v70_v29  ;;  %v798_v38 = vpack.c.bf16 %v105_v33, %v104_v32  ;;  %v88_v39 = vld [vmem:[%s1415_s1 + $0x200] sm:$0xff]  ;;  %v106_v44 = vld [vmem:[%s1415_s1 + $0x290] sm:$0xff] }
  0x19   :  { %757 = vmatpush3.bf16.msra.mxu0 %v756_v10  ;;  %v89_v40 = vld [vmem:[%s1415_s1 + $0x208] sm:$0xff]  ;;  %v120_v41 = vld [vmem:[%s1415_s1 + $0x300] sm:$0xff]  ;;  %v830_v42 = vpack.c.bf16 %v137_v35, %v136_v34  ;;  %v107_v45 = vld [vmem:[%s1415_s1 + $0x298] sm:$0xff] }
  0x1a   :  { %759 = vmatprep.subr.bf16.mxu0 %v758_v14  ;;  %v121_v43 = vld [vmem:[%s1415_s1 + $0x308] sm:$0xff]  ;;  %v138_v46 = vld [vmem:[%s1415_s1 + $0x390] sm:$0xff]  ;;  %v139_v47 = vld [vmem:[%s1415_s1 + $0x398] sm:$0xff]  ;;  %v800_v49 = vpack.c.bf16 %v89_v40, %v88_v39  ;;  %v802_v52 = vpack.c.bf16 %v107_v45, %v106_v44 }
  0x1b   :  { %789 = vmatpush3.bf16.msra.mxu1 %v788_v13  ;;  %v15_v48 = vld [vmem:[%s1414_s0] sm:$0xff]  ;;  %v17_v50 = vld [vmem:[%s1414_s0 + $0x10] sm:$0xff]  ;;  %v832_v51 = vpack.c.bf16 %v121_v43, %v120_v41  ;;  %v91_v54 = vld [vmem:[%s1415_s1 + $0x218] sm:$0xff]  ;;  %v834_v56 = vpack.c.bf16 %v139_v47, %v138_v46 }
  0x1c   :  { %791 = vmatprep.subr.bf16.mxu1 %v790_v18  ;;  %v90_v53 = vld [vmem:[%s1415_s1 + $0x210] sm:$0xff]  ;;  %v123_v57 = vld [vmem:[%s1415_s1 + $0x318] sm:$0xff]  ;;  %v108_v58 = vld [vmem:[%s1415_s1 + $0x2a0] sm:$0xff] }
  0x1d   :  { %761 = vmatpush3.bf16.msra.mxu0 %v760_v24  ;;  %v122_v55 = vld [vmem:[%s1415_s1 + $0x310] sm:$0xff]  ;;  %v109_v59 = vld [vmem:[%s1415_s1 + $0x2a8] sm:$0xff]  ;;  %v140_v60 = vld [vmem:[%s1415_s1 + $0x3a0] sm:$0xff]  ;;  %v804_v62 = vpack.c.bf16 %v91_v54, %v90_v53 }
  0x1e   :  { %763 = vmatprep.subr.bf16.mxu0 %v762_v26  ;;  %v141_v61 = vld [vmem:[%s1415_s1 + $0x3a8] sm:$0xff]  ;;  %v836_v63 = vpack.c.bf16 %v123_v57, %v122_v55  ;;  %v806_v0 = vpack.c.bf16 %v109_v59, %v108_v58  ;;  %v92_v1 = vld [vmem:[%s1415_s1 + $0x220] sm:$0xff]  ;;  %v110_v6 = vld [vmem:[%s1415_s1 + $0x2b0] sm:$0xff] }
  0x1f   :  { %793 = vmatpush3.bf16.msra.mxu1 %v792_v25  ;;  %v93_v2 = vld [vmem:[%s1415_s1 + $0x228] sm:$0xff]  ;;  %v124_v3 = vld [vmem:[%s1415_s1 + $0x320] sm:$0xff]  ;;  %v838_v4 = vpack.c.bf16 %v141_v61, %v140_v60  ;;  %v111_v7 = vld [vmem:[%s1415_s1 + $0x2b8] sm:$0xff] }
  0x20   :  { %795 = vmatprep.subr.bf16.mxu1 %v794_v30  ;;  %v125_v5 = vld [vmem:[%s1415_s1 + $0x328] sm:$0xff]  ;;  %v142_v8 = vld [vmem:[%s1415_s1 + $0x3b0] sm:$0xff]  ;;  %v143_v9 = vld [vmem:[%s1415_s1 + $0x3b8] sm:$0xff]  ;;  %v808_v10 = vpack.c.bf16 %v93_v2, %v92_v1  ;;  %v810_v12 = vpack.c.bf16 %v111_v7, %v110_v6 }
  0x21   :  { %765 = vmatpush3.bf16.msra.mxu0 %v764_v36  ;;  %v840_v11 = vpack.c.bf16 %v125_v5, %v124_v3  ;;  %v94_v13 = vld [vmem:[%s1415_s1 + $0x230] sm:$0xff]  ;;  %v95_v14 = vld [vmem:[%s1415_s1 + $0x238] sm:$0xff]  ;;  %v842_v16 = vpack.c.bf16 %v143_v9, %v142_v8  ;;  %v112_v18 = vld [vmem:[%s1415_s1 + $0x2c0] sm:$0xff] }
  0x22   :  { %799 = vmatprep.subr.bf16.mxu0 %v798_v38  ;;  %v126_v15 = vld [vmem:[%s1415_s1 + $0x330] sm:$0xff]  ;;  %v127_v17 = vld [vmem:[%s1415_s1 + $0x338] sm:$0xff]  ;;  %v113_v19 = vld [vmem:[%s1415_s1 + $0x2c8] sm:$0xff]  ;;  %v812_v23 = vpack.c.bf16 %v95_v14, %v94_v13 }
  0x23   :  { %797 = vmatpush3.bf16.msra.mxu1 %v796_v37  ;;  %v144_v20 = vld [vmem:[%s1415_s1 + $0x3c0] sm:$0xff]  ;;  %v145_v21 = vld [vmem:[%s1415_s1 + $0x3c8] sm:$0xff]  ;;  %v22_v24 = vld [vmem:[%s1414_s0 + $0x38] sm:$0xff]  ;;  %v844_v25 = vpack.c.bf16 %v127_v17, %v126_v15  ;;  %v814_v26 = vpack.c.bf16 %v113_v19, %v112_v18 }
  0x24   :  { %831 = vmatprep.subr.bf16.mxu1 %v830_v42  ;;  %240 = vmatmul.mubr.f32.vlgmr.msra.gmra.mrb[0].mxu0 %v15_v48  ;;  %v20_v22 = vld [vmem:[%s1414_s0 + $0x28] sm:$0xff]  ;;  %v96_v27 = vld [vmem:[%s1415_s1 + $0x240] sm:$0xff]  ;;  %v846_v30 = vpack.c.bf16 %v145_v21, %v144_v20  ;;  %v114_v32 = vld [vmem:[%s1415_s1 + $0x2d0] sm:$0xff] }
  0x25   :  { %801 = vmatpush3.bf16.msra.mxu0 %v800_v49  ;;  %379 = vmatprep.mubr.f32.mxu0 %v20_v22  ;;  %v97_v28 = vld [vmem:[%s1415_s1 + $0x248] sm:$0xff]  ;;  %v128_v29 = vld [vmem:[%s1415_s1 + $0x340] sm:$0xff]  ;;  %v115_v33 = vld [vmem:[%s1415_s1 + $0x2d8] sm:$0xff] }
  0x26   :  { %310 = vmatmul.mubr.f32.vlgmr.msra.gmra.mrb[0].mxu1 %v17_v50  ;;  %803 = vmatprep.subr.bf16.mxu0 %v802_v52  ;;  %v129_v31 = vld [vmem:[%s1415_s1 + $0x348] sm:$0xff]  ;;  %v146_v34 = vld [vmem:[%s1415_s1 + $0x3d0] sm:$0xff]  ;;  %v147_v35 = vld [vmem:[%s1415_s1 + $0x3d8] sm:$0xff]  ;;  %v816_v36 = vpack.c.bf16 %v97_v28, %v96_v27  ;;  %v818_v38 = vpack.c.bf16 %v115_v33, %v114_v32 }
  0x27   :  { %833 = vmatpush3.bf16.msra.mxu1 %v832_v51  ;;  %449 = vmatprep.mubr.f32.mxu1 %v22_v24  ;;  %v848_v37 = vpack.c.bf16 %v129_v31, %v128_v29  ;;  %v98_v39 = vld [vmem:[%s1415_s1 + $0x250] sm:$0xff]  ;;  %v99_v40 = vld [vmem:[%s1415_s1 + $0x258] sm:$0xff]  ;;  %v850_v42 = vpack.c.bf16 %v147_v35, %v146_v34  ;;  %v116_v44 = vld [vmem:[%s1415_s1 + $0x2e0] sm:$0xff] }
  0x28   :  { %835 = vmatprep.subr.bf16.mxu1 %v834_v56  ;;  %v130_v41 = vld [vmem:[%s1415_s1 + $0x350] sm:$0xff]  ;;  %v131_v43 = vld [vmem:[%s1415_s1 + $0x358] sm:$0xff]  ;;  %v117_v45 = vld [vmem:[%s1415_s1 + $0x2e8] sm:$0xff] }
  0x29   :  { %805 = vmatpush3.bf16.msra.mxu0 %v804_v62  ;;  %v148_v46 = vld [vmem:[%s1415_s1 + $0x3e0] sm:$0xff]  ;;  %v149_v47 = vld [vmem:[%s1415_s1 + $0x3e8] sm:$0xff] }
  0x2a   :  { %807 = vmatprep.subr.bf16.mxu0 %v806_v0 }
  0x2b   :  { %837 = vmatpush3.bf16.msra.mxu1 %v836_v63 }
  0x2c   :  { %839 = vmatprep.subr.bf16.mxu1 %v838_v4 }
  0x2d   :  { %809 = vmatpush3.bf16.msra.mxu0 %v808_v10 }
  0x2e   :  { %811 = vmatprep.subr.bf16.mxu0 %v810_v12 }
  0x2f   :  { %841 = vmatpush3.bf16.msra.mxu1 %v840_v11 }
  0x30   :  { %843 = vmatprep.subr.bf16.mxu1 %v842_v16 }
  0x31   :  { %813 = vmatpush3.bf16.msra.mxu0 %v812_v23 }
  0x32   :  { %815 = vmatprep.subr.bf16.mxu0 %v814_v26 }
  0x33   :  { %845 = vmatpush3.bf16.msra.mxu1 %v844_v25 }
  0x34   :  { %847 = vmatprep.subr.bf16.mxu1 %v846_v30 }
  0x35   :  { %8 = vsyncpa [#allocation3], 0  ;;  %817 = vmatpush3.bf16.msra.mxu0 %v816_v36  ;;  %v820_v48 = vpack.c.bf16 %v99_v40, %v98_v39  ;;  %v852_v49 = vpack.c.bf16 %v131_v43, %v130_v41  ;;  %v822_v50 = vpack.c.bf16 %v117_v45, %v116_v44  ;;  %v100_v51 = vld [vmem:[%s1415_s1 + $0x260] sm:$0xff]  ;;  %v101_v52 = vld [vmem:[%s1415_s1 + $0x268] sm:$0xff]  ;;  %v854_v54 = vpack.c.bf16 %v149_v47, %v148_v46 }
  0x36   :  { %819 = vmatprep.subr.bf16.mxu0 %v818_v38  ;;  %v132_v53 = vld [vmem:[%s1415_s1 + $0x360] sm:$0xff]  ;;  %v133_v55 = vld [vmem:[%s1415_s1 + $0x368] sm:$0xff]  ;;  %v118_v56 = vld [vmem:[%s1415_s1 + $0x2f0] sm:$0xff]  ;;  %v824_v60 = vpack.c.bf16 %v101_v52, %v100_v51  ;;  %v916_v10 = vmov 0.0|0.0   ;;  %vm917_vm0 = vmmov 0   ;;  %v918_v17 = vmov 0.0  }
  0x37   :  { %849 = vmatpush3.bf16.msra.mxu1 %v848_v37  ;;  %v119_v57 = vld [vmem:[%s1415_s1 + $0x2f8] sm:$0xff]  ;;  %v150_v58 = vld [vmem:[%s1415_s1 + $0x3f0] sm:$0xff]  ;;  %v856_v61 = vpack.c.bf16 %v133_v55, %v132_v53  ;;  %v152_v6 = vld [vmem:[%s1415_s1 + $0x400] sm:$0xff] }
  0x38   :  { %851 = vmatprep.subr.bf16.mxu1 %v850_v42  ;;  %v151_v59 = vld [vmem:[%s1415_s1 + $0x3f8] sm:$0xff]  ;;  %v826_v62 = vpack.c.bf16 %v119_v57, %v118_v56  ;;  %v102_v63 = vld [vmem:[%s1415_s1 + $0x270] sm:$0xff]  ;;  %v153_v7 = vld [vmem:[%s1415_s1 + $0x408] sm:$0xff] }
  0x39   :  { %821 = vmatpush3.bf16.msra.mxu0 %v820_v48  ;;  %v103_v0 = vld [vmem:[%s1415_s1 + $0x278] sm:$0xff]  ;;  %v858_v1 = vpack.c.bf16 %v151_v59, %v150_v58  ;;  %v134_v2 = vld [vmem:[%s1415_s1 + $0x370] sm:$0xff]  ;;  %v19_v8 = vld [vmem:[%s1414_s0 + $0x20] sm:$0xff]  ;;  %v863_v9 = vpack.c.bf16 %v153_v7, %v152_v6 }
  0x3a   :  { %823 = vmatprep.subr.bf16.mxu0 %v822_v50  ;;  %v135_v3 = vld [vmem:[%s1415_s1 + $0x378] sm:$0xff]  ;;  %v828_v4 = vpack.c.bf16 %v103_v0, %v102_v63  ;;  %v21_v11 = vld [vmem:[%s1414_s0 + $0x30] sm:$0xff]  ;;  %v156_v15 = vld [vmem:[%s1415_s1 + $0x420] sm:$0xff] }
  0x3b   :  { %853 = vmatpush3.bf16.msra.mxu1 %v852_v49  ;;  %v860_v5 = vpack.c.bf16 %v135_v3, %v134_v2  ;;  %v154_v12 = vld [vmem:[%s1415_s1 + $0x410] sm:$0xff]  ;;  %v155_v13 = vld [vmem:[%s1415_s1 + $0x418] sm:$0xff]  ;;  %v157_v16 = vld [vmem:[%s1415_s1 + $0x428] sm:$0xff] }
  0x3c   :  { %855 = vmatprep.subr.bf16.mxu1 %v854_v54  ;;  %v866_v14 = vpack.c.bf16 %v155_v13, %v154_v12  ;;  %v869_v18 = vpack.c.bf16 %v157_v16, %v156_v15  ;;  %v158_v19 = vld [vmem:[%s1415_s1 + $0x430] sm:$0xff]  ;;  %v159_v20 = vld [vmem:[%s1415_s1 + $0x438] sm:$0xff]  ;;  %v160_v22 = vld [vmem:[%s1415_s1 + $0x440] sm:$0xff] }
  0x3d   :  { %825 = vmatpush3.bf16.msra.mxu0 %v824_v60  ;;  %v872_v21 = vpack.c.bf16 %v159_v20, %v158_v19  ;;  %v161_v23 = vld [vmem:[%s1415_s1 + $0x448] sm:$0xff]  ;;  %v162_v25 = vld [vmem:[%s1415_s1 + $0x450] sm:$0xff]  ;;  %v163_v26 = vld [vmem:[%s1415_s1 + $0x458] sm:$0xff] }
  0x3e   :  { %827 = vmatprep.subr.bf16.mxu0 %v826_v62  ;;  %v875_v24 = vpack.c.bf16 %v161_v23, %v160_v22  ;;  %v878_v27 = vpack.c.bf16 %v163_v26, %v162_v25  ;;  %v164_v28 = vld [vmem:[%s1415_s1 + $0x460] sm:$0xff]  ;;  %v165_v29 = vld [vmem:[%s1415_s1 + $0x468] sm:$0xff]  ;;  %v166_v31 = vld [vmem:[%s1415_s1 + $0x470] sm:$0xff] }
  0x3f   :  { %857 = vmatpush3.bf16.msra.mxu1 %v856_v61  ;;  %v881_v30 = vpack.c.bf16 %v165_v29, %v164_v28  ;;  %v167_v32 = vld [vmem:[%s1415_s1 + $0x478] sm:$0xff]  ;;  %v23_v34 = vld [vmem:[%s1414_s0 + $0x40] sm:$0xff]  ;;  %s919_s0 = smov [#allocation2]  }
  0x40   :  { %859 = vmatprep.subr.bf16.mxu1 %v858_v1  ;;  %v884_v33 = vpack.c.bf16 %v167_v32, %v166_v31  ;;  %v541_v36 = vld [vmem:[%s1416_s2] ss:$0 sm:$0xff]  ;;  %s533_s1 = sshll.u32 %s919_s0, 4  ;;  %s534_s1 = int_to_ptr.vmem [resolvable:$true] %s533_s1 }
  0x41   :  { %829 = vmatpush3.bf16.msra.mxu0 %v828_v4  ;;  %s892_s2 = scalar_lea.vmem %s534_s1, 128  ;;  %p897_p1 = scmp.lt.s32.totalorder %s534_s1, %s534_s1 }
  0x42   :  { %862 = vmatprep.subr.bf16.mxu0 %v916_v10  ;;  %p893_p0 = scmp.ne.s32.totalorder %s534_s1, %s892_s2  ;;  %p898_p2 = scmp.lt.s32.totalorder %s892_s2, %s892_s2 }
  0x43   :  { %861 = vmatpush3.bf16.msra.mxu1 %v860_v5 }
  0x44   :  { %380 = vmatmul.mubr.f32.vlgmr.msra.gmra.mrb[2].mxu0 %v19_v8  ;;  %p899_p3 = por %p898_p2, %p897_p1 }
  0x45   :  { %864 = vmatpush3.bf16.msra.mxu0 %v863_v9  ;;  %731 = vmatprep.mubr.msk.f32.mxu0 %vm917_vm0, %v918_v17 }
  0x46   :  { %450 = vmatmul.mubr.f32.vlgmr.msra.gmra.mrb[2].mxu1 %v21_v11  ;;  %865 = vmatprep.subr.bf16.mxu0 %v916_v10  ;;  %p900_p4 = pnand %p899_p3, %p893_p0 }
  0x49   :  { %867 = vmatpush3.bf16.msra.mxu0 %v866_v14 }
  0x4a   :  { %868 = vmatprep.subr.bf16.mxu0 %v916_v10 }
  0x4d   :  { %870 = vmatpush3.bf16.msra.mxu0 %v869_v18 }
  0x4e   :  { %871 = vmatprep.subr.bf16.mxu0 %v916_v10 }
  0x51   :  { %873 = vmatpush3.bf16.msra.mxu0 %v872_v21 }
  0x52   :  { %874 = vmatprep.subr.bf16.mxu0 %v916_v10 }
  0x55   :  { %876 = vmatpush3.bf16.msra.mxu0 %v875_v24 }
  0x56   :  { %877 = vmatprep.subr.bf16.mxu0 %v916_v10 }
  0x59   :  { %879 = vmatpush3.bf16.msra.mxu0 %v878_v27 }
  0x5a   :  { %880 = vmatprep.subr.bf16.mxu0 %v916_v10 }
  0x5d   :  { %882 = vmatpush3.bf16.msra.mxu0 %v881_v30 }
  0x5e   :  { %883 = vmatprep.subr.bf16.mxu0 %v916_v10 }
  0x61   :  { %885 = vmatpush3.bf16.msra.mxu0 %v884_v33 }
  0x64   :  { %732 = vmatmul.mubr.f32.vlgmr.msra.gmra.mrb[4].mxu0 %v23_v34 }
  0xf7   :  { %v574_v35 = vpop.f32.mrb[0].mxu0 }
  0xf8   :  { %v575_v37 = vpop.f32.mrb[1].mxu0 }
  0xf9   :  { %v609_v38 = vpop.f32.mrb[0].mxu1  ;;  %v576_v39 = vadd.f32 %v575_v37, %v574_v35 }
  0xfa   :  { %v610_v40 = vpop.f32.mrb[1].mxu1 }
  0xfb   :  { %v611_v41 = vadd.f32 %v610_v40, %v609_v38  ;;  %v242_v42 = vadd.f32 %v576_v39, %v541_v36 }
  0xfd   :  { %v312_v43 = vadd.f32 %v611_v41, %v242_v42 }
 0x117   :  { %v644_v44 = vpop.f32.mrb[2].mxu0 }
 0x118   :  { %v645_v45 = vpop.f32.mrb[3].mxu0 }
 0x119   :  { %v679_v46 = vpop.f32.mrb[2].mxu1  ;;  %v646_v47 = vadd.f32 %v645_v45, %v644_v44 }
 0x11a   :  { %v680_v48 = vpop.f32.mrb[3].mxu1 }
 0x11b   :  { %v681_v49 = vadd.f32 %v680_v48, %v679_v46  ;;  %v382_v50 = vadd.f32 %v646_v47, %v312_v43 }
 0x11d   :  { %v452_v51 = vadd.f32 %v681_v49, %v382_v50 }
 0x137   :  { %v521_v52 = vpop.f32.mrb[4].mxu0 }
 0x138   :  { %v522_v53 = vadd.f32 %v521_v52, %v452_v51  ;;  %v733_v54 = vpop.f32.mrb[5].mxu0 }
 0x13a   :  { %890 = vtanh.f32 %v522_v53 }
 0x144   :  { %v891_v55 = vpop.eup %890 }
 0x145   :  { %526 = vst [vmem:[#allocation2] sm:$0xff] %v891_v55 }
 0x146   :  { %903 = shalt.err (!%p900_p4)
}
 0x147   :  { %s904_s25 = scalar_lea.hbm %s1417_s3, 128 }
 0x148   :  { %p905_p5 = scmp.ne.s32.totalorder %s1417_s3, %s904_s25  ;;  %p908_p6 = scmp.lt.u32.totalorder %s904_s25, %s1417_s3 }
 0x14a   :  { %p910_p7 = pnand %p908_p6, %p905_p5 }
 0x14c   :  { %913 = shalt.err (!%p910_p7)
}
 0x14d   :  { %536 = dma.vmem_to_hbm [thread:$0]  %s534_s1, 128, %s1417_s3, [#allocation3]  }
 0x14e   :  { %914 = dma.done.wait [#allocation3], 128  }
 0x14f   :  { %915 = vsyncadd [#allocation3], 4294967168 }
 0x150   :  { %540 = vsyncpa [#allocation3], 1 }

</bundles_post_ra>
